<compile_context>
chip_gen: v6e
topology: v6e:2x2x1
jax: 0.10.0
libtpu: 0.0.40
codegen_flags: <defaults>
</compile_context>

<pallas_src>
import functools

import jax
import jax.numpy as jnp
import numpy as np
from jax import lax
from jax.experimental import pallas as pl
from jax.experimental.pallas import tpu as pltpu


def _tlstm_kernel(gx_ref, t_ref, uh_ref, wd_ref, bd_ref,
                  h_out_ref, c_out_ref, h_sc, c_sc, *, hidden_size, t_blk):
    ti = pl.program_id(1)

    # initial_states is None in the reference -> zeros at the start of every
    # batch block (time index wraps to 0 whenever the batch block advances).
    @pl.when(ti == 0)
    def _():
        h_sc[...] = jnp.zeros_like(h_sc)
        c_sc[...] = jnp.zeros_like(c_sc)

    H = hidden_size
    w_dtype = uh_ref.dtype
    uh = uh_ref[...]
    wd = wd_ref[...]
    bd = bd_ref[...]

    def step(s, carry):
        h, c = carry
        gx = gx_ref[s]        # (B_BLK, 4H) f32 pre-activations (x@Wx + biases)
        T = t_ref[s]          # (B_BLK, 1)  f32, precomputed 1/log(t + 2.7183)

        # Time-aware subspace decomposition of the cell state.
        C_ST = jnp.tanh(
            jnp.dot(c.astype(w_dtype), wd,
                    preferred_element_type=jnp.float32) + bd)
        c = c - C_ST + T * C_ST

        # Only the recurrent projection remains on the serial critical path.
        gates = gx + jnp.dot(h.astype(w_dtype), uh,
                             preferred_element_type=jnp.float32)
        i = jax.nn.sigmoid(gates[:, 0 * H:1 * H])
        f = jax.nn.sigmoid(gates[:, 1 * H:2 * H])
        o = jax.nn.sigmoid(gates[:, 2 * H:3 * H])
        Cg = jnp.tanh(gates[:, 3 * H:4 * H])

        c = f * c + i * Cg
        h = o * jnp.tanh(c)

        h_out_ref[s] = h.astype(h_out_ref.dtype)
        c_out_ref[s] = c.astype(c_out_ref.dtype)
        return h, c

    h, c = lax.fori_loop(0, t_blk, step, (h_sc[...], c_sc[...]), unroll=True)
    h_sc[...] = h
    c_sc[...] = c


def tlstm_forward(inputs, timestamps, params, *, t_blk=8, b_blk=8,
                  weight_dtype=jnp.float32):
    """inputs: (B, SEQ, E) f32, timestamps: (B, SEQ) f32.

    Returns (outputs, (hidden_states, cell_states)), each (B, SEQ, H),
    matching the PyTorch module (outputs == hidden_states).
    """
    b, seq, embed = inputs.shape
    hidden = params["wd"].shape[0]

    # ---- hoisted input projection + biases: one big batched MXU matmul.
    wx = params["wx"].astype(weight_dtype)                       # (E, 4H)
    gx = jnp.dot(inputs.astype(weight_dtype).reshape(b * seq, embed), wx,
                 preferred_element_type=jnp.float32)
    gx = gx.reshape(b, seq, 4 * hidden) + params["bg"]           # (B, SEQ, 4H)

    # ---- precompute elapse-time map (one fused elementwise op).
    Tmap = 1.0 / jnp.log(timestamps + 2.7183)                    # (B, SEQ)

    # ---- pad batch / sequence to tile multiples (sliced back off at the end).
    b_pad = pl.cdiv(b, b_blk) * b_blk
    seq_pad = pl.cdiv(seq, t_blk) * t_blk
    if b_pad != b or seq_pad != seq:
        gx = jnp.pad(gx, ((0, b_pad - b), (0, seq_pad - seq), (0, 0)))
        Tmap = jnp.pad(Tmap, ((0, b_pad - b), (0, seq_pad - seq)),
                       constant_values=1.0)

    # Kernel layout: (SEQ, B, *) so each step reads a contiguous leading slab.
    gx_sb = jnp.transpose(gx, (1, 0, 2))                         # (SEQ, B, 4H)
    t_sb = jnp.transpose(Tmap, (1, 0))[..., None]                # (SEQ, B, 1)

    uh = params["uh"].astype(weight_dtype)                       # (H, 4H)
    wd = params["wd"].astype(weight_dtype)                       # (H, H)
    bd = params["bd"]                                            # (1, H) f32

    kernel = functools.partial(_tlstm_kernel, hidden_size=hidden, t_blk=t_blk)
    n_b, n_t = b_pad // b_blk, seq_pad // t_blk

    full = lambda arr: pl.BlockSpec(arr.shape, lambda bi, ti: (0,) * arr.ndim)

    cost = pl.CostEstimate(
        flops=int(seq_pad * b_pad * (2 * hidden * 4 * hidden
                                     + 2 * hidden * hidden)
                  + 14 * seq_pad * b_pad * hidden),
        transcendentals=int(6 * seq_pad * b_pad * hidden),
        bytes_accessed=int(gx_sb.size * gx_sb.dtype.itemsize
                           + t_sb.size * t_sb.dtype.itemsize
                           + uh.size * uh.dtype.itemsize
                           + wd.size * wd.dtype.itemsize
                           + bd.size * bd.dtype.itemsize
                           + 2 * seq_pad * b_pad * hidden * 4))

    h_seq, c_seq = pl.pallas_call(
        kernel,
        out_shape=(
            jax.ShapeDtypeStruct((seq_pad, b_pad, hidden), jnp.float32),
            jax.ShapeDtypeStruct((seq_pad, b_pad, hidden), jnp.float32),
        ),
        grid_spec=pltpu.PrefetchScalarGridSpec(
            num_scalar_prefetch=0,
            grid=(n_b, n_t),
            in_specs=[
                pl.BlockSpec((t_blk, b_blk, 4 * hidden),
                             lambda bi, ti: (ti, bi, 0)),          # gate pre-acts
                pl.BlockSpec((t_blk, b_blk, 1),
                             lambda bi, ti: (ti, bi, 0)),          # T map
                full(uh), full(wd), full(bd),
            ],
            out_specs=[
                pl.BlockSpec((t_blk, b_blk, hidden),
                             lambda bi, ti: (ti, bi, 0)),
                pl.BlockSpec((t_blk, b_blk, hidden),
                             lambda bi, ti: (ti, bi, 0)),
            ],
            scratch_shapes=[
                pltpu.VMEM((b_blk, hidden), jnp.float32),   # h carry
                pltpu.VMEM((b_blk, hidden), jnp.float32),   # c carry
            ],
        ),
        compiler_params=pltpu.CompilerParams(
            dimension_semantics=("parallel", "arbitrary")),
        cost_estimate=cost,
    )(gx_sb, t_sb, uh, wd, bd)

    outputs = jnp.transpose(h_seq, (1, 0, 2))[:b, :seq]     # (B, SEQ, H)
    cells = jnp.transpose(c_seq, (1, 0, 2))[:b, :seq]       # (B, SEQ, H)
    return outputs, (outputs, cells)


def init_params(key, input_size, hidden_size):
    """Deterministic synthetic parameters matching the module's shapes.

    nn.Linear(in, out) -> weight (out, in), bias (out).  The extra
    bi/bf/bog/bc/b_decomp parameters are zeros at init, so the fused gate
    biases equal the Linear biases.
    """
    ks = jax.random.split(key, 10)

    def lin(kw, kb, fan_in, fan_out):
        bound = 1.0 / np.sqrt(fan_in)
        w = jax.random.uniform(kw, (fan_out, fan_in), jnp.float32, -bound, bound)
        bias = jax.random.uniform(kb, (fan_out,), jnp.float32, -bound, bound)
        return w, bias

    Wi, bWi = lin(ks[0], ks[1], input_size, hidden_size)
    Wf, bWf = lin(ks[2], ks[3], input_size, hidden_size)
    Wo, bWo = lin(ks[4], ks[5], input_size, hidden_size)
    Wc, bWc = lin(ks[6], ks[7], input_size, hidden_size)
    Ui, bUi = lin(jax.random.fold_in(ks[0], 1), jax.random.fold_in(ks[1], 1),
                  hidden_size, hidden_size)
    Uf, bUf = lin(jax.random.fold_in(ks[2], 1), jax.random.fold_in(ks[3], 1),
                  hidden_size, hidden_size)
    Uo, bUo = lin(jax.random.fold_in(ks[4], 1), jax.random.fold_in(ks[5], 1),
                  hidden_size, hidden_size)
    Uc, bUc = lin(jax.random.fold_in(ks[6], 1), jax.random.fold_in(ks[7], 1),
                  hidden_size, hidden_size)
    Wd, bWd = lin(ks[8], ks[9], hidden_size, hidden_size)

    params = {
        # x @ Wx : concat gate order [i, f, o, C]
        "wx": jnp.concatenate([Wi.T, Wf.T, Wo.T, Wc.T], axis=1),   # (E, 4H)
        "uh": jnp.concatenate([Ui.T, Uf.T, Uo.T, Uc.T], axis=1),   # (H, 4H)
        # Linear bias + extra zero Parameter (bi/bf/bog/bc) per gate.
        "bg": jnp.concatenate([bWi + bUi, bWf + bUf, bWo + bUo,
                               bWc + bUc])[None, :],               # (1, 4H)
        "wd": Wd.T,                                                # (H, H)
        "bd": bWd[None, :],                                        # (1, H) (+ b_decomp == 0)
    }
    return params


def tlstm_reference(inputs, timestamps, params, weight_dtype=jnp.float32):
    """Pure-JAX reference mirroring the PyTorch loop (for validation).

    weight_dtype lets the same reference mirror the bf16-weight numerics of
    the optimized kernel (f32 path == PyTorch module semantics)."""
    b, seq, _ = inputs.shape
    H = params["wd"].shape[0]
    wx = params["wx"].astype(weight_dtype)
    uh = params["uh"].astype(weight_dtype)
    wd = params["wd"].astype(weight_dtype)
    cast = lambda a: a.astype(weight_dtype)
    h = jnp.zeros((b, H), jnp.float32)
    c = jnp.zeros((b, H), jnp.float32)
    hs, cs = [], []
    for s in range(seq):
        x = inputs[:, s, :]
        t = timestamps[:, s:s + 1]
        T = 1.0 / jnp.log(t + 2.7183)
        C_ST = jnp.tanh(jnp.dot(cast(c), wd,
                                preferred_element_type=jnp.float32)
                        + params["bd"])
        c = c - C_ST + T * C_ST
        gates = (jnp.dot(cast(x), wx, preferred_element_type=jnp.float32)
                 + jnp.dot(cast(h), uh, preferred_element_type=jnp.float32)
                 + params["bg"])
        i = jax.nn.sigmoid(gates[:, 0 * H:1 * H])
        f = jax.nn.sigmoid(gates[:, 1 * H:2 * H])
        o = jax.nn.sigmoid(gates[:, 2 * H:3 * H])
        Cg = jnp.tanh(gates[:, 3 * H:4 * H])
        c = f * c + i * Cg
        h = o * jnp.tanh(c)
        hs.append(h)
        cs.append(c)
    return jnp.stack(hs, 1), jnp.stack(cs, 1)


if __name__ == "__main__":
    # Lane/sublane aligned shapes: H multiple of 128, B multiple of 8,
    # SEQ = 2 time blocks, B = 2 batch blocks (exercises both grid axes).
    B, SEQ, E, H = 16, 16, 32, 128

    key = jax.random.PRNGKey(0)
    k_in, k_ts, k_par = jax.random.split(key, 3)
    inputs = jax.random.normal(k_in, (B, SEQ, E), jnp.float32)
    # positive elapsed times (like the PyTorch usage)
    timestamps = jax.random.uniform(k_ts, (B, SEQ), jnp.float32, 0.1, 10.0)
    params = init_params(k_par, E, H)

    # --- f32 weights: tight check against the PyTorch-equivalent reference.
    out32, (h32, c32) = tlstm_forward(inputs, timestamps, params,
                                      weight_dtype=jnp.float32)
    jax.block_until_ready((out32, c32))
    ref_h, ref_c = tlstm_reference(inputs, timestamps, params)
    np.testing.assert_allclose(np.asarray(out32), np.asarray(ref_h),
                               rtol=1e-4, atol=1e-4)
    np.testing.assert_allclose(np.asarray(c32), np.asarray(ref_c),
                               rtol=1e-4, atol=1e-4)

    # --- bf16 weights (v6e/v7x MXU-rate + VMEM-residency optimization):
    # compared against a reference using the same bf16 weight numerics.
    out16, (h16, c16) = tlstm_forward(inputs, timestamps, params,
                                      weight_dtype=jnp.bfloat16)
    jax.block_until_ready((out16, c16))
    ref_h16, ref_c16 = tlstm_reference(inputs, timestamps, params,
                                       weight_dtype=jnp.bfloat16)
    np.testing.assert_allclose(np.asarray(out16), np.asarray(ref_h16),
                               rtol=5e-3, atol=5e-3)
    np.testing.assert_allclose(np.asarray(c16), np.asarray(ref_c16),
                               rtol=5e-3, atol=5e-3)

    assert out32.shape == (B, SEQ, H)
    assert h32.shape == (B, SEQ, H)
    assert c32.shape == (B, SEQ, H)

    print("KERNEL_OK")
</pallas_src>

<mosaic_0001>
module attributes {stable_mosaic.version = 11 : i64} {
  func.func @_tlstm_kernel(%arg0: i32, %arg1: i32, %arg2: memref<8x8x512xf32, #tpu.memory_space<vmem>>, %arg3: memref<8x8x1xf32, #tpu.memory_space<vmem>>, %arg4: memref<128x512xf32, #tpu.memory_space<vmem>>, %arg5: memref<128x128xf32, #tpu.memory_space<vmem>>, %arg6: memref<1x128xf32, #tpu.memory_space<vmem>>, %arg7: memref<8x8x128xf32, #tpu.memory_space<vmem>>, %arg8: memref<8x8x128xf32, #tpu.memory_space<vmem>>, %arg9: memref<8x128xf32, #tpu.memory_space<vmem>>, %arg10: memref<8x128xf32, #tpu.memory_space<vmem>>) attributes {dimension_semantics = [#tpu.dimension_semantics<parallel>, #tpu.dimension_semantics<arbitrary>], iteration_bounds = array<i64: 2, 2>, scalar_prefetch = 0 : i64, scratch_operands = 2 : i64, tpu.core_type = #tpu.core_type<tc>, window_params = [{transform_indices = @transform_0, window_bounds = array<i64: 8, 8, 512>}, {transform_indices = @transform_1, window_bounds = array<i64: 8, 8, 1>}, {pipeline_mode = #tpu.pipeline_mode<synchronous>, transform_indices = @transform_2, window_bounds = array<i64: 128, 512>}, {pipeline_mode = #tpu.pipeline_mode<synchronous>, transform_indices = @transform_3, window_bounds = array<i64: 128, 128>}, {pipeline_mode = #tpu.pipeline_mode<synchronous>, transform_indices = @transform_4, window_bounds = array<i64: 1, 128>}, {transform_indices = @transform_5, window_bounds = array<i64: 8, 8, 128>}, {transform_indices = @transform_6, window_bounds = array<i64: 8, 8, 128>}]} {
    %c0_i32 = arith.constant 0 : i32
    %0 = arith.cmpi eq, %arg1, %c0_i32 : i32
    %1 = arith.extui %0 : i1 to i32
    %c0_i32_0 = arith.constant 0 : i32
    %2 = arith.cmpi ne, %1, %c0_i32_0 : i32
    scf.if %2 {
      %cst_118 = arith.constant 0.000000e+00 : f32
      %402 = vector.broadcast %cst_118 : f32 to vector<8x128xf32>
      %c0_119 = arith.constant 0 : index
      %c0_120 = arith.constant 0 : index
      %403 = vector.load %arg9[%c0_119, %c0_120] : memref<8x128xf32, #tpu.memory_space<vmem>>, vector<8x128xf32>
      tpu.vector_store %arg9[%c0_119, %c0_120], %402 {strides = array<i32>} : memref<8x128xf32, #tpu.memory_space<vmem>>, vector<8x128xf32>,
      %cst_121 = arith.constant 0.000000e+00 : f32
      %404 = vector.broadcast %cst_121 : f32 to vector<8x128xf32>
      %c0_122 = arith.constant 0 : index
      %c0_123 = arith.constant 0 : index
      %405 = vector.load %arg10[%c0_122, %c0_123] : memref<8x128xf32, #tpu.memory_space<vmem>>, vector<8x128xf32>
      tpu.vector_store %arg10[%c0_122, %c0_123], %404 {strides = array<i32>} : memref<8x128xf32, #tpu.memory_space<vmem>>, vector<8x128xf32>,
    } else {
    }
    %c0 = arith.constant 0 : index
    %c0_1 = arith.constant 0 : index
    %3 = vector.load %arg4[%c0, %c0_1] : memref<128x512xf32, #tpu.memory_space<vmem>>, vector<128x512xf32>
    %c0_2 = arith.constant 0 : index
    %c0_3 = arith.constant 0 : index
    %4 = vector.load %arg5[%c0_2, %c0_3] : memref<128x128xf32, #tpu.memory_space<vmem>>, vector<128x128xf32>
    %c0_4 = arith.constant 0 : index
    %c0_5 = arith.constant 0 : index
    %5 = vector.load %arg6[%c0_4, %c0_5] : memref<1x128xf32, #tpu.memory_space<vmem>>, vector<1x128xf32>
    %c0_6 = arith.constant 0 : index
    %c0_7 = arith.constant 0 : index
    %6 = vector.load %arg9[%c0_6, %c0_7] : memref<8x128xf32, #tpu.memory_space<vmem>>, vector<8x128xf32>
    %c0_8 = arith.constant 0 : index
    %c0_9 = arith.constant 0 : index
    %7 = vector.load %arg10[%c0_8, %c0_9] : memref<8x128xf32, #tpu.memory_space<vmem>>, vector<8x128xf32>
    %c0_i32_10 = arith.constant 0 : i32
    %8 = arith.index_cast %c0_i32_10 : i32 to index
    %c0_11 = arith.constant 0 : index
    %c0_12 = arith.constant 0 : index
    %9 = vector.load %arg2[%8, %c0_11, %c0_12] : memref<8x8x512xf32, #tpu.memory_space<vmem>>, vector<1x8x512xf32>
    %10 = vector.shape_cast %9 : vector<1x8x512xf32> to vector<8x512xf32>
    %11 = arith.index_cast %c0_i32_10 : i32 to index
    %c0_13 = arith.constant 0 : index
    %c0_14 = arith.constant 0 : index
    %12 = vector.load %arg3[%11, %c0_13, %c0_14] : memref<8x8x1xf32, #tpu.memory_space<vmem>>, vector<1x8x1xf32>
    %13 = vector.shape_cast %12 : vector<1x8x1xf32> to vector<8x1xf32>
    %cst = arith.constant dense<0.000000e+00> : vector<8x128xf32>
    %14 = tpu.matmul %7, %4, %cst {dimension_numbers = #tpu.dot_dimension_numbers<[1], [0], [0], [1], [0, 0, 1, 1], [], []>} : vector<8x128xf32>, vector<128x128xf32>, vector<8x128xf32> -> vector<8x128xf32>
    %15 = vector.broadcast %5 : vector<1x128xf32> to vector<8x128xf32>
    %16 = arith.addf %14, %15 : vector<8x128xf32>
    %17 = math.tanh %16 : vector<8x128xf32>
    %18 = arith.subf %7, %17 : vector<8x128xf32>
    %19 = vector.broadcast %13 : vector<8x1xf32> to vector<8x128xf32>
    %20 = arith.mulf %19, %17 : vector<8x128xf32>
    %21 = arith.addf %18, %20 : vector<8x128xf32>
    %cst_15 = arith.constant dense<0.000000e+00> : vector<8x512xf32>
    %22 = tpu.matmul %6, %3, %cst_15 {dimension_numbers = #tpu.dot_dimension_numbers<[1], [0], [0], [1], [0, 0, 1, 1], [], []>} : vector<8x128xf32>, vector<128x512xf32>, vector<8x512xf32> -> vector<8x512xf32>
    %23 = arith.addf %10, %22 : vector<8x512xf32>
    %24 = vector.extract_strided_slice %23 {offsets = [0, 0], sizes = [8, 128], strides = [1, 1]} : vector<8x512xf32> to vector<8x128xf32>
    %25 = arith.negf %24 : vector<8x128xf32>
    %26 = math.exp %25 : vector<8x128xf32>
    %cst_16 = arith.constant 1.000000e+00 : f32
    %27 = vector.broadcast %cst_16 : f32 to vector<8x128xf32>
    %28 = arith.addf %27, %26 : vector<8x128xf32>
    %29 = arith.divf %27, %28 : vector<8x128xf32>
    %30 = vector.extract_strided_slice %23 {offsets = [0, 128], sizes = [8, 128], strides = [1, 1]} : vector<8x512xf32> to vector<8x128xf32>
    %31 = arith.negf %30 : vector<8x128xf32>
    %32 = math.exp %31 : vector<8x128xf32>
    %cst_17 = arith.constant 1.000000e+00 : f32
    %33 = vector.broadcast %cst_17 : f32 to vector<8x128xf32>
    %34 = arith.addf %33, %32 : vector<8x128xf32>
    %35 = arith.divf %33, %34 : vector<8x128xf32>
    %36 = vector.extract_strided_slice %23 {offsets = [0, 256], sizes = [8, 128], strides = [1, 1]} : vector<8x512xf32> to vector<8x128xf32>
    %37 = arith.negf %36 : vector<8x128xf32>
    %38 = math.exp %37 : vector<8x128xf32>
    %cst_18 = arith.constant 1.000000e+00 : f32
    %39 = vector.broadcast %cst_18 : f32 to vector<8x128xf32>
    %40 = arith.addf %39, %38 : vector<8x128xf32>
    %41 = arith.divf %39, %40 : vector<8x128xf32>
    %42 = vector.extract_strided_slice %23 {offsets = [0, 384], sizes = [8, 128], strides = [1, 1]} : vector<8x512xf32> to vector<8x128xf32>
    %43 = math.tanh %42 : vector<8x128xf32>
    %44 = arith.mulf %35, %21 : vector<8x128xf32>
    %45 = arith.mulf %29, %43 : vector<8x128xf32>
    %46 = arith.addf %44, %45 : vector<8x128xf32>
    %47 = math.tanh %46 : vector<8x128xf32>
    %48 = arith.mulf %41, %47 : vector<8x128xf32>
    %49 = arith.index_cast %c0_i32_10 : i32 to index
    %c0_19 = arith.constant 0 : index
    %c0_20 = arith.constant 0 : index
    %50 = vector.load %arg7[%49, %c0_19, %c0_20] : memref<8x8x128xf32, #tpu.memory_space<vmem>>, vector<1x8x128xf32>
    %51 = vector.shape_cast %50 : vector<1x8x128xf32> to vector<8x128xf32>
    %52 = vector.shape_cast %48 : vector<8x128xf32> to vector<1x8x128xf32>
    tpu.vector_store %arg7[%49, %c0_19, %c0_20], %52 {strides = array<i32>} : memref<8x8x128xf32, #tpu.memory_space<vmem>>, vector<1x8x128xf32>,
    %53 = arith.index_cast %c0_i32_10 : i32 to index
    %c0_21 = arith.constant 0 : index
    %c0_22 = arith.constant 0 : index
    %54 = vector.load %arg8[%53, %c0_21, %c0_22] : memref<8x8x128xf32, #tpu.memory_space<vmem>>, vector<1x8x128xf32>
    %55 = vector.shape_cast %54 : vector<1x8x128xf32> to vector<8x128xf32>
    %56 = vector.shape_cast %46 : vector<8x128xf32> to vector<1x8x128xf32>
    tpu.vector_store %arg8[%53, %c0_21, %c0_22], %56 {strides = array<i32>} : memref<8x8x128xf32, #tpu.memory_space<vmem>>, vector<1x8x128xf32>,
    %c1_i32 = arith.constant 1 : i32
    %57 = arith.index_cast %c1_i32 : i32 to index
    %c0_23 = arith.constant 0 : index
    %c0_24 = arith.constant 0 : index
    %58 = vector.load %arg2[%57, %c0_23, %c0_24] : memref<8x8x512xf32, #tpu.memory_space<vmem>>, vector<1x8x512xf32>
    %59 = vector.shape_cast %58 : vector<1x8x512xf32> to vector<8x512xf32>
    %60 = arith.index_cast %c1_i32 : i32 to index
    %c0_25 = arith.constant 0 : index
    %c0_26 = arith.constant 0 : index
    %61 = vector.load %arg3[%60, %c0_25, %c0_26] : memref<8x8x1xf32, #tpu.memory_space<vmem>>, vector<1x8x1xf32>
    %62 = vector.shape_cast %61 : vector<1x8x1xf32> to vector<8x1xf32>
    %cst_27 = arith.constant dense<0.000000e+00> : vector<8x128xf32>
    %63 = tpu.matmul %46, %4, %cst_27 {dimension_numbers = #tpu.dot_dimension_numbers<[1], [0], [0], [1], [0, 0, 1, 1], [], []>} : vector<8x128xf32>, vector<128x128xf32>, vector<8x128xf32> -> vector<8x128xf32>
    %64 = vector.broadcast %5 : vector<1x128xf32> to vector<8x128xf32>
    %65 = arith.addf %63, %64 : vector<8x128xf32>
    %66 = math.tanh %65 : vector<8x128xf32>
    %67 = arith.subf %46, %66 : vector<8x128xf32>
    %68 = vector.broadcast %62 : vector<8x1xf32> to vector<8x128xf32>
    %69 = arith.mulf %68, %66 : vector<8x128xf32>
    %70 = arith.addf %67, %69 : vector<8x128xf32>
    %cst_28 = arith.constant dense<0.000000e+00> : vector<8x512xf32>
    %71 = tpu.matmul %48, %3, %cst_28 {dimension_numbers = #tpu.dot_dimension_numbers<[1], [0], [0], [1], [0, 0, 1, 1], [], []>} : vector<8x128xf32>, vector<128x512xf32>, vector<8x512xf32> -> vector<8x512xf32>
    %72 = arith.addf %59, %71 : vector<8x512xf32>
    %73 = vector.extract_strided_slice %72 {offsets = [0, 0], sizes = [8, 128], strides = [1, 1]} : vector<8x512xf32> to vector<8x128xf32>
    %74 = arith.negf %73 : vector<8x128xf32>
    %75 = math.exp %74 : vector<8x128xf32>
    %cst_29 = arith.constant 1.000000e+00 : f32
    %76 = vector.broadcast %cst_29 : f32 to vector<8x128xf32>
    %77 = arith.addf %76, %75 : vector<8x128xf32>
    %78 = arith.divf %76, %77 : vector<8x128xf32>
    %79 = vector.extract_strided_slice %72 {offsets = [0, 128], sizes = [8, 128], strides = [1, 1]} : vector<8x512xf32> to vector<8x128xf32>
    %80 = arith.negf %79 : vector<8x128xf32>
    %81 = math.exp %80 : vector<8x128xf32>
    %cst_30 = arith.constant 1.000000e+00 : f32
    %82 = vector.broadcast %cst_30 : f32 to vector<8x128xf32>
    %83 = arith.addf %82, %81 : vector<8x128xf32>
    %84 = arith.divf %82, %83 : vector<8x128xf32>
    %85 = vector.extract_strided_slice %72 {offsets = [0, 256], sizes = [8, 128], strides = [1, 1]} : vector<8x512xf32> to vector<8x128xf32>
    %86 = arith.negf %85 : vector<8x128xf32>
    %87 = math.exp %86 : vector<8x128xf32>
    %cst_31 = arith.constant 1.000000e+00 : f32
    %88 = vector.broadcast %cst_31 : f32 to vector<8x128xf32>
    %89 = arith.addf %88, %87 : vector<8x128xf32>
    %90 = arith.divf %88, %89 : vector<8x128xf32>
    %91 = vector.extract_strided_slice %72 {offsets = [0, 384], sizes = [8, 128], strides = [1, 1]} : vector<8x512xf32> to vector<8x128xf32>
    %92 = math.tanh %91 : vector<8x128xf32>
    %93 = arith.mulf %84, %70 : vector<8x128xf32>
    %94 = arith.mulf %78, %92 : vector<8x128xf32>
    %95 = arith.addf %93, %94 : vector<8x128xf32>
    %96 = math.tanh %95 : vector<8x128xf32>
    %97 = arith.mulf %90, %96 : vector<8x128xf32>
    %98 = arith.index_cast %c1_i32 : i32 to index
    %c0_32 = arith.constant 0 : index
    %c0_33 = arith.constant 0 : index
    %99 = vector.load %arg7[%98, %c0_32, %c0_33] : memref<8x8x128xf32, #tpu.memory_space<vmem>>, vector<1x8x128xf32>
    %100 = vector.shape_cast %99 : vector<1x8x128xf32> to vector<8x128xf32>
    %101 = vector.shape_cast %97 : vector<8x128xf32> to vector<1x8x128xf32>
    tpu.vector_store %arg7[%98, %c0_32, %c0_33], %101 {strides = array<i32>} : memref<8x8x128xf32, #tpu.memory_space<vmem>>, vector<1x8x128xf32>,
    %102 = arith.index_cast %c1_i32 : i32 to index
    %c0_34 = arith.constant 0 : index
    %c0_35 = arith.constant 0 : index
    %103 = vector.load %arg8[%102, %c0_34, %c0_35] : memref<8x8x128xf32, #tpu.memory_space<vmem>>, vector<1x8x128xf32>
    %104 = vector.shape_cast %103 : vector<1x8x128xf32> to vector<8x128xf32>
    %105 = vector.shape_cast %95 : vector<8x128xf32> to vector<1x8x128xf32>
    tpu.vector_store %arg8[%102, %c0_34, %c0_35], %105 {strides = array<i32>} : memref<8x8x128xf32, #tpu.memory_space<vmem>>, vector<1x8x128xf32>,
    %c2_i32 = arith.constant 2 : i32
    %106 = arith.index_cast %c2_i32 : i32 to index
    %c0_36 = arith.constant 0 : index
    %c0_37 = arith.constant 0 : index
    %107 = vector.load %arg2[%106, %c0_36, %c0_37] : memref<8x8x512xf32, #tpu.memory_space<vmem>>, vector<1x8x512xf32>
    %108 = vector.shape_cast %107 : vector<1x8x512xf32> to vector<8x512xf32>
    %109 = arith.index_cast %c2_i32 : i32 to index
    %c0_38 = arith.constant 0 : index
    %c0_39 = arith.constant 0 : index
    %110 = vector.load %arg3[%109, %c0_38, %c0_39] : memref<8x8x1xf32, #tpu.memory_space<vmem>>, vector<1x8x1xf32>
    %111 = vector.shape_cast %110 : vector<1x8x1xf32> to vector<8x1xf32>
    %cst_40 = arith.constant dense<0.000000e+00> : vector<8x128xf32>
    %112 = tpu.matmul %95, %4, %cst_40 {dimension_numbers = #tpu.dot_dimension_numbers<[1], [0], [0], [1], [0, 0, 1, 1], [], []>} : vector<8x128xf32>, vector<128x128xf32>, vector<8x128xf32> -> vector<8x128xf32>
    %113 = vector.broadcast %5 : vector<1x128xf32> to vector<8x128xf32>
    %114 = arith.addf %112, %113 : vector<8x128xf32>
    %115 = math.tanh %114 : vector<8x128xf32>
    %116 = arith.subf %95, %115 : vector<8x128xf32>
    %117 = vector.broadcast %111 : vector<8x1xf32> to vector<8x128xf32>
    %118 = arith.mulf %117, %115 : vector<8x128xf32>
    %119 = arith.addf %116, %118 : vector<8x128xf32>
    %cst_41 = arith.constant dense<0.000000e+00> : vector<8x512xf32>
    %120 = tpu.matmul %97, %3, %cst_41 {dimension_numbers = #tpu.dot_dimension_numbers<[1], [0], [0], [1], [0, 0, 1, 1], [], []>} : vector<8x128xf32>, vector<128x512xf32>, vector<8x512xf32> -> vector<8x512xf32>
    %121 = arith.addf %108, %120 : vector<8x512xf32>
    %122 = vector.extract_strided_slice %121 {offsets = [0, 0], sizes = [8, 128], strides = [1, 1]} : vector<8x512xf32> to vector<8x128xf32>
    %123 = arith.negf %122 : vector<8x128xf32>
    %124 = math.exp %123 : vector<8x128xf32>
    %cst_42 = arith.constant 1.000000e+00 : f32
    %125 = vector.broadcast %cst_42 : f32 to vector<8x128xf32>
    %126 = arith.addf %125, %124 : vector<8x128xf32>
    %127 = arith.divf %125, %126 : vector<8x128xf32>
    %128 = vector.extract_strided_slice %121 {offsets = [0, 128], sizes = [8, 128], strides = [1, 1]} : vector<8x512xf32> to vector<8x128xf32>
    %129 = arith.negf %128 : vector<8x128xf32>
    %130 = math.exp %129 : vector<8x128xf32>
    %cst_43 = arith.constant 1.000000e+00 : f32
    %131 = vector.broadcast %cst_43 : f32 to vector<8x128xf32>
    %132 = arith.addf %131, %130 : vector<8x128xf32>
    %133 = arith.divf %131, %132 : vector<8x128xf32>
    %134 = vector.extract_strided_slice %121 {offsets = [0, 256], sizes = [8, 128], strides = [1, 1]} : vector<8x512xf32> to vector<8x128xf32>
    %135 = arith.negf %134 : vector<8x128xf32>
    %136 = math.exp %135 : vector<8x128xf32>
    %cst_44 = arith.constant 1.000000e+00 : f32
    %137 = vector.broadcast %cst_44 : f32 to vector<8x128xf32>
    %138 = arith.addf %137, %136 : vector<8x128xf32>
    %139 = arith.divf %137, %138 : vector<8x128xf32>
    %140 = vector.extract_strided_slice %121 {offsets = [0, 384], sizes = [8, 128], strides = [1, 1]} : vector<8x512xf32> to vector<8x128xf32>
    %141 = math.tanh %140 : vector<8x128xf32>
    %142 = arith.mulf %133, %119 : vector<8x128xf32>
    %143 = arith.mulf %127, %141 : vector<8x128xf32>
    %144 = arith.addf %142, %143 : vector<8x128xf32>
    %145 = math.tanh %144 : vector<8x128xf32>
    %146 = arith.mulf %139, %145 : vector<8x128xf32>
    %147 = arith.index_cast %c2_i32 : i32 to index
    %c0_45 = arith.constant 0 : index
    %c0_46 = arith.constant 0 : index
    %148 = vector.load %arg7[%147, %c0_45, %c0_46] : memref<8x8x128xf32, #tpu.memory_space<vmem>>, vector<1x8x128xf32>
    %149 = vector.shape_cast %148 : vector<1x8x128xf32> to vector<8x128xf32>
    %150 = vector.shape_cast %146 : vector<8x128xf32> to vector<1x8x128xf32>
    tpu.vector_store %arg7[%147, %c0_45, %c0_46], %150 {strides = array<i32>} : memref<8x8x128xf32, #tpu.memory_space<vmem>>, vector<1x8x128xf32>,
    %151 = arith.index_cast %c2_i32 : i32 to index
    %c0_47 = arith.constant 0 : index
    %c0_48 = arith.constant 0 : index
    %152 = vector.load %arg8[%151, %c0_47, %c0_48] : memref<8x8x128xf32, #tpu.memory_space<vmem>>, vector<1x8x128xf32>
    %153 = vector.shape_cast %152 : vector<1x8x128xf32> to vector<8x128xf32>
    %154 = vector.shape_cast %144 : vector<8x128xf32> to vector<1x8x128xf32>
    tpu.vector_store %arg8[%151, %c0_47, %c0_48], %154 {strides = array<i32>} : memref<8x8x128xf32, #tpu.memory_space<vmem>>, vector<1x8x128xf32>,
    %c3_i32 = arith.constant 3 : i32
    %155 = arith.index_cast %c3_i32 : i32 to index
    %c0_49 = arith.constant 0 : index
    %c0_50 = arith.constant 0 : index
    %156 = vector.load %arg2[%155, %c0_49, %c0_50] : memref<8x8x512xf32, #tpu.memory_space<vmem>>, vector<1x8x512xf32>
    %157 = vector.shape_cast %156 : vector<1x8x512xf32> to vector<8x512xf32>
    %158 = arith.index_cast %c3_i32 : i32 to index
    %c0_51 = arith.constant 0 : index
    %c0_52 = arith.constant 0 : index
    %159 = vector.load %arg3[%158, %c0_51, %c0_52] : memref<8x8x1xf32, #tpu.memory_space<vmem>>, vector<1x8x1xf32>
    %160 = vector.shape_cast %159 : vector<1x8x1xf32> to vector<8x1xf32>
    %cst_53 = arith.constant dense<0.000000e+00> : vector<8x128xf32>
    %161 = tpu.matmul %144, %4, %cst_53 {dimension_numbers = #tpu.dot_dimension_numbers<[1], [0], [0], [1], [0, 0, 1, 1], [], []>} : vector<8x128xf32>, vector<128x128xf32>, vector<8x128xf32> -> vector<8x128xf32>
    %162 = vector.broadcast %5 : vector<1x128xf32> to vector<8x128xf32>
    %163 = arith.addf %161, %162 : vector<8x128xf32>
    %164 = math.tanh %163 : vector<8x128xf32>
    %165 = arith.subf %144, %164 : vector<8x128xf32>
    %166 = vector.broadcast %160 : vector<8x1xf32> to vector<8x128xf32>
    %167 = arith.mulf %166, %164 : vector<8x128xf32>
    %168 = arith.addf %165, %167 : vector<8x128xf32>
    %cst_54 = arith.constant dense<0.000000e+00> : vector<8x512xf32>
    %169 = tpu.matmul %146, %3, %cst_54 {dimension_numbers = #tpu.dot_dimension_numbers<[1], [0], [0], [1], [0, 0, 1, 1], [], []>} : vector<8x128xf32>, vector<128x512xf32>, vector<8x512xf32> -> vector<8x512xf32>
    %170 = arith.addf %157, %169 : vector<8x512xf32>
    %171 = vector.extract_strided_slice %170 {offsets = [0, 0], sizes = [8, 128], strides = [1, 1]} : vector<8x512xf32> to vector<8x128xf32>
    %172 = arith.negf %171 : vector<8x128xf32>
    %173 = math.exp %172 : vector<8x128xf32>
    %cst_55 = arith.constant 1.000000e+00 : f32
    %174 = vector.broadcast %cst_55 : f32 to vector<8x128xf32>
    %175 = arith.addf %174, %173 : vector<8x128xf32>
    %176 = arith.divf %174, %175 : vector<8x128xf32>
    %177 = vector.extract_strided_slice %170 {offsets = [0, 128], sizes = [8, 128], strides = [1, 1]} : vector<8x512xf32> to vector<8x128xf32>
    %178 = arith.negf %177 : vector<8x128xf32>
    %179 = math.exp %178 : vector<8x128xf32>
    %cst_56 = arith.constant 1.000000e+00 : f32
    %180 = vector.broadcast %cst_56 : f32 to vector<8x128xf32>
    %181 = arith.addf %180, %179 : vector<8x128xf32>
    %182 = arith.divf %180, %181 : vector<8x128xf32>
    %183 = vector.extract_strided_slice %170 {offsets = [0, 256], sizes = [8, 128], strides = [1, 1]} : vector<8x512xf32> to vector<8x128xf32>
    %184 = arith.negf %183 : vector<8x128xf32>
    %185 = math.exp %184 : vector<8x128xf32>
    %cst_57 = arith.constant 1.000000e+00 : f32
    %186 = vector.broadcast %cst_57 : f32 to vector<8x128xf32>
    %187 = arith.addf %186, %185 : vector<8x128xf32>
    %188 = arith.divf %186, %187 : vector<8x128xf32>
    %189 = vector.extract_strided_slice %170 {offsets = [0, 384], sizes = [8, 128], strides = [1, 1]} : vector<8x512xf32> to vector<8x128xf32>
    %190 = math.tanh %189 : vector<8x128xf32>
    %191 = arith.mulf %182, %168 : vector<8x128xf32>
    %192 = arith.mulf %176, %190 : vector<8x128xf32>
    %193 = arith.addf %191, %192 : vector<8x128xf32>
    %194 = math.tanh %193 : vector<8x128xf32>
    %195 = arith.mulf %188, %194 : vector<8x128xf32>
    %196 = arith.index_cast %c3_i32 : i32 to index
    %c0_58 = arith.constant 0 : index
    %c0_59 = arith.constant 0 : index
    %197 = vector.load %arg7[%196, %c0_58, %c0_59] : memref<8x8x128xf32, #tpu.memory_space<vmem>>, vector<1x8x128xf32>
    %198 = vector.shape_cast %197 : vector<1x8x128xf32> to vector<8x128xf32>
    %199 = vector.shape_cast %195 : vector<8x128xf32> to vector<1x8x128xf32>
    tpu.vector_store %arg7[%196, %c0_58, %c0_59], %199 {strides = array<i32>} : memref<8x8x128xf32, #tpu.memory_space<vmem>>, vector<1x8x128xf32>,
    %200 = arith.index_cast %c3_i32 : i32 to index
    %c0_60 = arith.constant 0 : index
    %c0_61 = arith.constant 0 : index
    %201 = vector.load %arg8[%200, %c0_60, %c0_61] : memref<8x8x128xf32, #tpu.memory_space<vmem>>, vector<1x8x128xf32>
    %202 = vector.shape_cast %201 : vector<1x8x128xf32> to vector<8x128xf32>
    %203 = vector.shape_cast %193 : vector<8x128xf32> to vector<1x8x128xf32>
    tpu.vector_store %arg8[%200, %c0_60, %c0_61], %203 {strides = array<i32>} : memref<8x8x128xf32, #tpu.memory_space<vmem>>, vector<1x8x128xf32>,
    %c4_i32 = arith.constant 4 : i32
    %204 = arith.index_cast %c4_i32 : i32 to index
    %c0_62 = arith.constant 0 : index
    %c0_63 = arith.constant 0 : index
    %205 = vector.load %arg2[%204, %c0_62, %c0_63] : memref<8x8x512xf32, #tpu.memory_space<vmem>>, vector<1x8x512xf32>
    %206 = vector.shape_cast %205 : vector<1x8x512xf32> to vector<8x512xf32>
    %207 = arith.index_cast %c4_i32 : i32 to index
    %c0_64 = arith.constant 0 : index
    %c0_65 = arith.constant 0 : index
    %208 = vector.load %arg3[%207, %c0_64, %c0_65] : memref<8x8x1xf32, #tpu.memory_space<vmem>>, vector<1x8x1xf32>
    %209 = vector.shape_cast %208 : vector<1x8x1xf32> to vector<8x1xf32>
    %cst_66 = arith.constant dense<0.000000e+00> : vector<8x128xf32>
    %210 = tpu.matmul %193, %4, %cst_66 {dimension_numbers = #tpu.dot_dimension_numbers<[1], [0], [0], [1], [0, 0, 1, 1], [], []>} : vector<8x128xf32>, vector<128x128xf32>, vector<8x128xf32> -> vector<8x128xf32>
    %211 = vector.broadcast %5 : vector<1x128xf32> to vector<8x128xf32>
    %212 = arith.addf %210, %211 : vector<8x128xf32>
    %213 = math.tanh %212 : vector<8x128xf32>
    %214 = arith.subf %193, %213 : vector<8x128xf32>
    %215 = vector.broadcast %209 : vector<8x1xf32> to vector<8x128xf32>
    %216 = arith.mulf %215, %213 : vector<8x128xf32>
    %217 = arith.addf %214, %216 : vector<8x128xf32>
    %cst_67 = arith.constant dense<0.000000e+00> : vector<8x512xf32>
    %218 = tpu.matmul %195, %3, %cst_67 {dimension_numbers = #tpu.dot_dimension_numbers<[1], [0], [0], [1], [0, 0, 1, 1], [], []>} : vector<8x128xf32>, vector<128x512xf32>, vector<8x512xf32> -> vector<8x512xf32>
    %219 = arith.addf %206, %218 : vector<8x512xf32>
    %220 = vector.extract_strided_slice %219 {offsets = [0, 0], sizes = [8, 128], strides = [1, 1]} : vector<8x512xf32> to vector<8x128xf32>
    %221 = arith.negf %220 : vector<8x128xf32>
    %222 = math.exp %221 : vector<8x128xf32>
    %cst_68 = arith.constant 1.000000e+00 : f32
    %223 = vector.broadcast %cst_68 : f32 to vector<8x128xf32>
    %224 = arith.addf %223, %222 : vector<8x128xf32>
    %225 = arith.divf %223, %224 : vector<8x128xf32>
    %226 = vector.extract_strided_slice %219 {offsets = [0, 128], sizes = [8, 128], strides = [1, 1]} : vector<8x512xf32> to vector<8x128xf32>
    %227 = arith.negf %226 : vector<8x128xf32>
    %228 = math.exp %227 : vector<8x128xf32>
    %cst_69 = arith.constant 1.000000e+00 : f32
    %229 = vector.broadcast %cst_69 : f32 to vector<8x128xf32>
    %230 = arith.addf %229, %228 : vector<8x128xf32>
    %231 = arith.divf %229, %230 : vector<8x128xf32>
    %232 = vector.extract_strided_slice %219 {offsets = [0, 256], sizes = [8, 128], strides = [1, 1]} : vector<8x512xf32> to vector<8x128xf32>
    %233 = arith.negf %232 : vector<8x128xf32>
    %234 = math.exp %233 : vector<8x128xf32>
    %cst_70 = arith.constant 1.000000e+00 : f32
    %235 = vector.broadcast %cst_70 : f32 to vector<8x128xf32>
    %236 = arith.addf %235, %234 : vector<8x128xf32>
    %237 = arith.divf %235, %236 : vector<8x128xf32>
    %238 = vector.extract_strided_slice %219 {offsets = [0, 384], sizes = [8, 128], strides = [1, 1]} : vector<8x512xf32> to vector<8x128xf32>
    %239 = math.tanh %238 : vector<8x128xf32>
    %240 = arith.mulf %231, %217 : vector<8x128xf32>
    %241 = arith.mulf %225, %239 : vector<8x128xf32>
    %242 = arith.addf %240, %241 : vector<8x128xf32>
    %243 = math.tanh %242 : vector<8x128xf32>
    %244 = arith.mulf %237, %243 : vector<8x128xf32>
    %245 = arith.index_cast %c4_i32 : i32 to index
    %c0_71 = arith.constant 0 : index
    %c0_72 = arith.constant 0 : index
    %246 = vector.load %arg7[%245, %c0_71, %c0_72] : memref<8x8x128xf32, #tpu.memory_space<vmem>>, vector<1x8x128xf32>
    %247 = vector.shape_cast %246 : vector<1x8x128xf32> to vector<8x128xf32>
    %248 = vector.shape_cast %244 : vector<8x128xf32> to vector<1x8x128xf32>
    tpu.vector_store %arg7[%245, %c0_71, %c0_72], %248 {strides = array<i32>} : memref<8x8x128xf32, #tpu.memory_space<vmem>>, vector<1x8x128xf32>,
    %249 = arith.index_cast %c4_i32 : i32 to index
    %c0_73 = arith.constant 0 : index
    %c0_74 = arith.constant 0 : index
    %250 = vector.load %arg8[%249, %c0_73, %c0_74] : memref<8x8x128xf32, #tpu.memory_space<vmem>>, vector<1x8x128xf32>
    %251 = vector.shape_cast %250 : vector<1x8x128xf32> to vector<8x128xf32>
    %252 = vector.shape_cast %242 : vector<8x128xf32> to vector<1x8x128xf32>
    tpu.vector_store %arg8[%249, %c0_73, %c0_74], %252 {strides = array<i32>} : memref<8x8x128xf32, #tpu.memory_space<vmem>>, vector<1x8x128xf32>,
    %c5_i32 = arith.constant 5 : i32
    %253 = arith.index_cast %c5_i32 : i32 to index
    %c0_75 = arith.constant 0 : index
    %c0_76 = arith.constant 0 : index
    %254 = vector.load %arg2[%253, %c0_75, %c0_76] : memref<8x8x512xf32, #tpu.memory_space<vmem>>, vector<1x8x512xf32>
    %255 = vector.shape_cast %254 : vector<1x8x512xf32> to vector<8x512xf32>
    %256 = arith.index_cast %c5_i32 : i32 to index
    %c0_77 = arith.constant 0 : index
    %c0_78 = arith.constant 0 : index
    %257 = vector.load %arg3[%256, %c0_77, %c0_78] : memref<8x8x1xf32, #tpu.memory_space<vmem>>, vector<1x8x1xf32>
    %258 = vector.shape_cast %257 : vector<1x8x1xf32> to vector<8x1xf32>
    %cst_79 = arith.constant dense<0.000000e+00> : vector<8x128xf32>
    %259 = tpu.matmul %242, %4, %cst_79 {dimension_numbers = #tpu.dot_dimension_numbers<[1], [0], [0], [1], [0, 0, 1, 1], [], []>} : vector<8x128xf32>, vector<128x128xf32>, vector<8x128xf32> -> vector<8x128xf32>
    %260 = vector.broadcast %5 : vector<1x128xf32> to vector<8x128xf32>
    %261 = arith.addf %259, %260 : vector<8x128xf32>
    %262 = math.tanh %261 : vector<8x128xf32>
    %263 = arith.subf %242, %262 : vector<8x128xf32>
    %264 = vector.broadcast %258 : vector<8x1xf32> to vector<8x128xf32>
    %265 = arith.mulf %264, %262 : vector<8x128xf32>
    %266 = arith.addf %263, %265 : vector<8x128xf32>
    %cst_80 = arith.constant dense<0.000000e+00> : vector<8x512xf32>
    %267 = tpu.matmul %244, %3, %cst_80 {dimension_numbers = #tpu.dot_dimension_numbers<[1], [0], [0], [1], [0, 0, 1, 1], [], []>} : vector<8x128xf32>, vector<128x512xf32>, vector<8x512xf32> -> vector<8x512xf32>
    %268 = arith.addf %255, %267 : vector<8x512xf32>
    %269 = vector.extract_strided_slice %268 {offsets = [0, 0], sizes = [8, 128], strides = [1, 1]} : vector<8x512xf32> to vector<8x128xf32>
    %270 = arith.negf %269 : vector<8x128xf32>
    %271 = math.exp %270 : vector<8x128xf32>
    %cst_81 = arith.constant 1.000000e+00 : f32
    %272 = vector.broadcast %cst_81 : f32 to vector<8x128xf32>
    %273 = arith.addf %272, %271 : vector<8x128xf32>
    %274 = arith.divf %272, %273 : vector<8x128xf32>
    %275 = vector.extract_strided_slice %268 {offsets = [0, 128], sizes = [8, 128], strides = [1, 1]} : vector<8x512xf32> to vector<8x128xf32>
    %276 = arith.negf %275 : vector<8x128xf32>
    %277 = math.exp %276 : vector<8x128xf32>
    %cst_82 = arith.constant 1.000000e+00 : f32
    %278 = vector.broadcast %cst_82 : f32 to vector<8x128xf32>
    %279 = arith.addf %278, %277 : vector<8x128xf32>
    %280 = arith.divf %278, %279 : vector<8x128xf32>
    %281 = vector.extract_strided_slice %268 {offsets = [0, 256], sizes = [8, 128], strides = [1, 1]} : vector<8x512xf32> to vector<8x128xf32>
    %282 = arith.negf %281 : vector<8x128xf32>
    %283 = math.exp %282 : vector<8x128xf32>
    %cst_83 = arith.constant 1.000000e+00 : f32
    %284 = vector.broadcast %cst_83 : f32 to vector<8x128xf32>
    %285 = arith.addf %284, %283 : vector<8x128xf32>
    %286 = arith.divf %284, %285 : vector<8x128xf32>
    %287 = vector.extract_strided_slice %268 {offsets = [0, 384], sizes = [8, 128], strides = [1, 1]} : vector<8x512xf32> to vector<8x128xf32>
    %288 = math.tanh %287 : vector<8x128xf32>
    %289 = arith.mulf %280, %266 : vector<8x128xf32>
    %290 = arith.mulf %274, %288 : vector<8x128xf32>
    %291 = arith.addf %289, %290 : vector<8x128xf32>
    %292 = math.tanh %291 : vector<8x128xf32>
    %293 = arith.mulf %286, %292 : vector<8x128xf32>
    %294 = arith.index_cast %c5_i32 : i32 to index
    %c0_84 = arith.constant 0 : index
    %c0_85 = arith.constant 0 : index
    %295 = vector.load %arg7[%294, %c0_84, %c0_85] : memref<8x8x128xf32, #tpu.memory_space<vmem>>, vector<1x8x128xf32>
    %296 = vector.shape_cast %295 : vector<1x8x128xf32> to vector<8x128xf32>
    %297 = vector.shape_cast %293 : vector<8x128xf32> to vector<1x8x128xf32>
    tpu.vector_store %arg7[%294, %c0_84, %c0_85], %297 {strides = array<i32>} : memref<8x8x128xf32, #tpu.memory_space<vmem>>, vector<1x8x128xf32>,
    %298 = arith.index_cast %c5_i32 : i32 to index
    %c0_86 = arith.constant 0 : index
    %c0_87 = arith.constant 0 : index
    %299 = vector.load %arg8[%298, %c0_86, %c0_87] : memref<8x8x128xf32, #tpu.memory_space<vmem>>, vector<1x8x128xf32>
    %300 = vector.shape_cast %299 : vector<1x8x128xf32> to vector<8x128xf32>
    %301 = vector.shape_cast %291 : vector<8x128xf32> to vector<1x8x128xf32>
    tpu.vector_store %arg8[%298, %c0_86, %c0_87], %301 {strides = array<i32>} : memref<8x8x128xf32, #tpu.memory_space<vmem>>, vector<1x8x128xf32>,
    %c6_i32 = arith.constant 6 : i32
    %302 = arith.index_cast %c6_i32 : i32 to index
    %c0_88 = arith.constant 0 : index
    %c0_89 = arith.constant 0 : index
    %303 = vector.load %arg2[%302, %c0_88, %c0_89] : memref<8x8x512xf32, #tpu.memory_space<vmem>>, vector<1x8x512xf32>
    %304 = vector.shape_cast %303 : vector<1x8x512xf32> to vector<8x512xf32>
    %305 = arith.index_cast %c6_i32 : i32 to index
    %c0_90 = arith.constant 0 : index
    %c0_91 = arith.constant 0 : index
    %306 = vector.load %arg3[%305, %c0_90, %c0_91] : memref<8x8x1xf32, #tpu.memory_space<vmem>>, vector<1x8x1xf32>
    %307 = vector.shape_cast %306 : vector<1x8x1xf32> to vector<8x1xf32>
    %cst_92 = arith.constant dense<0.000000e+00> : vector<8x128xf32>
    %308 = tpu.matmul %291, %4, %cst_92 {dimension_numbers = #tpu.dot_dimension_numbers<[1], [0], [0], [1], [0, 0, 1, 1], [], []>} : vector<8x128xf32>, vector<128x128xf32>, vector<8x128xf32> -> vector<8x128xf32>
    %309 = vector.broadcast %5 : vector<1x128xf32> to vector<8x128xf32>
    %310 = arith.addf %308, %309 : vector<8x128xf32>
    %311 = math.tanh %310 : vector<8x128xf32>
    %312 = arith.subf %291, %311 : vector<8x128xf32>
    %313 = vector.broadcast %307 : vector<8x1xf32> to vector<8x128xf32>
    %314 = arith.mulf %313, %311 : vector<8x128xf32>
    %315 = arith.addf %312, %314 : vector<8x128xf32>
    %cst_93 = arith.constant dense<0.000000e+00> : vector<8x512xf32>
    %316 = tpu.matmul %293, %3, %cst_93 {dimension_numbers = #tpu.dot_dimension_numbers<[1], [0], [0], [1], [0, 0, 1, 1], [], []>} : vector<8x128xf32>, vector<128x512xf32>, vector<8x512xf32> -> vector<8x512xf32>
    %317 = arith.addf %304, %316 : vector<8x512xf32>
    %318 = vector.extract_strided_slice %317 {offsets = [0, 0], sizes = [8, 128], strides = [1, 1]} : vector<8x512xf32> to vector<8x128xf32>
    %319 = arith.negf %318 : vector<8x128xf32>
    %320 = math.exp %319 : vector<8x128xf32>
    %cst_94 = arith.constant 1.000000e+00 : f32
    %321 = vector.broadcast %cst_94 : f32 to vector<8x128xf32>
    %322 = arith.addf %321, %320 : vector<8x128xf32>
    %323 = arith.divf %321, %322 : vector<8x128xf32>
    %324 = vector.extract_strided_slice %317 {offsets = [0, 128], sizes = [8, 128], strides = [1, 1]} : vector<8x512xf32> to vector<8x128xf32>
    %325 = arith.negf %324 : vector<8x128xf32>
    %326 = math.exp %325 : vector<8x128xf32>
    %cst_95 = arith.constant 1.000000e+00 : f32
    %327 = vector.broadcast %cst_95 : f32 to vector<8x128xf32>
    %328 = arith.addf %327, %326 : vector<8x128xf32>
    %329 = arith.divf %327, %328 : vector<8x128xf32>
    %330 = vector.extract_strided_slice %317 {offsets = [0, 256], sizes = [8, 128], strides = [1, 1]} : vector<8x512xf32> to vector<8x128xf32>
    %331 = arith.negf %330 : vector<8x128xf32>
    %332 = math.exp %331 : vector<8x128xf32>
    %cst_96 = arith.constant 1.000000e+00 : f32
    %333 = vector.broadcast %cst_96 : f32 to vector<8x128xf32>
    %334 = arith.addf %333, %332 : vector<8x128xf32>
    %335 = arith.divf %333, %334 : vector<8x128xf32>
    %336 = vector.extract_strided_slice %317 {offsets = [0, 384], sizes = [8, 128], strides = [1, 1]} : vector<8x512xf32> to vector<8x128xf32>
    %337 = math.tanh %336 : vector<8x128xf32>
    %338 = arith.mulf %329, %315 : vector<8x128xf32>
    %339 = arith.mulf %323, %337 : vector<8x128xf32>
    %340 = arith.addf %338, %339 : vector<8x128xf32>
    %341 = math.tanh %340 : vector<8x128xf32>
    %342 = arith.mulf %335, %341 : vector<8x128xf32>
    %343 = arith.index_cast %c6_i32 : i32 to index
    %c0_97 = arith.constant 0 : index
    %c0_98 = arith.constant 0 : index
    %344 = vector.load %arg7[%343, %c0_97, %c0_98] : memref<8x8x128xf32, #tpu.memory_space<vmem>>, vector<1x8x128xf32>
    %345 = vector.shape_cast %344 : vector<1x8x128xf32> to vector<8x128xf32>
    %346 = vector.shape_cast %342 : vector<8x128xf32> to vector<1x8x128xf32>
    tpu.vector_store %arg7[%343, %c0_97, %c0_98], %346 {strides = array<i32>} : memref<8x8x128xf32, #tpu.memory_space<vmem>>, vector<1x8x128xf32>,
    %347 = arith.index_cast %c6_i32 : i32 to index
    %c0_99 = arith.constant 0 : index
    %c0_100 = arith.constant 0 : index
    %348 = vector.load %arg8[%347, %c0_99, %c0_100] : memref<8x8x128xf32, #tpu.memory_space<vmem>>, vector<1x8x128xf32>
    %349 = vector.shape_cast %348 : vector<1x8x128xf32> to vector<8x128xf32>
    %350 = vector.shape_cast %340 : vector<8x128xf32> to vector<1x8x128xf32>
    tpu.vector_store %arg8[%347, %c0_99, %c0_100], %350 {strides = array<i32>} : memref<8x8x128xf32, #tpu.memory_space<vmem>>, vector<1x8x128xf32>,
    %c7_i32 = arith.constant 7 : i32
    %351 = arith.index_cast %c7_i32 : i32 to index
    %c0_101 = arith.constant 0 : index
    %c0_102 = arith.constant 0 : index
    %352 = vector.load %arg2[%351, %c0_101, %c0_102] : memref<8x8x512xf32, #tpu.memory_space<vmem>>, vector<1x8x512xf32>
    %353 = vector.shape_cast %352 : vector<1x8x512xf32> to vector<8x512xf32>
    %354 = arith.index_cast %c7_i32 : i32 to index
    %c0_103 = arith.constant 0 : index
    %c0_104 = arith.constant 0 : index
    %355 = vector.load %arg3[%354, %c0_103, %c0_104] : memref<8x8x1xf32, #tpu.memory_space<vmem>>, vector<1x8x1xf32>
    %356 = vector.shape_cast %355 : vector<1x8x1xf32> to vector<8x1xf32>
    %cst_105 = arith.constant dense<0.000000e+00> : vector<8x128xf32>
    %357 = tpu.matmul %340, %4, %cst_105 {dimension_numbers = #tpu.dot_dimension_numbers<[1], [0], [0], [1], [0, 0, 1, 1], [], []>} : vector<8x128xf32>, vector<128x128xf32>, vector<8x128xf32> -> vector<8x128xf32>
    %358 = vector.broadcast %5 : vector<1x128xf32> to vector<8x128xf32>
    %359 = arith.addf %357, %358 : vector<8x128xf32>
    %360 = math.tanh %359 : vector<8x128xf32>
    %361 = arith.subf %340, %360 : vector<8x128xf32>
    %362 = vector.broadcast %356 : vector<8x1xf32> to vector<8x128xf32>
    %363 = arith.mulf %362, %360 : vector<8x128xf32>
    %364 = arith.addf %361, %363 : vector<8x128xf32>
    %cst_106 = arith.constant dense<0.000000e+00> : vector<8x512xf32>
    %365 = tpu.matmul %342, %3, %cst_106 {dimension_numbers = #tpu.dot_dimension_numbers<[1], [0], [0], [1], [0, 0, 1, 1], [], []>} : vector<8x128xf32>, vector<128x512xf32>, vector<8x512xf32> -> vector<8x512xf32>
    %366 = arith.addf %353, %365 : vector<8x512xf32>
    %367 = vector.extract_strided_slice %366 {offsets = [0, 0], sizes = [8, 128], strides = [1, 1]} : vector<8x512xf32> to vector<8x128xf32>
    %368 = arith.negf %367 : vector<8x128xf32>
    %369 = math.exp %368 : vector<8x128xf32>
    %cst_107 = arith.constant 1.000000e+00 : f32
    %370 = vector.broadcast %cst_107 : f32 to vector<8x128xf32>
    %371 = arith.addf %370, %369 : vector<8x128xf32>
    %372 = arith.divf %370, %371 : vector<8x128xf32>
    %373 = vector.extract_strided_slice %366 {offsets = [0, 128], sizes = [8, 128], strides = [1, 1]} : vector<8x512xf32> to vector<8x128xf32>
    %374 = arith.negf %373 : vector<8x128xf32>
    %375 = math.exp %374 : vector<8x128xf32>
    %cst_108 = arith.constant 1.000000e+00 : f32
    %376 = vector.broadcast %cst_108 : f32 to vector<8x128xf32>
    %377 = arith.addf %376, %375 : vector<8x128xf32>
    %378 = arith.divf %376, %377 : vector<8x128xf32>
    %379 = vector.extract_strided_slice %366 {offsets = [0, 256], sizes = [8, 128], strides = [1, 1]} : vector<8x512xf32> to vector<8x128xf32>
    %380 = arith.negf %379 : vector<8x128xf32>
    %381 = math.exp %380 : vector<8x128xf32>
    %cst_109 = arith.constant 1.000000e+00 : f32
    %382 = vector.broadcast %cst_109 : f32 to vector<8x128xf32>
    %383 = arith.addf %382, %381 : vector<8x128xf32>
    %384 = arith.divf %382, %383 : vector<8x128xf32>
    %385 = vector.extract_strided_slice %366 {offsets = [0, 384], sizes = [8, 128], strides = [1, 1]} : vector<8x512xf32> to vector<8x128xf32>
    %386 = math.tanh %385 : vector<8x128xf32>
    %387 = arith.mulf %378, %364 : vector<8x128xf32>
    %388 = arith.mulf %372, %386 : vector<8x128xf32>
    %389 = arith.addf %387, %388 : vector<8x128xf32>
    %390 = math.tanh %389 : vector<8x128xf32>
    %391 = arith.mulf %384, %390 : vector<8x128xf32>
    %392 = arith.index_cast %c7_i32 : i32 to index
    %c0_110 = arith.constant 0 : index
    %c0_111 = arith.constant 0 : index
    %393 = vector.load %arg7[%392, %c0_110, %c0_111] : memref<8x8x128xf32, #tpu.memory_space<vmem>>, vector<1x8x128xf32>
    %394 = vector.shape_cast %393 : vector<1x8x128xf32> to vector<8x128xf32>
    %395 = vector.shape_cast %391 : vector<8x128xf32> to vector<1x8x128xf32>
    tpu.vector_store %arg7[%392, %c0_110, %c0_111], %395 {strides = array<i32>} : memref<8x8x128xf32, #tpu.memory_space<vmem>>, vector<1x8x128xf32>,
    %396 = arith.index_cast %c7_i32 : i32 to index
    %c0_112 = arith.constant 0 : index
    %c0_113 = arith.constant 0 : index
    %397 = vector.load %arg8[%396, %c0_112, %c0_113] : memref<8x8x128xf32, #tpu.memory_space<vmem>>, vector<1x8x128xf32>
    %398 = vector.shape_cast %397 : vector<1x8x128xf32> to vector<8x128xf32>
    %399 = vector.shape_cast %389 : vector<8x128xf32> to vector<1x8x128xf32>
    tpu.vector_store %arg8[%396, %c0_112, %c0_113], %399 {strides = array<i32>} : memref<8x8x128xf32, #tpu.memory_space<vmem>>, vector<1x8x128xf32>,
    %c8_i32 = arith.constant 8 : i32
    %c0_114 = arith.constant 0 : index
    %c0_115 = arith.constant 0 : index
    %400 = vector.load %arg9[%c0_114, %c0_115] : memref<8x128xf32, #tpu.memory_space<vmem>>, vector<8x128xf32>
    tpu.vector_store %arg9[%c0_114, %c0_115], %391 {strides = array<i32>} : memref<8x128xf32, #tpu.memory_space<vmem>>, vector<8x128xf32>,
    %c0_116 = arith.constant 0 : index
    %c0_117 = arith.constant 0 : index
    %401 = vector.load %arg10[%c0_116, %c0_117] : memref<8x128xf32, #tpu.memory_space<vmem>>, vector<8x128xf32>
    tpu.vector_store %arg10[%c0_116, %c0_117], %389 {strides = array<i32>} : memref<8x128xf32, #tpu.memory_space<vmem>>, vector<8x128xf32>,
    return
  }
  func.func @transform_0(%arg0: i32, %arg1: i32) -> (i32, i32, i32) {
    %c0_i32 = arith.constant 0 : i32
    %c0_i32_0 = arith.constant 0 : i32
    return %arg1, %arg0, %c0_i32 : i32, i32, i32
  }
  func.func @transform_1(%arg0: i32, %arg1: i32) -> (i32, i32, i32) {
    %c0_i32 = arith.constant 0 : i32
    %c0_i32_0 = arith.constant 0 : i32
    return %arg1, %arg0, %c0_i32 : i32, i32, i32
  }
  func.func @transform_2(%arg0: i32, %arg1: i32) -> (i32, i32) {
    %c0_i32 = arith.constant 0 : i32
    %c0_i32_0 = arith.constant 0 : i32
    %c0_i32_1 = arith.constant 0 : i32
    return %c0_i32, %c0_i32_0 : i32, i32
  }
  func.func @transform_3(%arg0: i32, %arg1: i32) -> (i32, i32) {
    %c0_i32 = arith.constant 0 : i32
    %c0_i32_0 = arith.constant 0 : i32
    %c0_i32_1 = arith.constant 0 : i32
    return %c0_i32, %c0_i32_0 : i32, i32
  }
  func.func @transform_4(%arg0: i32, %arg1: i32) -> (i32, i32) {
    %c0_i32 = arith.constant 0 : i32
    %c0_i32_0 = arith.constant 0 : i32
    %c0_i32_1 = arith.constant 0 : i32
    return %c0_i32, %c0_i32_0 : i32, i32
  }
  func.func @transform_5(%arg0: i32, %arg1: i32) -> (i32, i32, i32) {
    %c0_i32 = arith.constant 0 : i32
    %c0_i32_0 = arith.constant 0 : i32
    return %arg1, %arg0, %c0_i32 : i32, i32, i32
  }
  func.func @transform_6(%arg0: i32, %arg1: i32) -> (i32, i32, i32) {
    %c0_i32 = arith.constant 0 : i32
    %c0_i32_0 = arith.constant 0 : i32
    return %arg1, %arg0, %c0_i32 : i32, i32, i32
  }
}

</mosaic_0001>

<bundles_post_ra>
// kernel: tpu_custom_call.1
= control target key start
LH: loop header
LB: loop body
LE: loop exit
PB: predicated region body
PF: predicated region fallthrough
CT: control target
= control target key end

     0   :  { %s5452_s0 = inlined_call_operand.hbm [shape: f32[16,16,512], index: 0, kind: input, shape index: {}]   ;;  %s5453_s1 = inlined_call_operand.vmem [shape: f32[16,16,1], index: 1, kind: input, shape index: {}]   ;;  %s5454_s2 = inlined_call_operand.hbm [shape: f32[128,512], index: 2, kind: input, shape index: {}]   ;;  %s5455_s3 = inlined_call_operand.vmem [shape: f32[128,128], index: 3, kind: input, shape index: {}]   ;;  %s5456_s4 = inlined_call_operand.vmem [shape: f32[1,128], index: 4, kind: input, shape index: {}]   ;;  %s5457_s5 = inlined_call_operand.hbm [shape: f32[16,16,128], index: 5, kind: output, shape index: {0}]   ;;  %s5458_s6 = inlined_call_operand.hbm [shape: f32[16,16,128], index: 6, kind: output, shape index: {1}]  }
   0x1   :  { %5637 = sst [smem:[#allocation70_spill]] %s5454_s2 }
   0x2   :  { %5638 = sst [smem:[#allocation71_spill]] %s5457_s5 }
   0x3   :  { %12 = vsyncpa [#allocation5], 0 }
   0x4   :  { %14 = vsyncpa [#allocation5 + $0x1], 0 }
   0x5   :  { %15 = vsyncpa [#allocation9], 0 }
   0x6   :  { %16 = vsyncpa [#allocation6], 0 }
   0x7   :  { %18 = vsyncpa [#allocation6 + $0x1], 0 }
   0x8   :  { %19 = vsyncpa [#allocation12], 0 }
   0x9   :  { %21 = vsyncpa [#allocation12 + $0x1], 0  ;;  %s3874_s21 = smov 0   ;;  %s3876_s22 = smov 0  }
   0xa   :  { %s3878_s23 = smov 0   ;;  %s3880_s24 = smov 0  }
   0xb   :  { %s3882_s25 = smov 0   ;;  %s3884_s26 = smov 0  }
   0xc   :  { %s3886_s27 = smov 0   ;;  %s3888_s28 = smov 0  }
   0xd LB: > { %5639 = sst [smem:[#allocation17_spill]] %s3793_s21  ;;  %s2774_s29 = sadd.s32 4294967295, %s3821_s28   ;;  %s3821_s28 = sphi %s3888_s28, %s27_s28   ;;  %s3817_s27 = sphi %s3886_s27, %s5897_s27   ;;  %s3813_s26 = sphi %s3884_s26, %s5896_s26   ;;  %s3809_s25 = sphi %s3882_s25, %s5895_s25   ;;  %s3805_s24 = sphi %s3880_s24, %s5894_s24   ;;  %s3801_s23 = sphi %s3878_s23, %s5889_s23   ;;  %s3797_s22 = sphi %s3876_s22, %s5893_s22   ;;  %s3793_s21 = sphi %s3874_s21, %s5892_s21  }
   0xe   : > { %5640 = sst [smem:[#allocation18_spill]] %s3801_s23  ;;  %s2775_s30 = sadd.s32 4294967294, %s3821_s28  }
   0xf   : > { %5641 = sst [smem:[#allocation19_spill]] %s3821_s28  ;;  %s36_s7 = sadd.s32 1, %s3813_s26 }
  0x10   : > { %s39_s8 = sadd.s32 1, %s3817_s27  ;;  %p37_p0 = scmp.ge.s32.totalorder %s36_s7, 2 }
  0x11   : > { %s48_s9 = sadd.s32 1, %s3801_s23  ;;  %p55_p1 = scmp.ne.s32.totalorder %s3801_s23, %s3797_s22 }
  0x12   : > { %p56_p2 = scmp.eq.s32.totalorder %s3821_s28, 0  ;;  %s5899_s7 = smov (%p37_p0, %s36_s7), 0 }
  0x13   : > { %5642 = sst [smem:[#allocation20_spill]] %s5899_s7  ;;  %s5901_s8 = smov (!%p37_p0, %s39_s8), %s3817_s27 }
  0x14   : > { %s43_s10 = ssub.s32 %s3813_s26, %s5899_s7  ;;  %p3927_p3 = por %p56_p2, %p55_p1 }
  0x15   : > { %p41_p4 = scmp.ge.s32.totalorder %s5901_s8, 2  ;;  %p61_p5 = scmp.ne.s32.totalorder %s3797_s22, %s3793_s21 }
  0x16   : > { %p3933_p6 = scmp.eq.s32.totalorder %s2774_s29, 0  ;;  %p178_p7 = scmp.eq.s32.totalorder %s2774_s29, 3 }
  0x17   : > { %s5903_s8 = smov (%p41_p4, %s5901_s8), 0  ;;  %p184_p10 = scmp.eq.s32.totalorder %s2775_s30, 3 }
  0x18   : > { %5645 = sst [smem:[#allocation21_spill]] %s5903_s8  ;;  %p3941_p8 = por %p3933_p6, %p61_p5 }
  0x19   : > { %p3945_p9 = por %p178_p7, %p55_p1  ;;  %s44_s15 = ssub.s32 %s3817_s27, %s5903_s8 }
  0x1a   : > { %s5646_s13 = scalar_select %p3941_p8, 1, 0 }
  0x1b   : > { %s5647_s14 = scalar_select %p3945_p9, 1, 0 }
  0x1c   : > { %s45_s16 = sor.u32 %s44_s15, %s43_s10  ;;  %p2776_p11 = scmp.ge.s32.totalorder %s3821_s28, 1 }
  0x1d   : > { %p46_p12 = scmp.eq.s32.totalorder %s45_s16, 0  ;;  %p3952_p13 = por %p184_p10, %p61_p5 }
  0x1e   : > { %p219_p0 = scmp.lt.s32.totalorder %s3821_s28, 5  ;;  %s3823_s20 = smov [#allocation8]  }
  0x1f   : > { %s5648_s17 = scalar_select %p3952_p13, 1, 0 }
  0x20   : > { %s3958_s18 = scalar_select %p46_p12, %s3801_s23, %s48_s9  }
  0x21   : > { %5649 = sst [smem:[#allocation22_spill]] %s5648_s17  ;;  %p3960_p2 = pnand %p2776_p11, %p219_p0 }
  0x22   : > { %5650 = sst [smem:[#allocation23_spill]] %s3958_s18  ;;  %s231_s29 = sshll.u32 %s3823_s20, 4  ;;  %s232_s29 = int_to_ptr.vmem [resolvable:$true] %s231_s29 }
  0x23   : > { %p3309_p1 = pneg %p3960_p2  ;;  %s3650_s30 = scalar_lea.vmem %s232_s29, 8192 }
  0x24   : > { %p3651_p5 = scmp.ne.s32.totalorder %s232_s29, %s3650_s30  ;;  %p3658_p9 = scmp.lt.s32.totalorder %s232_s29, %s232_s29 }
  0x25   : > { %p3310_p4 = pnand %p3309_p1, %p3933_p6  ;;  %p3659_p12 = scmp.lt.s32.totalorder %s3650_s30, %s3650_s30 }
  0x27   : > { %p3641_p7 = pneg %p3310_p4  ;;  %p3660_p8 = por %p3659_p12, %p3658_p9 }
  0x29   : > { %p3653_p10 = pnand %p3651_p5, %p3641_p7 }
  0x2b   : > { %p3654_p13 = pneg %p3653_p10 }
  0x2d   : > { %p3661_p11 = pnand %p3660_p8, %p3654_p13 }
  0x2f   : > { %3664 = shalt.err (!%p3661_p11)
}
  0x30   : > { %s3824_s9 = smov 512   ;;  %s3825_s10 = smov 32  }
  0x31   : > { %s5652_s2 = sld [smem:[#allocation70_spill]]  ;;  %p2778_p0 = scmp.ge.s32.totalorder %s3821_s28, 4 }
  0x32   : > { %s3973_s20 = sand.u32 (!%p2778_p0), 1, %s3801_s23   ;;  %s2781_s30 = sshll.u32 (!%p2778_p0), %s3817_s27, 2 }
  0x33   : > { %247 = sbr.rel (%p2778_p0) target bundleno = 79 (0x4f), region = 28  ;;  %s2779_s8 = sshll.u32 (!%p2778_p0), %s3973_s20, 8 }
  0x34   : > { %s2879_s7 = sshll.u32 (!%p2778_p0), %s3813_s26, 6  ;;  %s255_s17 = scalar_lea.vmem (!%p2778_p0), [#allocation4], %s2779_s8 }
  0x35   : > { %s262_s18 = sadd.s32 (!%p2778_p0), %s2879_s7, %s2781_s30  ;;  %s265_s21 = sshll.u32 (!%p2778_p0), %s255_s17, 4  ;;  %s266_s21 = int_to_ptr.vmem [resolvable:$true] %s265_s21 }
  0x36   : > { %s2783_s5 = sshll.u32 (!%p2778_p0), %s262_s18, 7  ;;  %s252_s15 = scalar_lea.sflag (!%p2778_p0), [#allocation5], %s3973_s20 }
  0x37   : > { %3312 = dma.hbm_to_vmem [thread:$0]  (!%p3310_p4), %s5652_s2, 8192, %s232_s29, [#allocation9], %s3824_s9, %s3824_s9, %s3825_s10  }
  0x38   : > { %s264_s10 = scalar_lea.hbm %s5452_s0, %s2783_s5  ;;  %s3677_s16 = scalar_lea.vmem %s266_s21, 4096 }
  0x39   : > { %p3678_p8 = scmp.ne.s32.totalorder %s266_s21, %s3677_s16  ;;  %s3826_s2 = smov [#allocation4]  }
  0x3a   : > { %s3681_s23 = sshll.u32 %s3826_s2, 4  ;;  %s3682_s23 = int_to_ptr.vmem [resolvable:$false] %s3681_s23 }
  0x3b   : > { %p3679_p9 = pnand %p3678_p8, %p3927_p3  ;;  %s3683_s28 = scalar_lea.vmem %s3682_s23, 8192 }
  0x3c   : > { %p3684_p1 = scmp.lt.s32.totalorder %s266_s21, %s3682_s23  ;;  %p3685_p4 = scmp.lt.s32.totalorder %s3683_s28, %s3677_s16 }
  0x3d   : > { %p3680_p13 = pneg %p3679_p9 }
  0x3e   : > { %p3686_p7 = por %p3685_p4, %p3684_p1 }
  0x40   : > { %p3687_p5 = pnand %p3686_p7, %p3680_p13 }
  0x42   : > { %3690 = shalt.err (!%p3687_p5)
}
  0x43   : > { %s3827_s7 = smov 1024   ;;  %s3828_s8 = smov 512  }
  0x44   : > { %s3829_s17 = smov 32   ;;  %274 = sbr.rel (!%p3927_p3) target bundleno = 79 (0x4f), region = 36 }
  0x45   : > { %3301 = dma.hbm_to_vmem [thread:$0]  (%p3927_p3), %s264_s10, 4096, %s266_s21, %s252_s15, %s3827_s7, %s3828_s8, %s3829_s17  }
  0x46   : > { %s2784_s2 = sshll.u32 (%p3927_p3), %s3973_s20, 6  ;;  %s2880_s5 = sshll.u32 (%p3927_p3), %s3813_s26, 4 }
  0x47   : > { %s281_s18 = sadd.s32 (%p3927_p3), %s3817_s27, %s2880_s5  ;;  %s278_s9 = scalar_lea.vmem (%p3927_p3), [#allocation7], %s2784_s2 }
  0x48   : > { %s2787_s23 = sshll.u32 (%p3927_p3), %s281_s18, 3 }
  0x49   : > { %s283_s29 = scalar_lea.vmem %s5453_s1, %s2787_s23 }
  0x4a   : > { %v326_v0 = vld [vmem:[%s283_s29] sm:$0xff]  ;;  %v328_v1 = vld [vmem:[%s283_s29 + $0x10] sm:$0xff] }
  0x4b   : > { %v330_v2 = vld [vmem:[%s283_s29 + $0x20] sm:$0xff]  ;;  %327 = vst [vmem:[%s278_s9] sm:$0xff] %v326_v0  ;;  %329 = vst [vmem:[%s278_s9 + $0x8] sm:$0xff] %v328_v1  ;;  %v332_v3 = vld [vmem:[%s283_s29 + $0x30] sm:$0xff] }
  0x4c   : > { %331 = vst [vmem:[%s278_s9 + $0x10] sm:$0xff] %v330_v2  ;;  %v334_v4 = vld [vmem:[%s283_s29 + $0x40] sm:$0xff]  ;;  %v336_v5 = vld [vmem:[%s283_s29 + $0x50] sm:$0xff]  ;;  %333 = vst [vmem:[%s278_s9 + $0x18] sm:$0xff] %v332_v3 }
  0x4d   : > { %335 = vst [vmem:[%s278_s9 + $0x20] sm:$0xff] %v334_v4  ;;  %337 = vst [vmem:[%s278_s9 + $0x28] sm:$0xff] %v336_v5  ;;  %v338_v6 = vld [vmem:[%s283_s29 + $0x60] sm:$0xff]  ;;  %v340_v7 = vld [vmem:[%s283_s29 + $0x70] sm:$0xff] }
  0x4e   : > { %339 = vst [vmem:[%s278_s9 + $0x30] sm:$0xff] %v338_v6  ;;  %341 = vst [vmem:[%s278_s9 + $0x38] sm:$0xff] %v340_v7 }
  0x4f PF: > { %350 = sbr.rel (%p3960_p2) target bundleno = 2172 (0x87c), region = 74 }
  0x54   : > { %s3997_s21 = sand.u32 1, %s3797_s22   ;;  %p5653_p3 = scmp.ne.s32.totalorder %s5646_s13, 0 }
  0x55   : > { %s2789_s11 = sshll.u32 %s3997_s21, 8  ;;  %s353_s20 = scalar_lea.sflag [#allocation5], %s3997_s21 }
  0x56   : > { %s4001_s10 = scalar_lea.vmem [#allocation4], %s2789_s11 }
  0x57   : > { %3776 = dma.done.wait (%p5653_p3), %s353_s20, 4096  }
  0x58   : > { %3778 = vsyncadd (%p5653_p3), %s353_s20, 4294963200  ;;  %s2790_s15 = sshll.u32 %s3997_s21, 6 }
  0x59   : > { %s4008_s19 = scalar_lea.vmem [#allocation7], %s2790_s15 }
  0x5a   : > { %3780 = dma.done.wait (%p3933_p6), [#allocation9], 8192  }
  0x5b   : > { %3782 = vsyncadd (%p3933_p6), [#allocation9], 4294959104  ;;  %s4014_s16 = scalar_lea.vmem [#allocation10], %s2790_s15  ;;  %s4016_s7 = scalar_lea.vmem [#allocation11], %s2790_s15 }
  0x5c   : > { %p2794_p2 = scmp.ne.s32.totalorder %s3805_s24, 0 }
  0x5e   : > { %412 = sbr.rel (%p2794_p2) target bundleno = 101 (0x65), region = 90 }
  0x63   : > { %v3830_v8 = vmov 0.0  }
  0x64   : > { %413 = vst [vmem:[#allocation2] sm:$0xff] %v3830_v8  ;;  %414 = vst [vmem:[#allocation3] sm:$0xff] %v3830_v8 }
  0x65 PF: > { %v4019_v9 = vld [vmem:[#allocation8 + $0x1e8] sm:$0xff]  ;;  %v4026_v11 = vld [vmem:[#allocation8 + $0x1e0] sm:$0xff]  ;;  %v5528_v12 = vmov 0.0   ;;  %v4048_v17 = vld [vmem:[%s5455_s3 + $0x68] sm:$0xff]  ;;  %vm3832_vm0 = vmmov 0   ;;  %v5469_v2 = vmov 0  }
  0x66   : > { %v4024_v10 = vld [vmem:[%s5455_s3 + $0x78] sm:$0xff]  ;;  %3019 = vmatprep.subr.mxu0 %v5528_v12  ;;  %588 = vmatprep.subr.mxu1 %v4019_v9  ;;  %v4035_v14 = vld [vmem:[%s5455_s3 + $0x70] sm:$0xff]  ;;  %5656 = vst [vmem:[#allocation26_spill] sm:$0xff] %v4048_v17  ;;  %v4061_v20 = vld [vmem:[%s5455_s3 + $0x60] sm:$0xff]  ;;  %s2621_s23 = sshll.u32 %s4016_s7, 4  ;;  %s2588_s30 = scalar_lea.sflag [#allocation12], %s3997_s21  ;;  %s5360_s23 = int_to_ptr.vmem [resolvable:$true] %s2621_s23 }
  0x67   : > { %5654 = vst [vmem:[#allocation24_spill] sm:$0xff] %v4024_v10  ;;  %v4030_v13 = vld [vmem:[#allocation8 + $0x1c8] sm:$0xff]  ;;  %5655 = vst [vmem:[#allocation25_spill] sm:$0xff] %v4035_v14  ;;  %v4037_v15 = vld [vmem:[#allocation8 + $0x1c0] sm:$0xff]  ;;  %3020 = vmatpush3.msra.mxu0 %v4024_v10  ;;  %589 = vmatpush1.msra.mxu1 %v4026_v11  ;;  %s3691_s29 = scalar_lea.vmem %s5360_s23, 1024  ;;  %p5882_p10 = scmp.ne.s32.totalorder %s5647_s14, 0 }
  0x68   : > { %v4041_v16 = vld [vmem:[#allocation8 + $0x1a8] sm:$0xff]  ;;  %3021 = vmatprep.subr.mxu0 %v5528_v12  ;;  %590 = vmatprep.subr.mxu1 %v4030_v13  ;;  %v4050_v18 = vld [vmem:[#allocation8 + $0x1a0] sm:$0xff]  ;;  %5657 = vst [vmem:[#allocation27_spill] sm:$0xff] %v4061_v20  ;;  %v4100_v29 = vld [vmem:[%s5455_s3 + $0x48] sm:$0xff]  ;;  %p3692_p6 = scmp.ne.s32.totalorder %s5360_s23, %s3691_s29  ;;  %s3834_s9 = smov [#allocation11]  }
  0x69   : > { %3022 = vmatpush3.msra.mxu0 %v4035_v14  ;;  %591 = vmatpush1.msra.mxu1 %v4037_v15  ;;  %v4054_v19 = vld [vmem:[#allocation8 + $0x188] sm:$0xff]  ;;  %v4063_v21 = vld [vmem:[#allocation8 + $0x180] sm:$0xff]  ;;  %5661 = vst [vmem:[#allocation31_spill] sm:$0xff] %v4100_v29  ;;  %v4113_v32 = vld [vmem:[%s5455_s3 + $0x40] sm:$0xff]  ;;  %s3695_s11 = sshll.u32 %s3834_s9, 4  ;;  %s3696_s11 = int_to_ptr.vmem [resolvable:$false] %s3695_s11 }
  0x6a   : > { %3023 = vmatprep.subr.mxu0 %v5528_v12  ;;  %592 = vmatprep.subr.mxu1 %v4041_v16  ;;  %v4067_v22 = vld [vmem:[#allocation8 + $0x168] sm:$0xff]  ;;  %v4076_v24 = vld [vmem:[#allocation8 + $0x160] sm:$0xff]  ;;  %5664 = vst [vmem:[#allocation34_spill] sm:$0xff] %v4113_v32  ;;  %v4152_v41 = vld [vmem:[%s5455_s3 + $0x28] sm:$0xff]  ;;  %p3693_p12 = pnand %p3692_p6, %p5882_p10  ;;  %s3697_s20 = scalar_lea.vmem %s3696_s11, 2048 }
  0x6b   : > { %3024 = vmatpush3.msra.mxu0 %v4048_v17  ;;  %593 = vmatpush1.msra.mxu1 %v4050_v18  ;;  %v4074_v23 = vld [vmem:[%s5455_s3 + $0x58] sm:$0xff]  ;;  %v4087_v26 = vld [vmem:[%s5455_s3 + $0x50] sm:$0xff]  ;;  %v4165_v44 = vld [vmem:[%s5455_s3 + $0x20] sm:$0xff]  ;;  %p3698_p0 = scmp.lt.s32.totalorder %s5360_s23, %s3696_s11  ;;  %p3699_p8 = scmp.lt.s32.totalorder %s3697_s20, %s3691_s29 }
  0x6c   : > { %3025 = vmatprep.subr.mxu0 %v5528_v12  ;;  %594 = vmatprep.subr.mxu1 %v4054_v19  ;;  %5658 = vst [vmem:[#allocation28_spill] sm:$0xff] %v4074_v23  ;;  %v4080_v25 = vld [vmem:[#allocation8 + $0x148] sm:$0xff]  ;;  %5659 = vst [vmem:[#allocation29_spill] sm:$0xff] %v4087_v26  ;;  %v4089_v27 = vld [vmem:[#allocation8 + $0x140] sm:$0xff]  ;;  %p3694_p11 = pneg %p3693_p12 }
  0x6d   : > { %3026 = vmatpush3.msra.mxu0 %v4061_v20  ;;  %595 = vmatpush1.msra.mxu1 %v4063_v21  ;;  %v4093_v28 = vld [vmem:[#allocation8 + $0x128] sm:$0xff]  ;;  %v4102_v30 = vld [vmem:[#allocation8 + $0x120] sm:$0xff]  ;;  %v4204_v53 = vld [vmem:[%s5455_s3 + $0x8] sm:$0xff]  ;;  %p3700_p9 = por %p3699_p8, %p3698_p0 }
  0x6e   : > { %3027 = vmatprep.subr.mxu0 %v5528_v12  ;;  %596 = vmatprep.subr.mxu1 %v4067_v22  ;;  %5660 = vst [vmem:[#allocation30_spill] sm:$0xff] %v4093_v28  ;;  %5662 = vst [vmem:[#allocation32_spill] sm:$0xff] %v4102_v30  ;;  %v4106_v31 = vld [vmem:[#allocation8 + $0x108] sm:$0xff]  ;;  %v4115_v33 = vld [vmem:[#allocation8 + $0x100] sm:$0xff] }
  0x6f   : > { %3028 = vmatpush3.msra.mxu0 %v4074_v23  ;;  %597 = vmatpush1.msra.mxu1 %v4076_v24  ;;  %5663 = vst [vmem:[#allocation33_spill] sm:$0xff] %v4106_v31  ;;  %5665 = vst [vmem:[#allocation35_spill] sm:$0xff] %v4115_v33  ;;  %v4119_v34 = vld [vmem:[#allocation8 + $0xe8] sm:$0xff]  ;;  %v4128_v36 = vld [vmem:[#allocation8 + $0xe0] sm:$0xff]  ;;  %p3701_p13 = pnand %p3700_p9, %p3694_p11 }
  0x70   : > { %3029 = vmatprep.subr.mxu0 %v5528_v12  ;;  %598 = vmatprep.subr.mxu1 %v4080_v25  ;;  %5666 = vst [vmem:[#allocation36_spill] sm:$0xff] %v4119_v34  ;;  %v4126_v35 = vld [vmem:[%s5455_s3 + $0x38] sm:$0xff]  ;;  %5668 = vst [vmem:[#allocation38_spill] sm:$0xff] %v4128_v36  ;;  %v4139_v38 = vld [vmem:[%s5455_s3 + $0x30] sm:$0xff] }
  0x71   : > { %3030 = vmatpush3.msra.mxu0 %v4087_v26  ;;  %599 = vmatpush1.msra.mxu1 %v4089_v27  ;;  %5667 = vst [vmem:[#allocation37_spill] sm:$0xff] %v4126_v35  ;;  %v4132_v37 = vld [vmem:[#allocation8 + $0xc8] sm:$0xff]  ;;  %v4141_v39 = vld [vmem:[#allocation8 + $0xc0] sm:$0xff]  ;;  %5682 = vst [vmem:[#allocation52_spill] sm:$0xff] %v4204_v53 }
  0x72   : > { %3031 = vmatprep.subr.mxu0 %v5528_v12  ;;  %600 = vmatprep.subr.mxu1 %v4093_v28  ;;  %5669 = vst [vmem:[#allocation39_spill] sm:$0xff] %v4132_v37  ;;  %5670 = vst [vmem:[#allocation40_spill] sm:$0xff] %v4141_v39  ;;  %v4145_v40 = vld [vmem:[#allocation8 + $0xa8] sm:$0xff]  ;;  %v4154_v42 = vld [vmem:[#allocation8 + $0xa0] sm:$0xff] }
  0x73   : > { %3032 = vmatpush3.msra.mxu0 %v4100_v29  ;;  %601 = vmatpush1.msra.mxu1 %v4102_v30  ;;  %5671 = vst [vmem:[#allocation41_spill] sm:$0xff] %v4145_v40  ;;  %5672 = vst [vmem:[#allocation42_spill] sm:$0xff] %v4154_v42  ;;  %v4158_v43 = vld [vmem:[#allocation8 + $0x88] sm:$0xff]  ;;  %v4167_v45 = vld [vmem:[#allocation8 + $0x80] sm:$0xff] }
  0x74   : > { %3033 = vmatprep.subr.mxu0 %v5528_v12  ;;  %602 = vmatprep.subr.mxu1 %v4106_v31  ;;  %5673 = vst [vmem:[#allocation43_spill] sm:$0xff] %v4158_v43  ;;  %5674 = vst [vmem:[#allocation44_spill] sm:$0xff] %v4167_v45  ;;  %v4171_v46 = vld [vmem:[#allocation8 + $0x68] sm:$0xff]  ;;  %v4180_v48 = vld [vmem:[#allocation8 + $0x60] sm:$0xff] }
  0x75   : > { %3034 = vmatpush3.msra.mxu0 %v4113_v32  ;;  %603 = vmatpush1.msra.mxu1 %v4115_v33  ;;  %5675 = vst [vmem:[#allocation45_spill] sm:$0xff] %v4171_v46  ;;  %v4178_v47 = vld [vmem:[%s5455_s3 + $0x18] sm:$0xff]  ;;  %5677 = vst [vmem:[#allocation47_spill] sm:$0xff] %v4180_v48  ;;  %v4191_v50 = vld [vmem:[%s5455_s3 + $0x10] sm:$0xff] }
  0x76   : > { %3035 = vmatprep.subr.mxu0 %v5528_v12  ;;  %604 = vmatprep.subr.mxu1 %v4119_v34  ;;  %5676 = vst [vmem:[#allocation46_spill] sm:$0xff] %v4178_v47  ;;  %v4184_v49 = vld [vmem:[#allocation8 + $0x48] sm:$0xff]  ;;  %5679 = vst [vmem:[#allocation49_spill] sm:$0xff] %v4191_v50  ;;  %v4193_v51 = vld [vmem:[#allocation8 + $0x40] sm:$0xff] }
  0x77   : > { %3036 = vmatpush3.msra.mxu0 %v4126_v35  ;;  %605 = vmatpush1.msra.mxu1 %v4128_v36  ;;  %5678 = vst [vmem:[#allocation48_spill] sm:$0xff] %v4184_v49  ;;  %5680 = vst [vmem:[#allocation50_spill] sm:$0xff] %v4193_v51  ;;  %v4197_v52 = vld [vmem:[#allocation8 + $0x28] sm:$0xff]  ;;  %v4206_v54 = vld [vmem:[#allocation8 + $0x20] sm:$0xff] }
  0x78   : > { %3037 = vmatprep.subr.mxu0 %v5528_v12  ;;  %606 = vmatprep.subr.mxu1 %v4132_v37  ;;  %5681 = vst [vmem:[#allocation51_spill] sm:$0xff] %v4197_v52  ;;  %5683 = vst [vmem:[#allocation53_spill] sm:$0xff] %v4206_v54  ;;  %v4210_v55 = vld [vmem:[#allocation8 + $0x8] sm:$0xff]  ;;  %v4217_v56 = vld [vmem:[%s5455_s3] sm:$0xff] }
  0x79   : > { %3038 = vmatpush3.msra.mxu0 %v4139_v38  ;;  %607 = vmatpush1.msra.mxu1 %v4141_v39  ;;  %5684 = vst [vmem:[#allocation54_spill] sm:$0xff] %v4210_v55  ;;  %5685 = vst [vmem:[#allocation55_spill] sm:$0xff] %v4217_v56  ;;  %v4221_v57 = vld [vmem:[#allocation8] sm:$0xff]  ;;  %v4225_v58 = vld [vmem:[#allocation3] sm:$0xff] }
  0x7a   : > { %3039 = vmatprep.subr.mxu0 %v5528_v12  ;;  %608 = vmatprep.subr.mxu1 %v4145_v40  ;;  %5686 = vst [vmem:[#allocation56_spill] sm:$0xff] %v4221_v57  ;;  %v4227_v59 = vld [vmem:[#allocation2] sm:$0xff]  ;;  %v4232_v60 = vld [vmem:[#allocation8 + $0x1f8] sm:$0xff]  ;;  %v502_v63 = vld [vmem:[%s4008_s19] sm:$0xff] }
  0x7b   : > { %3040 = vmatpush3.msra.mxu0 %v4152_v41  ;;  %609 = vmatpush1.msra.mxu1 %v4154_v42  ;;  %5687 = vst [vmem:[#allocation57_spill] sm:$0xff] %v4232_v60  ;;  %v4236_v61 = vld [vmem:[#allocation8 + $0x1f0] sm:$0xff]  ;;  %v4240_v62 = vld [vmem:[#allocation8 + $0x1d8] sm:$0xff]  ;;  %v2803_v5 = vld [vmem:[%s4008_s19 + $0x8] sm:$0xff] }
  0x7c   : > { %3041 = vmatprep.subr.mxu0 %v5528_v12  ;;  %610 = vmatprep.subr.mxu1 %v4158_v43  ;;  %v4244_v0 = vld [vmem:[#allocation8 + $0x1d0] sm:$0xff]  ;;  %v4248_v1 = vld [vmem:[#allocation8 + $0x1b8] sm:$0xff] }
  0x7d   : > { %3042 = vmatpush3.msra.mxu0 %v4165_v44  ;;  %611 = vmatpush1.msra.mxu1 %v4167_v45  ;;  %v4252_v3 = vld [vmem:[#allocation8 + $0x1b0] sm:$0xff]  ;;  %v4255_v4 = vld [vmem:[#allocation8 + $0x198] sm:$0xff] }
  0x7e   : > { %3043 = vmatprep.subr.mxu0 %v5528_v12  ;;  %612 = vmatprep.subr.mxu1 %v4171_v46  ;;  %5688 = vst [vmem:[#allocation58_spill] sm:$0xff] %v4255_v4  ;;  %v4260_v6 = vld [vmem:[#allocation8 + $0x190] sm:$0xff]  ;;  %v4264_v7 = vld [vmem:[#allocation8 + $0x178] sm:$0xff] }
  0x7f   : > { %3044 = vmatpush3.msra.mxu0 %v4178_v47  ;;  %613 = vmatpush1.msra.mxu1 %v4180_v48  ;;  %5689 = vst [vmem:[#allocation59_spill] sm:$0xff] %v4260_v6  ;;  %5690 = vst [vmem:[#allocation60_spill] sm:$0xff] %v4264_v7  ;;  %v4268_v8 = vld [vmem:[#allocation8 + $0x170] sm:$0xff] }
  0x80   : > { %3045 = vmatprep.subr.mxu0 %v5528_v12  ;;  %614 = vmatprep.subr.mxu1 %v4184_v49 }
  0x81   : > { %3046 = vmatpush3.msra.mxu0 %v4191_v50  ;;  %615 = vmatpush1.msra.mxu1 %v4193_v51 }
  0x82   : > { %3047 = vmatprep.subr.mxu0 %v5528_v12  ;;  %616 = vmatprep.subr.mxu1 %v4197_v52 }
  0x83   : > { %3048 = vmatpush3.msra.mxu0 %v4204_v53  ;;  %617 = vmatpush1.msra.mxu1 %v4206_v54 }
  0x84   : > { %3049 = vmatprep.subr.mxu0 %v5528_v12  ;;  %618 = vmatprep.subr.mxu1 %v4210_v55 }
  0x85   : > { %3050 = vmatpush3.msra.mxu0 %v4217_v56  ;;  %3051 = vmatprep.mubr.msk.f32.mxu0 %vm3832_vm0, %v5528_v12 }
  0x86   : > { %619 = vmatpush1.msra.mxu1 %v4221_v57  ;;  %652 = vmatprep.mubr.f32.mxu1 %v5528_v12 }
  0x87   : > { %3052 = vmatmul.mubr.f32.vlgmr.msra.gmra.mxu0 %v4225_v58  ;;  %653 = vmatmul.mubr.f32.vlgmr.msra.gmra.mxu1 %v4227_v59 }
  0x88   : > { %659 = vmatprep.subr.mxu0 %v4232_v60  ;;  %723 = vmatprep.mubr.f32.mxu0 %v5528_v12 }
  0x89   : > { %660 = vmatpush1.msra.mxu0 %v4236_v61  ;;  %3400 = vset.pattern.permute.xlu0 %v5469_v2  ;;  %v2833_v2 = vld [vmem:[%s4008_s19 + $0x20] sm:$0xff] }
  0x8a   : > { %661 = vmatprep.subr.mxu0 %v4240_v62  ;;  %583 = vperm.xlu0 %3400, %v502_v63   ;;  %v4271_v63 = vld [vmem:[#allocation8 + $0x158] sm:$0xff] }
  0x8b   : > { %662 = vmatpush1.msra.mxu0 %v4244_v0  ;;  %3054 = vmatprep.subr.mxu1 %v5528_v12 }
  0x8c   : > { %663 = vmatprep.subr.mxu0 %v4248_v1  ;;  %3055 = vmatpush3.msra.mxu1 %v4024_v10  ;;  %v4276_v10 = vld [vmem:[#allocation8 + $0x150] sm:$0xff] }
  0x8d   : > { %664 = vmatpush1.msra.mxu0 %v4252_v3  ;;  %3056 = vmatprep.subr.mxu1 %v5528_v12  ;;  %5691 = vst [vmem:[#allocation61_spill] sm:$0xff] %v4276_v10 }
  0x8e   : > { %665 = vmatprep.subr.mxu0 %v4255_v4  ;;  %841 = vperm.xlu0 %3400, %v2803_v5   ;;  %v4280_v4 = vld [vmem:[#allocation8 + $0x138] sm:$0xff]  ;;  %v4284_v5 = vld [vmem:[#allocation8 + $0x130] sm:$0xff] }
  0x8f   : > { %666 = vmatpush1.msra.mxu0 %v4260_v6  ;;  %3057 = vmatpush3.msra.mxu1 %v4035_v14  ;;  %5692 = vst [vmem:[#allocation62_spill] sm:$0xff] %v4284_v5  ;;  %v4287_v14 = vld [vmem:[#allocation8 + $0x118] sm:$0xff]  ;;  %v4292_v6 = vld [vmem:[#allocation8 + $0x110] sm:$0xff] }
  0x90   : > { %667 = vmatprep.subr.mxu0 %v4264_v7  ;;  %3058 = vmatprep.subr.mxu1 %v5528_v12  ;;  %v2853_v7 = vld [vmem:[%s4008_s19 + $0x30] sm:$0xff] }
  0x91   : > { %668 = vmatpush1.msra.mxu0 %v4268_v8  ;;  %3059 = vmatpush3.msra.mxu1 %v4048_v17  ;;  %v4296_v17 = vld [vmem:[#allocation8 + $0xf8] sm:$0xff] }
  0x92   : > { %669 = vmatprep.subr.mxu0 %v4271_v63  ;;  %1621 = vperm.xlu0 %3400, %v2833_v2   ;;  %5693 = vst [vmem:[#allocation63_spill] sm:$0xff] %v4296_v17  ;;  %v4300_v2 = vld [vmem:[#allocation8 + $0xf0] sm:$0xff] }
  0x93   : > { %670 = vmatpush1.msra.mxu0 %v4276_v10  ;;  %3060 = vmatprep.subr.mxu1 %v5528_v12  ;;  %v4303_v10 = vld [vmem:[#allocation8 + $0xd8] sm:$0xff] }
  0x94   : > { %671 = vmatprep.subr.mxu0 %v4280_v4  ;;  %3061 = vmatpush3.msra.mxu1 %v4061_v20  ;;  %5694 = vst [vmem:[#allocation64_spill] sm:$0xff] %v4303_v10  ;;  %v4307_v20 = vld [vmem:[#allocation8 + $0xd0] sm:$0xff] }
  0x95   : > { %672 = vmatpush1.msra.mxu0 %v4284_v5  ;;  %3062 = vmatprep.subr.mxu1 %v5528_v12  ;;  %v4311_v5 = vld [vmem:[#allocation8 + $0xb8] sm:$0xff] }
  0x96   : > { %673 = vmatprep.subr.mxu0 %v4287_v14  ;;  %2141 = vperm.xlu0 %3400, %v2853_v7   ;;  %5695 = vst [vmem:[#allocation65_spill] sm:$0xff] %v4311_v5  ;;  %v4315_v7 = vld [vmem:[#allocation8 + $0xb0] sm:$0xff] }
  0x97   : > { %674 = vmatpush1.msra.mxu0 %v4292_v6  ;;  %3063 = vmatpush3.msra.mxu1 %v4074_v23  ;;  %v4319_v23 = vld [vmem:[#allocation8 + $0x98] sm:$0xff] }
  0x98   : > { %675 = vmatprep.subr.mxu0 %v4296_v17  ;;  %3064 = vmatprep.subr.mxu1 %v5528_v12  ;;  %5696 = vst [vmem:[#allocation66_spill] sm:$0xff] %v4319_v23  ;;  %v4323_v17 = vld [vmem:[#allocation8 + $0x90] sm:$0xff] }
  0x99   : > { %676 = vmatpush1.msra.mxu0 %v4300_v2  ;;  %3065 = vmatpush3.msra.mxu1 %v4087_v26  ;;  %v4327_v26 = vld [vmem:[#allocation8 + $0x78] sm:$0xff] }
  0x9a   : > { %677 = vmatprep.subr.mxu0 %v4303_v10  ;;  %3066 = vmatprep.subr.mxu1 %v5528_v12  ;;  %5697 = vst [vmem:[#allocation67_spill] sm:$0xff] %v4327_v26  ;;  %v4331_v10 = vld [vmem:[#allocation8 + $0x70] sm:$0xff] }
  0x9b   : > { %678 = vmatpush1.msra.mxu0 %v4307_v20  ;;  %3067 = vmatpush3.msra.mxu1 %v4100_v29  ;;  %v4335_v29 = vld [vmem:[#allocation8 + $0x58] sm:$0xff] }
  0x9c   : > { %679 = vmatprep.subr.mxu0 %v4311_v5  ;;  %3068 = vmatprep.subr.mxu1 %v5528_v12  ;;  %5698 = vst [vmem:[#allocation68_spill] sm:$0xff] %v4335_v29  ;;  %v4339_v5 = vld [vmem:[#allocation8 + $0x50] sm:$0xff] }
  0x9d   : > { %680 = vmatpush1.msra.mxu0 %v4315_v7  ;;  %3069 = vmatpush3.msra.mxu1 %v4113_v32  ;;  %v4343_v32 = vld [vmem:[#allocation8 + $0x38] sm:$0xff] }
  0x9e   : > { %681 = vmatprep.subr.mxu0 %v4319_v23  ;;  %3070 = vmatprep.subr.mxu1 %v5528_v12  ;;  %v4347_v23 = vld [vmem:[#allocation8 + $0x30] sm:$0xff] }
  0x9f   : > { %682 = vmatpush1.msra.mxu0 %v4323_v17  ;;  %3071 = vmatpush3.msra.mxu1 %v4126_v35  ;;  %v4351_v35 = vld [vmem:[#allocation8 + $0x18] sm:$0xff] }
  0xa0   : > { %683 = vmatprep.subr.mxu0 %v4327_v26  ;;  %3072 = vmatprep.subr.mxu1 %v5528_v12  ;;  %v4355_v26 = vld [vmem:[#allocation8 + $0x10] sm:$0xff] }
  0xa1   : > { %684 = vmatpush1.msra.mxu0 %v4331_v10  ;;  %3073 = vmatpush3.msra.mxu1 %v4139_v38 }
  0xa2   : > { %685 = vmatprep.subr.mxu0 %v4335_v29  ;;  %3074 = vmatprep.subr.mxu1 %v5528_v12 }
  0xa3   : > { %686 = vmatpush1.msra.mxu0 %v4339_v5  ;;  %3075 = vmatpush3.msra.mxu1 %v4152_v41 }
  0xa4   : > { %687 = vmatprep.subr.mxu0 %v4343_v32  ;;  %3076 = vmatprep.subr.mxu1 %v5528_v12 }
  0xa5   : > { %688 = vmatpush1.msra.mxu0 %v4347_v23  ;;  %3077 = vmatpush3.msra.mxu1 %v4165_v44 }
  0xa6   : > { %689 = vmatprep.subr.mxu0 %v4351_v35  ;;  %3078 = vmatprep.subr.mxu1 %v5528_v12 }
  0xa7   : > { %690 = vmatpush1.msra.mxu0 %v4355_v26  ;;  %3079 = vmatpush3.msra.mxu1 %v4178_v47 }
  0xa8   : > { %724 = vmatmul.mubr.f32.vlgmr.msra.gmra.mxu0 %v4227_v59  ;;  %846 = vmatprep.subr.mxu0 %v4019_v9  ;;  %v5699_v59 = vmov 0  }
  0xa9   : > { %847 = vmatpush1.msra.mxu0 %v4026_v11  ;;  %3080 = vmatprep.subr.mxu1 %v5528_v12 }
  0xaa   : > { %848 = vmatprep.subr.mxu0 %v4030_v13  ;;  %3081 = vmatpush3.msra.mxu1 %v4191_v50 }
  0xab   : > { %849 = vmatpush1.msra.mxu0 %v4037_v15  ;;  %3082 = vmatprep.subr.mxu1 %v5528_v12 }
  0xac   : > { %850 = vmatprep.subr.mxu0 %v4041_v16  ;;  %3083 = vmatpush3.msra.mxu1 %v4204_v53 }
  0xad   : > { %851 = vmatpush1.msra.mxu0 %v4050_v18  ;;  %3084 = vmatprep.subr.mxu1 %v5528_v12 }
  0xae   : > { %852 = vmatprep.subr.mxu0 %v4054_v19  ;;  %3085 = vmatpush3.msra.mxu1 %v4217_v56 }
  0xaf   : > { %853 = vmatpush1.msra.mxu0 %v4063_v21  ;;  %3086 = vmatprep.mubr.msk.f32.mxu1 %vm3832_vm0, %v5528_v12 }
  0xb0   : > { %854 = vmatprep.subr.mxu0 %v4067_v22  ;;  %917 = vmatprep.subr.mxu1 %v4232_v60 }
  0xb1   : > { %855 = vmatpush1.msra.mxu0 %v4076_v24  ;;  %910 = vmatprep.mubr.f32.mxu0 %v5528_v12 }
  0xb2   : > { %856 = vmatprep.subr.mxu0 %v4080_v25  ;;  %3401 = vset.pattern.permute.xlu1 %v5699_v59 }
  0xb3   : > { %857 = vmatpush1.msra.mxu0 %v4089_v27 }
  0xb4   : > { %858 = vmatprep.subr.mxu0 %v4093_v28 }
  0xb5   : > { %859 = vmatpush1.msra.mxu0 %v4102_v30 }
  0xb6   : > { %860 = vmatprep.subr.mxu0 %v4106_v31 }
  0xb7   : > { %861 = vmatpush1.msra.mxu0 %v4115_v33 }
  0xb8   : > { %862 = vmatprep.subr.mxu0 %v4119_v34 }
  0xb9   : > { %863 = vmatpush1.msra.mxu0 %v4128_v36 }
  0xba   : > { %864 = vmatprep.subr.mxu0 %v4132_v37 }
  0xbb   : > { %865 = vmatpush1.msra.mxu0 %v4141_v39 }
  0xbc   : > { %866 = vmatprep.subr.mxu0 %v4145_v40 }
  0xbd   : > { %867 = vmatpush1.msra.mxu0 %v4154_v42 }
  0xbe   : > { %868 = vmatprep.subr.mxu0 %v4158_v43  ;;  %v498_v43 = vld [vmem:[%s4001_s10] sm:$0xff] }
  0xbf   : > { %869 = vmatpush1.msra.mxu0 %v4167_v45 }
  0xc0   : > { %870 = vmatprep.subr.mxu0 %v4171_v46 }
  0xc1   : > { %871 = vmatpush1.msra.mxu0 %v4180_v48  ;;  %v499_v48 = vld [vmem:[%s4001_s10 + $0x8] sm:$0xff] }
  0xc2   : > { %872 = vmatprep.subr.mxu0 %v4184_v49 }
  0xc3   : > { %873 = vmatpush1.msra.mxu0 %v4193_v51 }
  0xc4   : > { %874 = vmatprep.subr.mxu0 %v4197_v52 }
  0xc5   : > { %875 = vmatpush1.msra.mxu0 %v4206_v54 }
  0xc6   : > { %876 = vmatprep.subr.mxu0 %v4210_v55 }
  0xc7   : > { %877 = vmatpush1.msra.mxu0 %v4221_v57  ;;  %v4414_v57 = vld [vmem:[%s5456_s4] ss:$0 sm:$0xff] }
  0xc8   : > { %3089 = vmatprep.subr.mxu0 %v5528_v12  ;;  %5700 = vst [vmem:[#allocation69_spill] sm:$0xff] %v4414_v57 }
 0x147   : > { %v575_v59 = vpop.f32.mrf.mxu0  ;;  %v654_v45 = vpop.f32.mrf.mxu1 }
 0x148   : > { %v730_v49 = vadd.f32 %v654_v45, %v498_v43  ;;  %v576_v12 = vadd.f32 %v4414_v57, %v575_v59  ;;  %v501_v43 = vld [vmem:[%s4001_s10 + $0x18] sm:$0xff] }
 0x149   : > { %v3053_v46 = vpop.f32.mrf.mxu0  ;;  %v656_v42 = vpop.f32.mrf.mxu1 }
 0x14a   : > { %v731_v51 = vadd.f32 %v656_v42, %v499_v48  ;;  %v2796_v40 = vmul.f32 -1.442695, %v730_v49  ;;  %v500_v46 = vld [vmem:[%s4001_s10 + $0x10] sm:$0xff] }
 0x14c   : > { %v2797_v52 = vmul.f32 -1.442695, %v731_v51  ;;  %3402 = vpow2.f32 %v2796_v40  ;;  %v584_v51 = vpop.permute.xlu0 %583 }
 0x14e   : > { %3404 = vpow2.f32 %v2797_v52 }
 0x14f   : > { %3406 = vtanh.f32 %v576_v12 }
 0x159   : > { %v3403_v55 = vpop.eup %3402 }
 0x15a   : > { %v737_v39 = vadd.f32 1.0, %v3403_v55 }
 0x15b   : > { %v3405_v54 = vpop.eup %3404 }
 0x15c   : > { %v743_v37 = vadd.f32 1.0, %v3405_v54  ;;  %3408 = vrcp.f32 %v737_v39  ;;  %v3407_v49 = vpop.eup %3406 }
 0x15d   : > { %v580_v52 = vsub.f32 %v4225_v58, %v3407_v49  ;;  %v586_v59 = vmul.f32 %v3407_v49, %v584_v51  ;;  %v5704_v58 = vld [vmem:[#allocation60_spill] sm:$0xff] }
 0x15e   : > { %3410 = vrcp.f32 %v743_v37  ;;  %v5701_v37 = vmov 0.0   ;;  %v5708_v49 = vld [vmem:[#allocation24_spill] sm:$0xff] }
 0x15f   : > { %v587_v54 = vadd.f32 %v586_v59, %v580_v52  ;;  %v5709_v51 = vld [vmem:[#allocation64_spill] sm:$0xff]  ;;  %v5710_v52 = vld [vmem:[#allocation25_spill] sm:$0xff] }
 0x160   : > { %v5711_v59 = vld [vmem:[#allocation65_spill] sm:$0xff] }
 0x168   : > { %v725_v36 = vpop.f32.mrf.mxu0 }
 0x169   : > { %v732_v42 = vadd.f32 %v725_v36, %v500_v46  ;;  %v3409_v12 = vpop.eup %3408 }
 0x16a   : > { %v727_v45 = vpop.f32.mrf.mxu0 }
 0x16b   : > { %v2798_v40 = vmul.f32 -1.442695, %v732_v42  ;;  %v733_v48 = vadd.f32 %v727_v45, %v501_v43  ;;  %v3411_v57 = vpop.eup %3410  ;;  %v5706_v45 = vld [vmem:[#allocation62_spill] sm:$0xff] }
 0x16c   : > { %v753_v36 = vmul.f32 %v3411_v57, %v587_v54  ;;  %v5703_v57 = vld [vmem:[#allocation59_spill] sm:$0xff] }
 0x16d   : > { %3412 = vpow2.f32 %v2798_v40  ;;  %v5714_v54 = vld [vmem:[#allocation27_spill] sm:$0xff] }
 0x16e   : > { %3414 = vtanh.f32 %v733_v48  ;;  %v5707_v48 = vld [vmem:[#allocation63_spill] sm:$0xff] }
 0x17a   : > { %v3413_v55 = vpop.eup %3412 }
 0x17b   : > { %v3415_v34 = vpop.eup %3414  ;;  %v749_v60 = vadd.f32 1.0, %v3413_v55  ;;  %v5713_v55 = vld [vmem:[#allocation66_spill] sm:$0xff] }
 0x17c   : > { %v754_v46 = vmul.f32 %v3415_v34, %v3409_v12  ;;  %v5702_v34 = vld [vmem:[#allocation58_spill] sm:$0xff] }
 0x17d   : > { %3416 = vrcp.f32 %v749_v60  ;;  %v5705_v60 = vld [vmem:[#allocation61_spill] sm:$0xff]  ;;  %v5712_v12 = vld [vmem:[#allocation26_spill] sm:$0xff] }
 0x17e   : > { %v4420_v39 = vadd.f32 %v754_v46, %v753_v36  ;;  %v5715_v36 = vld [vmem:[#allocation67_spill] sm:$0xff]  ;;  %v5716_v46 = vld [vmem:[#allocation28_spill] sm:$0xff] }
 0x180   : > { %3418 = vtanh.f32 %v4420_v39  ;;  %759 = vst [vmem:[%s4016_s7] sm:$0xff] %v4420_v39  ;;  %3087 = vmatmul.mubr.f32.vlgmr.msra.gmra.mxu1 %v4420_v39 }
 0x181   : > { %918 = vmatpush1.msra.mxu1 %v4236_v61  ;;  %981 = vmatprep.mubr.f32.mxu1 %v5701_v37 }
 0x182   : > { %919 = vmatprep.subr.mxu1 %v4240_v62 }
 0x183   : > { %920 = vmatpush1.msra.mxu1 %v4244_v0 }
 0x184   : > { %921 = vmatprep.subr.mxu1 %v4248_v1 }
 0x185   : > { %922 = vmatpush1.msra.mxu1 %v4252_v3 }
 0x186   : > { %923 = vmatprep.subr.mxu1 %v5702_v34 }
 0x187   : > { %924 = vmatpush1.msra.mxu1 %v5703_v57 }
 0x188   : > { %925 = vmatprep.subr.mxu1 %v5704_v58 }
 0x189   : > { %926 = vmatpush1.msra.mxu1 %v4268_v8 }
 0x18a   : > { %927 = vmatprep.subr.mxu1 %v4271_v63  ;;  %v3417_v43 = vpop.eup %3416 }
 0x18b   : > { %928 = vmatpush1.msra.mxu1 %v5705_v60 }
 0x18c   : > { %929 = vmatprep.subr.mxu1 %v4280_v4 }
 0x18d   : > { %v3419_v42 = vpop.eup %3418  ;;  %930 = vmatpush1.msra.mxu1 %v5706_v45 }
 0x18e   : > { %931 = vmatprep.subr.mxu1 %v4287_v14  ;;  %v757_v40 = vmul.f32 %v3419_v42, %v3417_v43  ;;  %v5717_v43 = vld [vmem:[#allocation29_spill] sm:$0xff]  ;;  %v5718_v42 = vld [vmem:[#allocation31_spill] sm:$0xff] }
 0x18f   : > { %932 = vmatpush1.msra.mxu1 %v4292_v6 }
 0x190   : > { %933 = vmatprep.subr.mxu1 %v5707_v48  ;;  %758 = vst [vmem:[%s4014_s16] sm:$0xff] %v757_v40  ;;  %911 = vmatmul.mubr.f32.vlgmr.msra.gmra.mxu0 %v757_v40 }
 0x191   : > { %934 = vmatpush1.msra.mxu1 %v4300_v2  ;;  %3090 = vmatpush3.msra.mxu0 %v5708_v49 }
 0x192   : > { %935 = vmatprep.subr.mxu1 %v5709_v51  ;;  %3091 = vmatprep.subr.mxu0 %v5701_v37 }
 0x193   : > { %936 = vmatpush1.msra.mxu1 %v4307_v20  ;;  %3092 = vmatpush3.msra.mxu0 %v5710_v52 }
 0x194   : > { %937 = vmatprep.subr.mxu1 %v5711_v59  ;;  %3093 = vmatprep.subr.mxu0 %v5701_v37 }
 0x195   : > { %938 = vmatpush1.msra.mxu1 %v4315_v7  ;;  %3094 = vmatpush3.msra.mxu0 %v5712_v12 }
 0x196   : > { %939 = vmatprep.subr.mxu1 %v5713_v55  ;;  %3095 = vmatprep.subr.mxu0 %v5701_v37 }
 0x197   : > { %940 = vmatpush1.msra.mxu1 %v4323_v17  ;;  %3096 = vmatpush3.msra.mxu0 %v5714_v54 }
 0x198   : > { %941 = vmatprep.subr.mxu1 %v5715_v36  ;;  %3097 = vmatprep.subr.mxu0 %v5701_v37 }
 0x199   : > { %942 = vmatpush1.msra.mxu1 %v4331_v10  ;;  %3098 = vmatpush3.msra.mxu0 %v5716_v46 }
 0x19a   : > { %943 = vmatprep.subr.mxu1 %v4335_v29  ;;  %3099 = vmatprep.subr.mxu0 %v5701_v37  ;;  %v5719_v29 = vld [vmem:[#allocation34_spill] sm:$0xff] }
 0x19b   : > { %944 = vmatpush1.msra.mxu1 %v4339_v5  ;;  %3100 = vmatpush3.msra.mxu0 %v5717_v43  ;;  %v5720_v43 = vld [vmem:[#allocation37_spill] sm:$0xff] }
 0x19c   : > { %945 = vmatprep.subr.mxu1 %v4343_v32  ;;  %3101 = vmatprep.subr.mxu0 %v5701_v37 }
 0x19d   : > { %946 = vmatpush1.msra.mxu1 %v4347_v23  ;;  %3102 = vmatpush3.msra.mxu0 %v5718_v42 }
 0x19e   : > { %947 = vmatprep.subr.mxu1 %v4351_v35  ;;  %3103 = vmatprep.subr.mxu0 %v5701_v37 }
 0x19f   : > { %948 = vmatpush1.msra.mxu1 %v4355_v26  ;;  %3104 = vmatpush3.msra.mxu0 %v5719_v29 }
 0x1a0   : > { %982 = vmatmul.mubr.f32.vlgmr.msra.gmra.mxu1 %v757_v40  ;;  %3105 = vmatprep.subr.mxu0 %v5701_v37  ;;  %v5733_v40 = vld [vmem:[#allocation50_spill] sm:$0xff] }
 0x1a1   : > { %3106 = vmatpush3.msra.mxu0 %v5720_v43  ;;  %1106 = vmatprep.subr.mxu1 %v4019_v9  ;;  %v5721_v9 = vld [vmem:[#allocation57_spill] sm:$0xff] }
 0x1a2   : > { %3107 = vmatprep.subr.mxu0 %v5701_v37  ;;  %1107 = vmatpush1.msra.mxu1 %v4026_v11  ;;  %v5722_v11 = vld [vmem:[#allocation36_spill] sm:$0xff] }
 0x1a3   : > { %3108 = vmatpush3.msra.mxu0 %v4139_v38  ;;  %1108 = vmatprep.subr.mxu1 %v4030_v13  ;;  %v5723_v13 = vld [vmem:[#allocation38_spill] sm:$0xff] }
 0x1a4   : > { %3109 = vmatprep.subr.mxu0 %v5701_v37  ;;  %1109 = vmatpush1.msra.mxu1 %v4037_v15  ;;  %v5724_v15 = vld [vmem:[#allocation39_spill] sm:$0xff] }
 0x1a5   : > { %3110 = vmatpush3.msra.mxu0 %v4152_v41  ;;  %1110 = vmatprep.subr.mxu1 %v4041_v16  ;;  %v5725_v16 = vld [vmem:[#allocation40_spill] sm:$0xff] }
 0x1a6   : > { %3111 = vmatprep.subr.mxu0 %v5701_v37  ;;  %1111 = vmatpush1.msra.mxu1 %v4050_v18  ;;  %v5726_v18 = vld [vmem:[#allocation41_spill] sm:$0xff] }
 0x1a7   : > { %3112 = vmatpush3.msra.mxu0 %v4165_v44  ;;  %1112 = vmatprep.subr.mxu1 %v4054_v19  ;;  %v5727_v19 = vld [vmem:[#allocation42_spill] sm:$0xff] }
 0x1a8   : > { %3113 = vmatprep.subr.mxu0 %v5701_v37  ;;  %1113 = vmatpush1.msra.mxu1 %v4063_v21  ;;  %v5728_v21 = vld [vmem:[#allocation43_spill] sm:$0xff] }
 0x1a9   : > { %3114 = vmatpush3.msra.mxu0 %v4178_v47  ;;  %1114 = vmatprep.subr.mxu1 %v4067_v22  ;;  %v5729_v22 = vld [vmem:[#allocation44_spill] sm:$0xff] }
 0x1aa   : > { %3115 = vmatprep.subr.mxu0 %v5701_v37  ;;  %1115 = vmatpush1.msra.mxu1 %v4076_v24  ;;  %v5730_v24 = vld [vmem:[#allocation45_spill] sm:$0xff] }
 0x1ab   : > { %3116 = vmatpush3.msra.mxu0 %v4191_v50  ;;  %1116 = vmatprep.subr.mxu1 %v4080_v25  ;;  %v5731_v25 = vld [vmem:[#allocation47_spill] sm:$0xff] }
 0x1ac   : > { %3117 = vmatprep.subr.mxu0 %v5701_v37  ;;  %1117 = vmatpush1.msra.mxu1 %v4089_v27  ;;  %v5732_v27 = vld [vmem:[#allocation48_spill] sm:$0xff] }
 0x1ad   : > { %3118 = vmatpush3.msra.mxu0 %v4204_v53  ;;  %1118 = vmatprep.subr.mxu1 %v4093_v28 }
 0x1ae   : > { %3119 = vmatprep.subr.mxu0 %v5701_v37  ;;  %1119 = vmatpush1.msra.mxu1 %v4102_v30 }
 0x1af   : > { %3120 = vmatpush3.msra.mxu0 %v4217_v56  ;;  %1120 = vmatprep.subr.mxu1 %v4106_v31  ;;  %v2801_v31 = vld [vmem:[%s4001_s10 + $0x30] sm:$0xff] }
 0x1b0   : > { %3121 = vmatprep.mubr.msk.f32.mxu0 %vm3832_vm0, %v5701_v37  ;;  %1121 = vmatpush1.msra.mxu1 %v4115_v33 }
 0x1b1   : > { %1177 = vmatprep.subr.mxu0 %v5721_v9  ;;  %1122 = vmatprep.subr.mxu1 %v5722_v11 }
 0x1b2   : > { %1123 = vmatpush1.msra.mxu1 %v5723_v13  ;;  %1170 = vmatprep.mubr.f32.mxu1 %v5701_v37  ;;  %v2800_v13 = vld [vmem:[%s4001_s10 + $0x28] sm:$0xff] }
 0x1b3   : > { %1124 = vmatprep.subr.mxu1 %v5724_v15 }
 0x1b4   : > { %1125 = vmatpush1.msra.mxu1 %v5725_v16  ;;  %v5734_v16 = vld [vmem:[#allocation51_spill] sm:$0xff] }
 0x1b5   : > { %1126 = vmatprep.subr.mxu1 %v5726_v18  ;;  %v5735_v18 = vld [vmem:[#allocation53_spill] sm:$0xff] }
 0x1b6   : > { %1127 = vmatpush1.msra.mxu1 %v5727_v19  ;;  %v5736_v19 = vld [vmem:[#allocation54_spill] sm:$0xff] }
 0x1b7   : > { %1128 = vmatprep.subr.mxu1 %v5728_v21  ;;  %v5737_v21 = vld [vmem:[#allocation56_spill] sm:$0xff] }
 0x1b8   : > { %1129 = vmatpush1.msra.mxu1 %v5729_v22  ;;  %v2813_v22 = vld [vmem:[%s4008_s19 + $0x10] sm:$0xff] }
 0x1b9   : > { %1130 = vmatprep.subr.mxu1 %v5730_v24  ;;  %1101 = vperm.xlu1 %3401, %v2813_v22   ;;  %v2823_v24 = vld [vmem:[%s4008_s19 + $0x18] sm:$0xff]  ;;  %v5738_v22 = vld [vmem:[#allocation69_spill] sm:$0xff] }
 0x1ba   : > { %1131 = vmatpush1.msra.mxu1 %v5731_v25  ;;  %v2843_v25 = vld [vmem:[%s4008_s19 + $0x28] sm:$0xff] }
 0x1bb   : > { %1132 = vmatprep.subr.mxu1 %v5732_v27 }
 0x1bc   : > { %1133 = vmatpush1.msra.mxu1 %v5733_v40  ;;  %v2863_v40 = vld [vmem:[%s4008_s19 + $0x38] sm:$0xff] }
 0x1bd   : > { %1134 = vmatprep.subr.mxu1 %v5734_v16  ;;  %1361 = vperm.xlu1 %3401, %v2823_v24  }
 0x1be   : > { %1135 = vmatpush1.msra.mxu1 %v5735_v18  ;;  %v2799_v18 = vld [vmem:[%s4001_s10 + $0x20] sm:$0xff] }
 0x1bf   : > { %1136 = vmatprep.subr.mxu1 %v5736_v19 }
 0x1c0   : > { %1137 = vmatpush1.msra.mxu1 %v5737_v21 }
 0x1c1   : > { %3124 = vmatprep.subr.mxu1 %v5701_v37  ;;  %1881 = vperm.xlu1 %3401, %v2843_v25  }
 0x1c5   : > { %2401 = vperm.xlu1 %3401, %v2863_v40   ;;  %v2802_v40 = vld [vmem:[%s4001_s10 + $0x38] sm:$0xff] }
 0x240   : > { %v833_v27 = vpop.f32.mrf.mxu1 }
 0x241   : > { %v834_v24 = vadd.f32 %v5738_v22, %v833_v27 }
 0x242   : > { %v3088_v16 = vpop.f32.mrf.mxu1 }
 0x250   : > { %v912_v15 = vpop.f32.mrf.mxu0 }
 0x251   : > { %v988_v19 = vadd.f32 %v2799_v18, %v912_v15 }
 0x252   : > { %v914_v11 = vpop.f32.mrf.mxu0 }
 0x253   : > { %v2804_v21 = vmul.f32 -1.442695, %v988_v19  ;;  %v989_v9 = vadd.f32 %v2800_v13, %v914_v11 }
 0x255   : > { %3420 = vpow2.f32 %v2804_v21  ;;  %v2805_v33 = vmul.f32 -1.442695, %v989_v9  ;;  %v842_v9 = vpop.permute.xlu0 %841 }
 0x257   : > { %3422 = vpow2.f32 %v2805_v33 }
 0x258   : > { %3424 = vtanh.f32 %v834_v24 }
 0x260   : > { %v983_v25 = vpop.f32.mrf.mxu1 }
 0x261   : > { %v990_v56 = vadd.f32 %v2801_v31, %v983_v25 }
 0x262   : > { %v3421_v30 = vpop.eup %3420  ;;  %v985_v16 = vpop.f32.mrf.mxu1 }
 0x263   : > { %v995_v28 = vadd.f32 1.0, %v3421_v30  ;;  %v2806_v53 = vmul.f32 -1.442695, %v990_v56  ;;  %v991_v47 = vadd.f32 %v2802_v40, %v985_v16  ;;  %v4629_v40 = vld [vmem:[#allocation8 + $0x160] sm:$0xff]  ;;  %v4633_v16 = vld [vmem:[#allocation8 + $0x148] sm:$0xff] }
 0x264   : > { %v3423_v50 = vpop.eup %3422  ;;  %5743 = vst [vmem:[#allocation58_spill] sm:$0xff] %v4633_v16 }
 0x265   : > { %3426 = vrcp.f32 %v995_v28  ;;  %v1001_v15 = vadd.f32 1.0, %v3423_v50  ;;  %v3425_v33 = vpop.eup %3424 }
 0x266   : > { %3428 = vpow2.f32 %v2806_v53  ;;  %v838_v11 = vsub.f32 %v4420_v39, %v3425_v33  ;;  %v844_v13 = vmul.f32 %v3425_v33, %v842_v9  ;;  %v5739_v53 = vld [vmem:[#allocation68_spill] sm:$0xff]  ;;  %v5740_v39 = vld [vmem:[#allocation29_spill] sm:$0xff]  ;;  %v5746_v9 = vld [vmem:[#allocation30_spill] sm:$0xff] }
 0x267   : > { %3430 = vrcp.f32 %v1001_v15  ;;  %v4637_v15 = vld [vmem:[#allocation8 + $0x140] sm:$0xff] }
 0x268   : > { %3432 = vtanh.f32 %v991_v47  ;;  %v845_v19 = vadd.f32 %v844_v13, %v838_v11  ;;  %5744 = vst [vmem:[#allocation59_spill] sm:$0xff] %v4637_v15  ;;  %v5745_v33 = vld [vmem:[#allocation52_spill] sm:$0xff]  ;;  %v5748_v13 = vld [vmem:[#allocation55_spill] sm:$0xff] }
 0x269   : > { %v5747_v11 = vld [vmem:[#allocation32_spill] sm:$0xff] }
 0x272   : > { %v3427_v18 = vpop.eup %3426 }
 0x273   : > { %v3429_v31 = vpop.eup %3428 }
 0x274   : > { %v3431_v21 = vpop.eup %3430  ;;  %v1007_v30 = vadd.f32 1.0, %v3429_v31  ;;  %v5750_v31 = vld [vmem:[#allocation35_spill] sm:$0xff] }
 0x275   : > { %v3433_v27 = vpop.eup %3432  ;;  %v1011_v56 = vmul.f32 %v3431_v21, %v845_v19  ;;  %v5751_v19 = vld [vmem:[#allocation57_spill] sm:$0xff]  ;;  %v5752_v21 = vld [vmem:[#allocation36_spill] sm:$0xff] }
 0x276   : > { %v1012_v24 = vmul.f32 %v3433_v27, %v3427_v18  ;;  %3434 = vrcp.f32 %v1007_v30  ;;  %v5749_v18 = vld [vmem:[#allocation33_spill] sm:$0xff]  ;;  %v5753_v27 = vld [vmem:[#allocation38_spill] sm:$0xff]  ;;  %v5754_v30 = vld [vmem:[#allocation39_spill] sm:$0xff] }
 0x278   : > { %v4537_v25 = vadd.f32 %v1012_v24, %v1011_v56  ;;  %v5755_v56 = vld [vmem:[#allocation40_spill] sm:$0xff]  ;;  %v5756_v24 = vld [vmem:[#allocation41_spill] sm:$0xff] }
 0x27a   : > { %3436 = vtanh.f32 %v4537_v25  ;;  %2808 = vst [vmem:[%s4016_s7 + $0x8] sm:$0xff] %v4537_v25  ;;  %3122 = vmatmul.mubr.f32.vlgmr.msra.gmra.mxu0 %v4537_v25 }
 0x27b   : > { %1178 = vmatpush1.msra.mxu0 %v4236_v61  ;;  %1241 = vmatprep.mubr.f32.mxu0 %v5701_v37 }
 0x27c   : > { %1179 = vmatprep.subr.mxu0 %v4240_v62 }
 0x27d   : > { %1180 = vmatpush1.msra.mxu0 %v4244_v0 }
 0x27e   : > { %1181 = vmatprep.subr.mxu0 %v4248_v1 }
 0x27f   : > { %1182 = vmatpush1.msra.mxu0 %v4252_v3 }
 0x280   : > { %1183 = vmatprep.subr.mxu0 %v5702_v34 }
 0x281   : > { %1184 = vmatpush1.msra.mxu0 %v5703_v57 }
 0x282   : > { %1185 = vmatprep.subr.mxu0 %v5704_v58 }
 0x283   : > { %1186 = vmatpush1.msra.mxu0 %v4268_v8  ;;  %v3435_v28 = vpop.eup %3434 }
 0x284   : > { %1187 = vmatprep.subr.mxu0 %v4271_v63 }
 0x285   : > { %1188 = vmatpush1.msra.mxu0 %v5705_v60 }
 0x286   : > { %1189 = vmatprep.subr.mxu0 %v4280_v4 }
 0x287   : > { %v3437_v47 = vpop.eup %3436  ;;  %1190 = vmatpush1.msra.mxu0 %v5706_v45 }
 0x288   : > { %1191 = vmatprep.subr.mxu0 %v4287_v14  ;;  %v1015_v50 = vmul.f32 %v3437_v47, %v3435_v28  ;;  %v5757_v28 = vld [vmem:[#allocation42_spill] sm:$0xff]  ;;  %v5758_v47 = vld [vmem:[#allocation43_spill] sm:$0xff] }
 0x289   : > { %1192 = vmatpush1.msra.mxu0 %v4292_v6 }
 0x28a   : > { %1193 = vmatprep.subr.mxu0 %v5707_v48  ;;  %2807 = vst [vmem:[%s4014_s16 + $0x8] sm:$0xff] %v1015_v50  ;;  %1171 = vmatmul.mubr.f32.vlgmr.msra.gmra.mxu1 %v1015_v50 }
 0x28b   : > { %1194 = vmatpush1.msra.mxu0 %v4300_v2  ;;  %3125 = vmatpush3.msra.mxu1 %v5708_v49  ;;  %v4593_v49 = vld [vmem:[#allocation8 + $0x1e8] sm:$0xff] }
 0x28c   : > { %1195 = vmatprep.subr.mxu0 %v5709_v51  ;;  %3126 = vmatprep.subr.mxu1 %v5701_v37 }
 0x28d   : > { %1196 = vmatpush1.msra.mxu0 %v4307_v20  ;;  %3127 = vmatpush3.msra.mxu1 %v5710_v52  ;;  %v4597_v52 = vld [vmem:[#allocation8 + $0x1e0] sm:$0xff] }
 0x28e   : > { %1197 = vmatprep.subr.mxu0 %v5711_v59  ;;  %3128 = vmatprep.subr.mxu1 %v5701_v37 }
 0x28f   : > { %1198 = vmatpush1.msra.mxu0 %v4315_v7  ;;  %3129 = vmatpush3.msra.mxu1 %v5712_v12  ;;  %v4601_v12 = vld [vmem:[#allocation8 + $0x1c8] sm:$0xff] }
 0x290   : > { %1199 = vmatprep.subr.mxu0 %v5713_v55  ;;  %3130 = vmatprep.subr.mxu1 %v5701_v37 }
 0x291   : > { %1200 = vmatpush1.msra.mxu0 %v4323_v17  ;;  %3131 = vmatpush3.msra.mxu1 %v5714_v54  ;;  %v4609_v54 = vld [vmem:[#allocation8 + $0x1a8] sm:$0xff] }
 0x292   : > { %1201 = vmatprep.subr.mxu0 %v5715_v36  ;;  %3132 = vmatprep.subr.mxu1 %v5701_v37 }
 0x293   : > { %1202 = vmatpush1.msra.mxu0 %v4331_v10  ;;  %3133 = vmatpush3.msra.mxu1 %v5716_v46  ;;  %v4613_v46 = vld [vmem:[#allocation8 + $0x1a0] sm:$0xff] }
 0x294   : > { %1203 = vmatprep.subr.mxu0 %v5739_v53  ;;  %3134 = vmatprep.subr.mxu1 %v5701_v37 }
 0x295   : > { %1204 = vmatpush1.msra.mxu0 %v4339_v5  ;;  %3135 = vmatpush3.msra.mxu1 %v5740_v39  ;;  %v5760_v39 = vld [vmem:[#allocation45_spill] sm:$0xff] }
 0x296   : > { %1205 = vmatprep.subr.mxu0 %v4343_v32  ;;  %3136 = vmatprep.subr.mxu1 %v5701_v37 }
 0x297   : > { %1206 = vmatpush1.msra.mxu0 %v4347_v23  ;;  %3137 = vmatpush3.msra.mxu1 %v5718_v42  ;;  %v4625_v42 = vld [vmem:[#allocation8 + $0x168] sm:$0xff] }
 0x298   : > { %1207 = vmatprep.subr.mxu0 %v4351_v35  ;;  %3138 = vmatprep.subr.mxu1 %v5701_v37 }
 0x299   : > { %1208 = vmatpush1.msra.mxu0 %v4355_v26  ;;  %3139 = vmatpush3.msra.mxu1 %v5719_v29  ;;  %v4605_v29 = vld [vmem:[#allocation8 + $0x1c0] sm:$0xff] }
 0x29a   : > { %1242 = vmatmul.mubr.f32.vlgmr.msra.gmra.mxu0 %v1015_v50  ;;  %3140 = vmatprep.subr.mxu1 %v5701_v37  ;;  %v5759_v50 = vld [vmem:[#allocation44_spill] sm:$0xff] }
 0x29b   : > { %3141 = vmatpush3.msra.mxu1 %v5720_v43  ;;  %1366 = vmatprep.subr.mxu0 %v4593_v49  ;;  %v4621_v43 = vld [vmem:[#allocation8 + $0x180] sm:$0xff] }
 0x29c   : > { %3142 = vmatprep.subr.mxu1 %v5701_v37  ;;  %1367 = vmatpush1.msra.mxu0 %v4597_v52 }
 0x29d   : > { %3143 = vmatpush3.msra.mxu1 %v4139_v38  ;;  %1368 = vmatprep.subr.mxu0 %v4601_v12  ;;  %v4617_v38 = vld [vmem:[#allocation8 + $0x188] sm:$0xff] }
 0x29e   : > { %3144 = vmatprep.subr.mxu1 %v5701_v37  ;;  %1369 = vmatpush1.msra.mxu0 %v4605_v29 }
 0x29f   : > { %3145 = vmatpush3.msra.mxu1 %v4152_v41  ;;  %1370 = vmatprep.subr.mxu0 %v4609_v54  ;;  %v5741_v41 = vld [vmem:[#allocation46_spill] sm:$0xff] }
 0x2a0   : > { %3146 = vmatprep.subr.mxu1 %v5701_v37  ;;  %1371 = vmatpush1.msra.mxu0 %v4613_v46 }
 0x2a1   : > { %3147 = vmatpush3.msra.mxu1 %v4165_v44  ;;  %1372 = vmatprep.subr.mxu0 %v4617_v38  ;;  %v5742_v44 = vld [vmem:[#allocation49_spill] sm:$0xff] }
 0x2a2   : > { %3148 = vmatprep.subr.mxu1 %v5701_v37  ;;  %1373 = vmatpush1.msra.mxu0 %v4621_v43 }
 0x2a3   : > { %3149 = vmatpush3.msra.mxu1 %v5741_v41  ;;  %1374 = vmatprep.subr.mxu0 %v4625_v42  ;;  %v5761_v41 = vld [vmem:[#allocation47_spill] sm:$0xff] }
 0x2a4   : > { %3150 = vmatprep.subr.mxu1 %v5701_v37  ;;  %1375 = vmatpush1.msra.mxu0 %v4629_v40 }
 0x2a5   : > { %3151 = vmatpush3.msra.mxu1 %v5742_v44  ;;  %1376 = vmatprep.subr.mxu0 %v4633_v16  ;;  %v5762_v44 = vld [vmem:[#allocation48_spill] sm:$0xff] }
 0x2a6   : > { %3152 = vmatprep.subr.mxu1 %v5701_v37  ;;  %1377 = vmatpush1.msra.mxu0 %v4637_v15 }
 0x2a7   : > { %3153 = vmatpush3.msra.mxu1 %v5745_v33  ;;  %1378 = vmatprep.subr.mxu0 %v5746_v9  ;;  %v5763_v33 = vld [vmem:[#allocation50_spill] sm:$0xff]  ;;  %v5764_v9 = vld [vmem:[#allocation51_spill] sm:$0xff] }
 0x2a8   : > { %3154 = vmatprep.subr.mxu1 %v5701_v37  ;;  %1379 = vmatpush1.msra.mxu0 %v5747_v11  ;;  %v5765_v11 = vld [vmem:[#allocation53_spill] sm:$0xff] }
 0x2a9   : > { %3155 = vmatpush3.msra.mxu1 %v5748_v13  ;;  %1380 = vmatprep.subr.mxu0 %v5749_v18  ;;  %v5766_v13 = vld [vmem:[#allocation54_spill] sm:$0xff]  ;;  %v5767_v18 = vld [vmem:[#allocation56_spill] sm:$0xff] }
 0x2aa   : > { %3156 = vmatprep.mubr.msk.f32.mxu1 %vm3832_vm0, %v5701_v37  ;;  %1381 = vmatpush1.msra.mxu0 %v5750_v31 }
 0x2ab   : > { %1437 = vmatprep.subr.mxu1 %v5751_v19  ;;  %1382 = vmatprep.subr.mxu0 %v5752_v21  ;;  %v2809_v21 = vld [vmem:[%s4001_s10 + $0x40] sm:$0xff] }
 0x2ac   : > { %1383 = vmatpush1.msra.mxu0 %v5753_v27  ;;  %1430 = vmatprep.mubr.f32.mxu0 %v5701_v37 }
 0x2ad   : > { %1384 = vmatprep.subr.mxu0 %v5754_v30  ;;  %v2810_v30 = vld [vmem:[%s4001_s10 + $0x48] sm:$0xff] }
 0x2ae   : > { %1385 = vmatpush1.msra.mxu0 %v5755_v56 }
 0x2af   : > { %1386 = vmatprep.subr.mxu0 %v5756_v24 }
 0x2b0   : > { %1387 = vmatpush1.msra.mxu0 %v5757_v28 }
 0x2b1   : > { %1388 = vmatprep.subr.mxu0 %v5758_v47 }
 0x2b2   : > { %1389 = vmatpush1.msra.mxu0 %v5759_v50 }
 0x2b3   : > { %1390 = vmatprep.subr.mxu0 %v5760_v39 }
 0x2b4   : > { %1391 = vmatpush1.msra.mxu0 %v5761_v41  ;;  %v2811_v41 = vld [vmem:[%s4001_s10 + $0x50] sm:$0xff] }
 0x2b5   : > { %1392 = vmatprep.subr.mxu0 %v5762_v44 }
 0x2b6   : > { %1393 = vmatpush1.msra.mxu0 %v5763_v33 }
 0x2b7   : > { %1394 = vmatprep.subr.mxu0 %v5764_v9  ;;  %v2812_v9 = vld [vmem:[%s4001_s10 + $0x58] sm:$0xff] }
 0x2b8   : > { %1395 = vmatpush1.msra.mxu0 %v5765_v11 }
 0x2b9   : > { %1396 = vmatprep.subr.mxu0 %v5766_v13 }
 0x2ba   : > { %1397 = vmatpush1.msra.mxu0 %v5767_v18 }
 0x2bb   : > { %3159 = vmatprep.subr.mxu0 %v5701_v37 }
 0x33a   : > { %v1093_v31 = vpop.f32.mrf.mxu0 }
 0x33b   : > { %v1094_v39 = vadd.f32 %v5738_v22, %v1093_v31 }
 0x33c   : > { %v3123_v19 = vpop.f32.mrf.mxu0 }
 0x34a   : > { %v1172_v27 = vpop.f32.mrf.mxu1 }
 0x34b   : > { %v1248_v56 = vadd.f32 %v2809_v21, %v1172_v27 }
 0x34c   : > { %v1174_v24 = vpop.f32.mrf.mxu1 }
 0x34d   : > { %v2814_v28 = vmul.f32 -1.442695, %v1248_v56  ;;  %v1249_v47 = vadd.f32 %v2810_v30, %v1174_v24  ;;  %v1102_v30 = vpop.permute.xlu1 %1101 }
 0x34f   : > { %3438 = vpow2.f32 %v2814_v28  ;;  %v2815_v50 = vmul.f32 -1.442695, %v1249_v47 }
 0x351   : > { %3440 = vpow2.f32 %v2815_v50 }
 0x352   : > { %3442 = vtanh.f32 %v1094_v39 }
 0x35a   : > { %v1243_v44 = vpop.f32.mrf.mxu0 }
 0x35b   : > { %v1250_v33 = vadd.f32 %v2811_v41, %v1243_v44 }
 0x35c   : > { %v3439_v11 = vpop.eup %3438  ;;  %v1245_v13 = vpop.f32.mrf.mxu0 }
 0x35d   : > { %v1255_v18 = vadd.f32 1.0, %v3439_v11  ;;  %v2816_v19 = vmul.f32 -1.442695, %v1250_v33  ;;  %v1251_v16 = vadd.f32 %v2812_v9, %v1245_v13  ;;  %v4878_v11 = vld [vmem:[#allocation8 + $0x68] sm:$0xff]  ;;  %v4881_v13 = vld [vmem:[#allocation8 + $0x60] sm:$0xff] }
 0x35e   : > { %v3441_v15 = vpop.eup %3440  ;;  %5789 = vst [vmem:[#allocation46_spill] sm:$0xff] %v4878_v11  ;;  %5790 = vst [vmem:[#allocation49_spill] sm:$0xff] %v4881_v13 }
 0x35f   : > { %3444 = vrcp.f32 %v1255_v18  ;;  %v1261_v21 = vadd.f32 1.0, %v3441_v15  ;;  %v3443_v27 = vpop.eup %3442  ;;  %v4875_v15 = vld [vmem:[#allocation8 + $0x80] sm:$0xff]  ;;  %v4884_v18 = vld [vmem:[#allocation8 + $0x48] sm:$0xff] }
 0x360   : > { %3446 = vpow2.f32 %v2816_v19  ;;  %v1098_v31 = vsub.f32 %v4537_v25, %v3443_v27  ;;  %v1104_v56 = vmul.f32 %v3443_v27, %v1102_v30  ;;  %v4866_v25 = vld [vmem:[#allocation8 + $0xa8] sm:$0xff]  ;;  %5788 = vst [vmem:[#allocation29_spill] sm:$0xff] %v4875_v15  ;;  %5791 = vst [vmem:[#allocation52_spill] sm:$0xff] %v4884_v18  ;;  %v4887_v19 = vld [vmem:[#allocation8 + $0x40] sm:$0xff] }
 0x361   : > { %3448 = vrcp.f32 %v1261_v21  ;;  %5785 = vst [vmem:[#allocation37_spill] sm:$0xff] %v4866_v25  ;;  %5792 = vst [vmem:[#allocation30_spill] sm:$0xff] %v4887_v19  ;;  %v4890_v21 = vld [vmem:[#allocation8 + $0x28] sm:$0xff]  ;;  %v4893_v27 = vld [vmem:[#allocation8 + $0x20] sm:$0xff] }
 0x362   : > { %3450 = vtanh.f32 %v1251_v16  ;;  %v1105_v47 = vadd.f32 %v1104_v56, %v1098_v31  ;;  %v4872_v16 = vld [vmem:[#allocation8 + $0x88] sm:$0xff]  ;;  %5793 = vst [vmem:[#allocation32_spill] sm:$0xff] %v4890_v21  ;;  %5794 = vst [vmem:[#allocation55_spill] sm:$0xff] %v4893_v27  ;;  %v4899_v31 = vld [vmem:[#allocation8] sm:$0xff] }
 0x363   : > { %5787 = vst [vmem:[#allocation68_spill] sm:$0xff] %v4872_v16  ;;  %v4896_v30 = vld [vmem:[#allocation8 + $0x8] sm:$0xff]  ;;  %5796 = vst [vmem:[#allocation35_spill] sm:$0xff] %v4899_v31 }
 0x364   : > { %5795 = vst [vmem:[#allocation33_spill] sm:$0xff] %v4896_v30 }
 0x36c   : > { %v3445_v24 = vpop.eup %3444 }
 0x36d   : > { %v3447_v28 = vpop.eup %3446 }
 0x36e   : > { %v3449_v50 = vpop.eup %3448  ;;  %v1267_v41 = vadd.f32 1.0, %v3447_v28  ;;  %v2819_v28 = vld [vmem:[%s4001_s10 + $0x60] sm:$0xff] }
 0x36f   : > { %v3451_v39 = vpop.eup %3450  ;;  %v1271_v44 = vmul.f32 %v3449_v50, %v1105_v47  ;;  %v2820_v50 = vld [vmem:[%s4001_s10 + $0x68] sm:$0xff] }
 0x370   : > { %v1272_v33 = vmul.f32 %v3451_v39, %v3445_v24  ;;  %3452 = vrcp.f32 %v1267_v41 }
 0x372   : > { %v4674_v9 = vadd.f32 %v1272_v33, %v1271_v44 }
 0x374   : > { %3454 = vtanh.f32 %v4674_v9  ;;  %2818 = vst [vmem:[%s4016_s7 + $0x10] sm:$0xff] %v4674_v9  ;;  %3157 = vmatmul.mubr.f32.vlgmr.msra.gmra.mxu1 %v4674_v9 }
 0x375   : > { %1438 = vmatpush1.msra.mxu1 %v4236_v61  ;;  %1501 = vmatprep.mubr.f32.mxu1 %v5701_v37 }
 0x376   : > { %1439 = vmatprep.subr.mxu1 %v4240_v62 }
 0x377   : > { %1440 = vmatpush1.msra.mxu1 %v4244_v0 }
 0x378   : > { %1441 = vmatprep.subr.mxu1 %v4248_v1  ;;  %v4702_v1 = vld [vmem:[%s5455_s3 + $0x78] sm:$0xff] }
 0x379   : > { %1442 = vmatpush1.msra.mxu1 %v4252_v3  ;;  %v4720_v3 = vld [vmem:[%s5455_s3 + $0x68] sm:$0xff] }
 0x37a   : > { %1443 = vmatprep.subr.mxu1 %v5702_v34  ;;  %v4829_v34 = vld [vmem:[#allocation8 + $0x128] sm:$0xff] }
 0x37b   : > { %1444 = vmatpush1.msra.mxu1 %v5703_v57  ;;  %5775 = vst [vmem:[#allocation64_spill] sm:$0xff] %v4829_v34  ;;  %v4833_v57 = vld [vmem:[#allocation8 + $0x120] sm:$0xff] }
 0x37c   : > { %1445 = vmatprep.subr.mxu1 %v5704_v58  ;;  %5776 = vst [vmem:[#allocation25_spill] sm:$0xff] %v4833_v57  ;;  %v4839_v58 = vld [vmem:[%s5455_s3] sm:$0xff] }
 0x37d   : > { %1446 = vmatpush1.msra.mxu1 %v4268_v8  ;;  %v3453_v61 = vpop.eup %3452  ;;  %v4808_v8 = vld [vmem:[%s5455_s3 + $0x18] sm:$0xff]  ;;  %5777 = vst [vmem:[#allocation65_spill] sm:$0xff] %v4839_v58 }
 0x37e   : > { %1447 = vmatprep.subr.mxu1 %v4271_v63  ;;  %5770 = vst [vmem:[#allocation62_spill] sm:$0xff] %v4808_v8  ;;  %v4817_v63 = vld [vmem:[%s5455_s3 + $0x10] sm:$0xff] }
 0x37f   : > { %1448 = vmatpush1.msra.mxu1 %v5705_v60  ;;  %5771 = vst [vmem:[#allocation63_spill] sm:$0xff] %v4817_v63  ;;  %v4842_v60 = vld [vmem:[#allocation8 + $0x108] sm:$0xff] }
 0x380   : > { %1449 = vmatprep.subr.mxu1 %v4280_v4  ;;  %v4738_v4 = vld [vmem:[%s5455_s3 + $0x58] sm:$0xff]  ;;  %5778 = vst [vmem:[#allocation26_spill] sm:$0xff] %v4842_v60 }
 0x381   : > { %v3455_v62 = vpop.eup %3454  ;;  %1450 = vmatpush1.msra.mxu1 %v5706_v45  ;;  %v4847_v45 = vld [vmem:[#allocation8 + $0x100] sm:$0xff] }
 0x382   : > { %1451 = vmatprep.subr.mxu1 %v4287_v14  ;;  %v1275_v0 = vmul.f32 %v3455_v62, %v3453_v61  ;;  %v4711_v14 = vld [vmem:[%s5455_s3 + $0x70] sm:$0xff]  ;;  %5779 = vst [vmem:[#allocation66_spill] sm:$0xff] %v4847_v45 }
 0x383   : > { %1452 = vmatpush1.msra.mxu1 %v4292_v6  ;;  %v4799_v6 = vld [vmem:[%s5455_s3 + $0x20] sm:$0xff] }
 0x384   : > { %1453 = vmatprep.subr.mxu1 %v5707_v48  ;;  %2817 = vst [vmem:[%s4014_s16 + $0x10] sm:$0xff] %v1275_v0  ;;  %1431 = vmatmul.mubr.f32.vlgmr.msra.gmra.mxu0 %v1275_v0  ;;  %5769 = vst [vmem:[#allocation61_spill] sm:$0xff] %v4799_v6  ;;  %v4850_v48 = vld [vmem:[#allocation8 + $0x1f8] sm:$0xff] }
 0x385   : > { %1454 = vmatpush1.msra.mxu1 %v4300_v2  ;;  %3160 = vmatpush3.msra.mxu0 %v4702_v1  ;;  %v5773_v2 = vld [vmem:[#allocation59_spill] sm:$0xff]  ;;  %5780 = vst [vmem:[#allocation27_spill] sm:$0xff] %v4850_v48 }
 0x386   : > { %1455 = vmatprep.subr.mxu1 %v5709_v51  ;;  %3161 = vmatprep.subr.mxu0 %v5701_v37  ;;  %v4853_v51 = vld [vmem:[#allocation8 + $0xe8] sm:$0xff] }
 0x387   : > { %1456 = vmatpush1.msra.mxu1 %v4307_v20  ;;  %3162 = vmatpush3.msra.mxu0 %v4711_v14  ;;  %v4729_v20 = vld [vmem:[%s5455_s3 + $0x60] sm:$0xff]  ;;  %5781 = vst [vmem:[#allocation67_spill] sm:$0xff] %v4853_v51 }
 0x388   : > { %1457 = vmatprep.subr.mxu1 %v5711_v59  ;;  %3163 = vmatprep.subr.mxu0 %v5701_v37  ;;  %v4856_v59 = vld [vmem:[#allocation8 + $0xe0] sm:$0xff] }
 0x389   : > { %1458 = vmatpush1.msra.mxu1 %v4315_v7  ;;  %3164 = vmatpush3.msra.mxu0 %v4720_v3  ;;  %v4826_v7 = vld [vmem:[%s5455_s3 + $0x8] sm:$0xff]  ;;  %5782 = vst [vmem:[#allocation28_spill] sm:$0xff] %v4856_v59 }
 0x38a   : > { %1459 = vmatprep.subr.mxu1 %v5713_v55  ;;  %3165 = vmatprep.subr.mxu0 %v5701_v37  ;;  %5774 = vst [vmem:[#allocation24_spill] sm:$0xff] %v4826_v7  ;;  %v4860_v55 = vld [vmem:[#allocation8 + $0xc8] sm:$0xff] }
 0x38b   : > { %1460 = vmatpush1.msra.mxu1 %v4323_v17  ;;  %3166 = vmatpush3.msra.mxu0 %v4729_v20  ;;  %v4747_v17 = vld [vmem:[%s5455_s3 + $0x50] sm:$0xff]  ;;  %5783 = vst [vmem:[#allocation31_spill] sm:$0xff] %v4860_v55 }
 0x38c   : > { %1461 = vmatprep.subr.mxu1 %v5715_v36  ;;  %3167 = vmatprep.subr.mxu0 %v5701_v37  ;;  %v4863_v36 = vld [vmem:[#allocation8 + $0xc0] sm:$0xff] }
 0x38d   : > { %1462 = vmatpush1.msra.mxu1 %v4331_v10  ;;  %3168 = vmatpush3.msra.mxu0 %v4738_v4  ;;  %v4756_v10 = vld [vmem:[%s5455_s3 + $0x48] sm:$0xff]  ;;  %5784 = vst [vmem:[#allocation34_spill] sm:$0xff] %v4863_v36 }
 0x38e   : > { %1463 = vmatprep.subr.mxu1 %v5739_v53  ;;  %3169 = vmatprep.subr.mxu0 %v5701_v37  ;;  %v4869_v53 = vld [vmem:[#allocation8 + $0xa0] sm:$0xff] }
 0x38f   : > { %1464 = vmatpush1.msra.mxu1 %v4339_v5  ;;  %3170 = vmatpush3.msra.mxu0 %v4747_v17  ;;  %v5772_v5 = vld [vmem:[#allocation58_spill] sm:$0xff]  ;;  %5786 = vst [vmem:[#allocation69_spill] sm:$0xff] %v4869_v53 }
 0x390   : > { %1465 = vmatprep.subr.mxu1 %v4343_v32  ;;  %3171 = vmatprep.subr.mxu0 %v5701_v37  ;;  %v4765_v32 = vld [vmem:[%s5455_s3 + $0x40] sm:$0xff] }
 0x391   : > { %1466 = vmatpush1.msra.mxu1 %v4347_v23  ;;  %3172 = vmatpush3.msra.mxu0 %v4756_v10  ;;  %v4772_v23 = vld [vmem:[%s5455_s3 + $0x38] sm:$0xff] }
 0x392   : > { %1467 = vmatprep.subr.mxu1 %v4351_v35  ;;  %3173 = vmatprep.subr.mxu0 %v5701_v37  ;;  %v4790_v35 = vld [vmem:[%s5455_s3 + $0x28] sm:$0xff] }
 0x393   : > { %1468 = vmatpush1.msra.mxu1 %v4355_v26  ;;  %3174 = vmatpush3.msra.mxu0 %v4765_v32  ;;  %v4781_v26 = vld [vmem:[%s5455_s3 + $0x30] sm:$0xff]  ;;  %5768 = vst [vmem:[#allocation60_spill] sm:$0xff] %v4790_v35 }
 0x394   : > { %1502 = vmatmul.mubr.f32.vlgmr.msra.gmra.mxu1 %v1275_v0  ;;  %3175 = vmatprep.subr.mxu0 %v5701_v37  ;;  %v2821_v0 = vld [vmem:[%s4001_s10 + $0x70] sm:$0xff] }
 0x395   : > { %3176 = vmatpush3.msra.mxu0 %v4772_v23  ;;  %1626 = vmatprep.subr.mxu1 %v4593_v49 }
 0x396   : > { %3177 = vmatprep.subr.mxu0 %v5701_v37  ;;  %1627 = vmatpush1.msra.mxu1 %v4597_v52 }
 0x397   : > { %3178 = vmatpush3.msra.mxu0 %v4781_v26  ;;  %1628 = vmatprep.subr.mxu1 %v4601_v12 }
 0x398   : > { %3179 = vmatprep.subr.mxu0 %v5701_v37  ;;  %1629 = vmatpush1.msra.mxu1 %v4605_v29 }
 0x399   : > { %3180 = vmatpush3.msra.mxu0 %v4790_v35  ;;  %1630 = vmatprep.subr.mxu1 %v4609_v54 }
 0x39a   : > { %3181 = vmatprep.subr.mxu0 %v5701_v37  ;;  %1631 = vmatpush1.msra.mxu1 %v4613_v46 }
 0x39b   : > { %3182 = vmatpush3.msra.mxu0 %v4799_v6  ;;  %1632 = vmatprep.subr.mxu1 %v4617_v38 }
 0x39c   : > { %3183 = vmatprep.subr.mxu0 %v5701_v37  ;;  %1633 = vmatpush1.msra.mxu1 %v4621_v43 }
 0x39d   : > { %3184 = vmatpush3.msra.mxu0 %v4808_v8  ;;  %1634 = vmatprep.subr.mxu1 %v4625_v42 }
 0x39e   : > { %3185 = vmatprep.subr.mxu0 %v5701_v37  ;;  %1635 = vmatpush1.msra.mxu1 %v4629_v40 }
 0x39f   : > { %3186 = vmatpush3.msra.mxu0 %v4817_v63  ;;  %1636 = vmatprep.subr.mxu1 %v5772_v5 }
 0x3a0   : > { %3187 = vmatprep.subr.mxu0 %v5701_v37  ;;  %1637 = vmatpush1.msra.mxu1 %v5773_v2 }
 0x3a1   : > { %3188 = vmatpush3.msra.mxu0 %v4826_v7  ;;  %1638 = vmatprep.subr.mxu1 %v4829_v34 }
 0x3a2   : > { %3189 = vmatprep.subr.mxu0 %v5701_v37  ;;  %1639 = vmatpush1.msra.mxu1 %v4833_v57 }
 0x3a3   : > { %3190 = vmatpush3.msra.mxu0 %v4839_v58  ;;  %1640 = vmatprep.subr.mxu1 %v4842_v60 }
 0x3a4   : > { %3191 = vmatprep.mubr.msk.f32.mxu0 %vm3832_vm0, %v5701_v37  ;;  %1641 = vmatpush1.msra.mxu1 %v4847_v45 }
 0x3a5   : > { %1697 = vmatprep.subr.mxu0 %v4850_v48  ;;  %1642 = vmatprep.subr.mxu1 %v4853_v51 }
 0x3a6   : > { %1643 = vmatpush1.msra.mxu1 %v4856_v59  ;;  %1690 = vmatprep.mubr.f32.mxu1 %v5701_v37 }
 0x3a7   : > { %1644 = vmatprep.subr.mxu1 %v4860_v55 }
 0x3a8   : > { %1645 = vmatpush1.msra.mxu1 %v4863_v36 }
 0x3a9   : > { %1646 = vmatprep.subr.mxu1 %v4866_v25 }
 0x3aa   : > { %1647 = vmatpush1.msra.mxu1 %v4869_v53 }
 0x3ab   : > { %1648 = vmatprep.subr.mxu1 %v4872_v16 }
 0x3ac   : > { %1649 = vmatpush1.msra.mxu1 %v4875_v15 }
 0x3ad   : > { %1650 = vmatprep.subr.mxu1 %v4878_v11 }
 0x3ae   : > { %1651 = vmatpush1.msra.mxu1 %v4881_v13 }
 0x3af   : > { %1652 = vmatprep.subr.mxu1 %v4884_v18 }
 0x3b0   : > { %1653 = vmatpush1.msra.mxu1 %v4887_v19 }
 0x3b1   : > { %1654 = vmatprep.subr.mxu1 %v4890_v21 }
 0x3b2   : > { %1655 = vmatpush1.msra.mxu1 %v4893_v27  ;;  %v2822_v27 = vld [vmem:[%s4001_s10 + $0x78] sm:$0xff] }
 0x3b3   : > { %1656 = vmatprep.subr.mxu1 %v4896_v30 }
 0x3b4   : > { %1657 = vmatpush1.msra.mxu1 %v4899_v31 }
 0x3b5   : > { %3194 = vmatprep.subr.mxu1 %v5701_v37 }
 0x434   : > { %v1353_v56 = vpop.f32.mrf.mxu1 }
 0x435   : > { %v1354_v62 = vadd.f32 %v5738_v22, %v1353_v56 }
 0x436   : > { %v3158_v24 = vpop.f32.mrf.mxu1 }
 0x444   : > { %v1432_v47 = vpop.f32.mrf.mxu0 }
 0x445   : > { %v1508_v39 = vadd.f32 %v2819_v28, %v1432_v47 }
 0x446   : > { %v1434_v41 = vpop.f32.mrf.mxu0 }
 0x447   : > { %v2824_v44 = vmul.f32 -1.442695, %v1508_v39  ;;  %v1509_v33 = vadd.f32 %v2820_v50, %v1434_v41  ;;  %v1362_v50 = vpop.permute.xlu1 %1361 }
 0x449   : > { %3456 = vpow2.f32 %v2824_v44  ;;  %v2825_v61 = vmul.f32 -1.442695, %v1509_v33 }
 0x44b   : > { %3458 = vpow2.f32 %v2825_v61 }
 0x44c   : > { %3460 = vtanh.f32 %v1354_v62  ;;  %v4931_v62 = vld [vmem:[#allocation8 + $0x198] sm:$0xff] }
 0x454   : > { %v1503_v31 = vpop.f32.mrf.mxu1 }
 0x455   : > { %v1510_v30 = vadd.f32 %v2821_v0, %v1503_v31  ;;  %v4934_v0 = vld [vmem:[#allocation8 + $0x190] sm:$0xff] }
 0x456   : > { %v3457_v21 = vpop.eup %3456  ;;  %v1505_v24 = vpop.f32.mrf.mxu1 }
 0x457   : > { %v1515_v19 = vadd.f32 1.0, %v3457_v21  ;;  %v2826_v18 = vmul.f32 -1.442695, %v1510_v30  ;;  %v1511_v11 = vadd.f32 %v2822_v27, %v1505_v24  ;;  %v4937_v24 = vld [vmem:[#allocation8 + $0x178] sm:$0xff] }
 0x458   : > { %v3459_v13 = vpop.eup %3458 }
 0x459   : > { %3462 = vrcp.f32 %v1515_v19  ;;  %v1521_v28 = vadd.f32 1.0, %v3459_v13  ;;  %v3461_v47 = vpop.eup %3460  ;;  %v4922_v13 = vld [vmem:[#allocation8 + $0x1d0] sm:$0xff] }
 0x45a   : > { %3464 = vpow2.f32 %v2826_v18  ;;  %v1358_v22 = vsub.f32 %v4674_v9, %v3461_v47  ;;  %v1364_v56 = vmul.f32 %v3461_v47, %v1362_v50  ;;  %v4919_v9 = vld [vmem:[#allocation8 + $0x1d8] sm:$0xff]  ;;  %v4928_v19 = vld [vmem:[#allocation8 + $0x1b0] sm:$0xff] }
 0x45b   : > { %3466 = vrcp.f32 %v1521_v28  ;;  %v4925_v18 = vld [vmem:[#allocation8 + $0x1b8] sm:$0xff]  ;;  %v4940_v28 = vld [vmem:[#allocation8 + $0x170] sm:$0xff] }
 0x45c   : > { %3468 = vtanh.f32 %v1511_v11  ;;  %v1365_v41 = vadd.f32 %v1364_v56, %v1358_v22  ;;  %v4915_v11 = vld [vmem:[#allocation8 + $0x1f0] sm:$0xff]  ;;  %v4943_v47 = vld [vmem:[#allocation8 + $0x158] sm:$0xff] }
 0x45d   : > { %v4946_v50 = vld [vmem:[#allocation8 + $0x150] sm:$0xff]  ;;  %v4949_v56 = vld [vmem:[#allocation8 + $0x138] sm:$0xff] }
 0x466   : > { %v3463_v39 = vpop.eup %3462 }
 0x467   : > { %v3465_v31 = vpop.eup %3464 }
 0x468   : > { %v3467_v44 = vpop.eup %3466  ;;  %v1527_v21 = vadd.f32 1.0, %v3465_v31  ;;  %v4952_v31 = vld [vmem:[#allocation8 + $0x130] sm:$0xff] }
 0x469   : > { %v3469_v33 = vpop.eup %3468  ;;  %v1531_v30 = vmul.f32 %v3467_v44, %v1365_v41  ;;  %v4955_v41 = vld [vmem:[#allocation8 + $0x118] sm:$0xff] }
 0x46a   : > { %v1532_v61 = vmul.f32 %v3469_v33, %v3463_v39  ;;  %3470 = vrcp.f32 %v1527_v21  ;;  %v4958_v33 = vld [vmem:[#allocation8 + $0x110] sm:$0xff]  ;;  %v4961_v21 = vld [vmem:[#allocation8 + $0xf8] sm:$0xff] }
 0x46c   : > { %v4909_v27 = vadd.f32 %v1532_v61, %v1531_v30  ;;  %v4965_v30 = vld [vmem:[#allocation8 + $0xf0] sm:$0xff]  ;;  %v4969_v61 = vld [vmem:[#allocation8 + $0xd8] sm:$0xff] }
 0x46d   : > { %5797 = vst [vmem:[#allocation57_spill] sm:$0xff] %v4965_v30  ;;  %5798 = vst [vmem:[#allocation36_spill] sm:$0xff] %v4969_v61 }
 0x46e   : > { %3472 = vtanh.f32 %v4909_v27  ;;  %2828 = vst [vmem:[%s4016_s7 + $0x18] sm:$0xff] %v4909_v27  ;;  %3192 = vmatmul.mubr.f32.vlgmr.msra.gmra.mxu0 %v4909_v27 }
 0x46f   : > { %1698 = vmatpush1.msra.mxu0 %v4915_v11  ;;  %1761 = vmatprep.mubr.f32.mxu0 %v5701_v37 }
 0x470   : > { %1699 = vmatprep.subr.mxu0 %v4919_v9 }
 0x471   : > { %1700 = vmatpush1.msra.mxu0 %v4922_v13 }
 0x472   : > { %1701 = vmatprep.subr.mxu0 %v4925_v18 }
 0x473   : > { %1702 = vmatpush1.msra.mxu0 %v4928_v19 }
 0x474   : > { %1703 = vmatprep.subr.mxu0 %v4931_v62 }
 0x475   : > { %1704 = vmatpush1.msra.mxu0 %v4934_v0 }
 0x476   : > { %1705 = vmatprep.subr.mxu0 %v4937_v24 }
 0x477   : > { %1706 = vmatpush1.msra.mxu0 %v4940_v28  ;;  %v3471_v22 = vpop.eup %3470 }
 0x478   : > { %1707 = vmatprep.subr.mxu0 %v4943_v47 }
 0x479   : > { %1708 = vmatpush1.msra.mxu0 %v4946_v50 }
 0x47a   : > { %1709 = vmatprep.subr.mxu0 %v4949_v56 }
 0x47b   : > { %v3473_v39 = vpop.eup %3472  ;;  %1710 = vmatpush1.msra.mxu0 %v4952_v31 }
 0x47c   : > { %1711 = vmatprep.subr.mxu0 %v4955_v41  ;;  %v1535_v44 = vmul.f32 %v3473_v39, %v3471_v22  ;;  %v4973_v22 = vld [vmem:[#allocation8 + $0xd0] sm:$0xff]  ;;  %v4977_v39 = vld [vmem:[#allocation8 + $0xb8] sm:$0xff] }
 0x47d   : > { %1712 = vmatpush1.msra.mxu0 %v4958_v33  ;;  %5799 = vst [vmem:[#allocation38_spill] sm:$0xff] %v4973_v22  ;;  %5800 = vst [vmem:[#allocation39_spill] sm:$0xff] %v4977_v39 }
 0x47e   : > { %1713 = vmatprep.subr.mxu0 %v4961_v21  ;;  %2827 = vst [vmem:[%s4014_s16 + $0x18] sm:$0xff] %v1535_v44  ;;  %1691 = vmatmul.mubr.f32.vlgmr.msra.gmra.mxu1 %v1535_v44 }
 0x47f   : > { %1714 = vmatpush1.msra.mxu0 %v4965_v30  ;;  %3195 = vmatpush3.msra.mxu1 %v4702_v1  ;;  %v4981_v30 = vld [vmem:[#allocation8 + $0xb0] sm:$0xff] }
 0x480   : > { %1715 = vmatprep.subr.mxu0 %v4969_v61  ;;  %3196 = vmatprep.subr.mxu1 %v5701_v37  ;;  %5801 = vst [vmem:[#allocation40_spill] sm:$0xff] %v4981_v30  ;;  %v4985_v61 = vld [vmem:[#allocation8 + $0x98] sm:$0xff] }
 0x481   : > { %1716 = vmatpush1.msra.mxu0 %v4973_v22  ;;  %3197 = vmatpush3.msra.mxu1 %v4711_v14  ;;  %5802 = vst [vmem:[#allocation41_spill] sm:$0xff] %v4985_v61  ;;  %v4989_v22 = vld [vmem:[#allocation8 + $0x90] sm:$0xff] }
 0x482   : > { %1717 = vmatprep.subr.mxu0 %v4977_v39  ;;  %3198 = vmatprep.subr.mxu1 %v5701_v37  ;;  %5803 = vst [vmem:[#allocation42_spill] sm:$0xff] %v4989_v22  ;;  %v4993_v39 = vld [vmem:[#allocation8 + $0x78] sm:$0xff] }
 0x483   : > { %1718 = vmatpush1.msra.mxu0 %v4981_v30  ;;  %3199 = vmatpush3.msra.mxu1 %v4720_v3  ;;  %5804 = vst [vmem:[#allocation43_spill] sm:$0xff] %v4993_v39  ;;  %v4997_v30 = vld [vmem:[#allocation8 + $0x70] sm:$0xff] }
 0x484   : > { %1719 = vmatprep.subr.mxu0 %v4985_v61  ;;  %3200 = vmatprep.subr.mxu1 %v5701_v37  ;;  %5805 = vst [vmem:[#allocation44_spill] sm:$0xff] %v4997_v30  ;;  %v5001_v61 = vld [vmem:[#allocation8 + $0x58] sm:$0xff] }
 0x485   : > { %1720 = vmatpush1.msra.mxu0 %v4989_v22  ;;  %3201 = vmatpush3.msra.mxu1 %v4729_v20  ;;  %5806 = vst [vmem:[#allocation45_spill] sm:$0xff] %v5001_v61  ;;  %v5005_v22 = vld [vmem:[#allocation8 + $0x50] sm:$0xff] }
 0x486   : > { %1721 = vmatprep.subr.mxu0 %v4993_v39  ;;  %3202 = vmatprep.subr.mxu1 %v5701_v37  ;;  %5807 = vst [vmem:[#allocation47_spill] sm:$0xff] %v5005_v22  ;;  %v5009_v39 = vld [vmem:[#allocation8 + $0x38] sm:$0xff] }
 0x487   : > { %1722 = vmatpush1.msra.mxu0 %v4997_v30  ;;  %3203 = vmatpush3.msra.mxu1 %v4738_v4  ;;  %v5013_v30 = vld [vmem:[#allocation8 + $0x30] sm:$0xff] }
 0x488   : > { %1723 = vmatprep.subr.mxu0 %v5001_v61  ;;  %3204 = vmatprep.subr.mxu1 %v5701_v37  ;;  %v5017_v61 = vld [vmem:[#allocation8 + $0x18] sm:$0xff] }
 0x489   : > { %1724 = vmatpush1.msra.mxu0 %v5005_v22  ;;  %3205 = vmatpush3.msra.mxu1 %v4747_v17  ;;  %v5021_v22 = vld [vmem:[#allocation8 + $0x10] sm:$0xff] }
 0x48a   : > { %1725 = vmatprep.subr.mxu0 %v5009_v39  ;;  %3206 = vmatprep.subr.mxu1 %v5701_v37 }
 0x48b   : > { %1726 = vmatpush1.msra.mxu0 %v5013_v30  ;;  %3207 = vmatpush3.msra.mxu1 %v4756_v10 }
 0x48c   : > { %1727 = vmatprep.subr.mxu0 %v5017_v61  ;;  %3208 = vmatprep.subr.mxu1 %v5701_v37 }
 0x48d   : > { %1728 = vmatpush1.msra.mxu0 %v5021_v22  ;;  %3209 = vmatpush3.msra.mxu1 %v4765_v32 }
 0x48e   : > { %1762 = vmatmul.mubr.f32.vlgmr.msra.gmra.mxu0 %v1535_v44  ;;  %3210 = vmatprep.subr.mxu1 %v5701_v37  ;;  %v5808_v44 = vld [vmem:[#allocation46_spill] sm:$0xff] }
 0x48f   : > { %3211 = vmatpush3.msra.mxu1 %v4772_v23  ;;  %1886 = vmatprep.subr.mxu0 %v4593_v49 }
 0x490   : > { %3212 = vmatprep.subr.mxu1 %v5701_v37  ;;  %1887 = vmatpush1.msra.mxu0 %v4597_v52 }
 0x491   : > { %3213 = vmatpush3.msra.mxu1 %v4781_v26  ;;  %1888 = vmatprep.subr.mxu0 %v4601_v12 }
 0x492   : > { %3214 = vmatprep.subr.mxu1 %v5701_v37  ;;  %1889 = vmatpush1.msra.mxu0 %v4605_v29 }
 0x493   : > { %3215 = vmatpush3.msra.mxu1 %v4790_v35  ;;  %1890 = vmatprep.subr.mxu0 %v4609_v54 }
 0x494   : > { %3216 = vmatprep.subr.mxu1 %v5701_v37  ;;  %1891 = vmatpush1.msra.mxu0 %v4613_v46 }
 0x495   : > { %3217 = vmatpush3.msra.mxu1 %v4799_v6  ;;  %1892 = vmatprep.subr.mxu0 %v4617_v38 }
 0x496   : > { %3218 = vmatprep.subr.mxu1 %v5701_v37  ;;  %1893 = vmatpush1.msra.mxu0 %v4621_v43 }
 0x497   : > { %3219 = vmatpush3.msra.mxu1 %v4808_v8  ;;  %1894 = vmatprep.subr.mxu0 %v4625_v42 }
 0x498   : > { %3220 = vmatprep.subr.mxu1 %v5701_v37  ;;  %1895 = vmatpush1.msra.mxu0 %v4629_v40 }
 0x499   : > { %3221 = vmatpush3.msra.mxu1 %v4817_v63  ;;  %1896 = vmatprep.subr.mxu0 %v5772_v5 }
 0x49a   : > { %3222 = vmatprep.subr.mxu1 %v5701_v37  ;;  %1897 = vmatpush1.msra.mxu0 %v5773_v2 }
 0x49b   : > { %3223 = vmatpush3.msra.mxu1 %v4826_v7  ;;  %1898 = vmatprep.subr.mxu0 %v4829_v34  ;;  %v2832_v34 = vld [vmem:[%s4001_s10 + $0x98] sm:$0xff] }
 0x49c   : > { %3224 = vmatprep.subr.mxu1 %v5701_v37  ;;  %1899 = vmatpush1.msra.mxu0 %v4833_v57 }
 0x49d   : > { %3225 = vmatpush3.msra.mxu1 %v4839_v58  ;;  %1900 = vmatprep.subr.mxu0 %v4842_v60 }
 0x49e   : > { %3226 = vmatprep.mubr.msk.f32.mxu1 %vm3832_vm0, %v5701_v37  ;;  %1901 = vmatpush1.msra.mxu0 %v4847_v45  ;;  %v2830_v45 = vld [vmem:[%s4001_s10 + $0x88] sm:$0xff] }
 0x49f   : > { %1957 = vmatprep.subr.mxu1 %v4850_v48  ;;  %1902 = vmatprep.subr.mxu0 %v4853_v51  ;;  %v5809_v51 = vld [vmem:[#allocation49_spill] sm:$0xff]  ;;  %v5811_v48 = vld [vmem:[#allocation30_spill] sm:$0xff] }
 0x4a0   : > { %1903 = vmatpush1.msra.mxu0 %v4856_v59  ;;  %1950 = vmatprep.mubr.f32.mxu0 %v5701_v37  ;;  %v5810_v59 = vld [vmem:[#allocation52_spill] sm:$0xff] }
 0x4a1   : > { %1904 = vmatprep.subr.mxu0 %v4860_v55  ;;  %v5812_v55 = vld [vmem:[#allocation32_spill] sm:$0xff] }
 0x4a2   : > { %1905 = vmatpush1.msra.mxu0 %v4863_v36  ;;  %v5813_v36 = vld [vmem:[#allocation55_spill] sm:$0xff] }
 0x4a3   : > { %1906 = vmatprep.subr.mxu0 %v4866_v25  ;;  %v5814_v25 = vld [vmem:[#allocation33_spill] sm:$0xff] }
 0x4a4   : > { %1907 = vmatpush1.msra.mxu0 %v4869_v53  ;;  %v5815_v53 = vld [vmem:[#allocation35_spill] sm:$0xff] }
 0x4a5   : > { %1908 = vmatprep.subr.mxu0 %v4872_v16 }
 0x4a6   : > { %1909 = vmatpush1.msra.mxu0 %v4875_v15 }
 0x4a7   : > { %1910 = vmatprep.subr.mxu0 %v5808_v44  ;;  %v2829_v44 = vld [vmem:[%s4001_s10 + $0x80] sm:$0xff] }
 0x4a8   : > { %1911 = vmatpush1.msra.mxu0 %v5809_v51 }
 0x4a9   : > { %1912 = vmatprep.subr.mxu0 %v5810_v59 }
 0x4aa   : > { %1913 = vmatpush1.msra.mxu0 %v5811_v48 }
 0x4ab   : > { %1914 = vmatprep.subr.mxu0 %v5812_v55 }
 0x4ac   : > { %1915 = vmatpush1.msra.mxu0 %v5813_v36  ;;  %v2831_v36 = vld [vmem:[%s4001_s10 + $0x90] sm:$0xff] }
 0x4ad   : > { %1916 = vmatprep.subr.mxu0 %v5814_v25 }
 0x4ae   : > { %1917 = vmatpush1.msra.mxu0 %v5815_v53  ;;  %v5083_v53 = vld [vmem:[%s5456_s4] ss:$0 sm:$0xff] }
 0x4af   : > { %3229 = vmatprep.subr.mxu0 %v5701_v37  ;;  %5816 = vst [vmem:[#allocation48_spill] sm:$0xff] %v5083_v53 }
 0x52e   : > { %v1613_v15 = vpop.f32.mrf.mxu0 }
 0x52f   : > { %v1614_v25 = vadd.f32 %v5083_v53, %v1613_v15 }
 0x530   : > { %v3193_v16 = vpop.f32.mrf.mxu0 }
 0x53e   : > { %v1692_v51 = vpop.f32.mrf.mxu1 }
 0x53f   : > { %v1768_v59 = vadd.f32 %v2829_v44, %v1692_v51 }
 0x540   : > { %v1694_v60 = vpop.f32.mrf.mxu1 }
 0x541   : > { %v2834_v48 = vmul.f32 -1.442695, %v1768_v59  ;;  %v1769_v58 = vadd.f32 %v2830_v45, %v1694_v60 }
 0x543   : > { %3474 = vpow2.f32 %v2834_v48  ;;  %v2835_v55 = vmul.f32 -1.442695, %v1769_v58 }
 0x545   : > { %3476 = vpow2.f32 %v2835_v55  ;;  %v1622_v55 = vpop.permute.xlu0 %1621 }
 0x546   : > { %3478 = vtanh.f32 %v1614_v25 }
 0x54e   : > { %v1763_v16 = vpop.f32.mrf.mxu0 }
 0x54f   : > { %v1770_v57 = vadd.f32 %v2831_v36, %v1763_v16 }
 0x550   : > { %v3475_v7 = vpop.eup %3474  ;;  %v1765_v51 = vpop.f32.mrf.mxu0 }
 0x551   : > { %v1775_v44 = vadd.f32 1.0, %v3475_v7  ;;  %v2836_v59 = vmul.f32 -1.442695, %v1770_v57  ;;  %v1771_v45 = vadd.f32 %v2832_v34, %v1765_v51  ;;  %v5819_v51 = vld [vmem:[#allocation38_spill] sm:$0xff] }
 0x552   : > { %v3477_v60 = vpop.eup %3476 }
 0x553   : > { %3480 = vrcp.f32 %v1775_v44  ;;  %v1781_v58 = vadd.f32 1.0, %v3477_v60  ;;  %v3479_v48 = vpop.eup %3478  ;;  %v5820_v44 = vld [vmem:[#allocation39_spill] sm:$0xff]  ;;  %v5822_v60 = vld [vmem:[#allocation41_spill] sm:$0xff] }
 0x554   : > { %3482 = vpow2.f32 %v2836_v59  ;;  %v1618_v15 = vsub.f32 %v4909_v27, %v3479_v48  ;;  %v1624_v25 = vmul.f32 %v3479_v48, %v1622_v55  ;;  %v5818_v27 = vld [vmem:[#allocation36_spill] sm:$0xff]  ;;  %v5826_v55 = vld [vmem:[#allocation45_spill] sm:$0xff] }
 0x555   : > { %3484 = vrcp.f32 %v1781_v58  ;;  %v5821_v59 = vld [vmem:[#allocation40_spill] sm:$0xff]  ;;  %v5824_v58 = vld [vmem:[#allocation43_spill] sm:$0xff] }
 0x556   : > { %3486 = vtanh.f32 %v1771_v45  ;;  %v1625_v16 = vadd.f32 %v1624_v25, %v1618_v15  ;;  %v5823_v45 = vld [vmem:[#allocation42_spill] sm:$0xff]  ;;  %v5825_v48 = vld [vmem:[#allocation44_spill] sm:$0xff]  ;;  %v5827_v15 = vld [vmem:[#allocation47_spill] sm:$0xff] }
 0x557   : > { %v5838_v25 = vld [vmem:[#allocation67_spill] sm:$0xff] }
 0x560   : > { %v3481_v53 = vpop.eup %3480 }
 0x561   : > { %v3483_v36 = vpop.eup %3482 }
 0x562   : > { %v3485_v2 = vpop.eup %3484  ;;  %v1787_v7 = vadd.f32 1.0, %v3483_v36  ;;  %v5839_v36 = vld [vmem:[#allocation28_spill] sm:$0xff] }
 0x563   : > { %v3487_v5 = vpop.eup %3486  ;;  %v1791_v57 = vmul.f32 %v3485_v2, %v1625_v16  ;;  %v5840_v16 = vld [vmem:[#allocation31_spill] sm:$0xff] }
 0x564   : > { %v1792_v63 = vmul.f32 %v3487_v5, %v3481_v53  ;;  %3488 = vrcp.f32 %v1787_v7  ;;  %v5817_v53 = vld [vmem:[#allocation57_spill] sm:$0xff]  ;;  %v5841_v7 = vld [vmem:[#allocation34_spill] sm:$0xff] }
 0x566   : > { %v5089_v34 = vadd.f32 %v1792_v63, %v1791_v57  ;;  %v5842_v57 = vld [vmem:[#allocation37_spill] sm:$0xff] }
 0x568   : > { %3490 = vtanh.f32 %v5089_v34  ;;  %2838 = vst [vmem:[%s4016_s7 + $0x20] sm:$0xff] %v5089_v34  ;;  %3227 = vmatmul.mubr.f32.vlgmr.msra.gmra.mxu1 %v5089_v34 }
 0x569   : > { %1958 = vmatpush1.msra.mxu1 %v4915_v11  ;;  %2021 = vmatprep.mubr.f32.mxu1 %v5701_v37 }
 0x56a   : > { %1959 = vmatprep.subr.mxu1 %v4919_v9 }
 0x56b   : > { %1960 = vmatpush1.msra.mxu1 %v4922_v13 }
 0x56c   : > { %1961 = vmatprep.subr.mxu1 %v4925_v18 }
 0x56d   : > { %1962 = vmatpush1.msra.mxu1 %v4928_v19 }
 0x56e   : > { %1963 = vmatprep.subr.mxu1 %v4931_v62 }
 0x56f   : > { %1964 = vmatpush1.msra.mxu1 %v4934_v0 }
 0x570   : > { %1965 = vmatprep.subr.mxu1 %v4937_v24 }
 0x571   : > { %1966 = vmatpush1.msra.mxu1 %v4940_v28  ;;  %v3489_v63 = vpop.eup %3488 }
 0x572   : > { %1967 = vmatprep.subr.mxu1 %v4943_v47 }
 0x573   : > { %1968 = vmatpush1.msra.mxu1 %v4946_v50 }
 0x574   : > { %1969 = vmatprep.subr.mxu1 %v4949_v56 }
 0x575   : > { %v3491_v5 = vpop.eup %3490  ;;  %1970 = vmatpush1.msra.mxu1 %v4952_v31 }
 0x576   : > { %1971 = vmatprep.subr.mxu1 %v4955_v41  ;;  %v1795_v2 = vmul.f32 %v3491_v5, %v3489_v63  ;;  %v5843_v63 = vld [vmem:[#allocation69_spill] sm:$0xff]  ;;  %v5844_v5 = vld [vmem:[#allocation68_spill] sm:$0xff] }
 0x577   : > { %1972 = vmatpush1.msra.mxu1 %v4958_v33 }
 0x578   : > { %1973 = vmatprep.subr.mxu1 %v4961_v21  ;;  %2837 = vst [vmem:[%s4014_s16 + $0x20] sm:$0xff] %v1795_v2  ;;  %1951 = vmatmul.mubr.f32.vlgmr.msra.gmra.mxu0 %v1795_v2 }
 0x579   : > { %1974 = vmatpush1.msra.mxu1 %v5817_v53  ;;  %3230 = vmatpush3.msra.mxu0 %v4702_v1 }
 0x57a   : > { %1975 = vmatprep.subr.mxu1 %v5818_v27  ;;  %3231 = vmatprep.subr.mxu0 %v5701_v37 }
 0x57b   : > { %1976 = vmatpush1.msra.mxu1 %v5819_v51  ;;  %3232 = vmatpush3.msra.mxu0 %v4711_v14 }
 0x57c   : > { %1977 = vmatprep.subr.mxu1 %v5820_v44  ;;  %3233 = vmatprep.subr.mxu0 %v5701_v37 }
 0x57d   : > { %1978 = vmatpush1.msra.mxu1 %v5821_v59  ;;  %3234 = vmatpush3.msra.mxu0 %v4720_v3 }
 0x57e   : > { %1979 = vmatprep.subr.mxu1 %v5822_v60  ;;  %3235 = vmatprep.subr.mxu0 %v5701_v37 }
 0x57f   : > { %1980 = vmatpush1.msra.mxu1 %v5823_v45  ;;  %3236 = vmatpush3.msra.mxu0 %v4729_v20 }
 0x580   : > { %1981 = vmatprep.subr.mxu1 %v5824_v58  ;;  %3237 = vmatprep.subr.mxu0 %v5701_v37 }
 0x581   : > { %1982 = vmatpush1.msra.mxu1 %v5825_v48  ;;  %3238 = vmatpush3.msra.mxu0 %v4738_v4 }
 0x582   : > { %1983 = vmatprep.subr.mxu1 %v5826_v55  ;;  %3239 = vmatprep.subr.mxu0 %v5701_v37 }
 0x583   : > { %1984 = vmatpush1.msra.mxu1 %v5827_v15  ;;  %3240 = vmatpush3.msra.mxu0 %v4747_v17 }
 0x584   : > { %1985 = vmatprep.subr.mxu1 %v5009_v39  ;;  %3241 = vmatprep.subr.mxu0 %v5701_v37 }
 0x585   : > { %1986 = vmatpush1.msra.mxu1 %v5013_v30  ;;  %3242 = vmatpush3.msra.mxu0 %v4756_v10 }
 0x586   : > { %1987 = vmatprep.subr.mxu1 %v5017_v61  ;;  %3243 = vmatprep.subr.mxu0 %v5701_v37 }
 0x587   : > { %1988 = vmatpush1.msra.mxu1 %v5021_v22  ;;  %3244 = vmatpush3.msra.mxu0 %v4765_v32 }
 0x588   : > { %2022 = vmatmul.mubr.f32.vlgmr.msra.gmra.mxu1 %v1795_v2  ;;  %3245 = vmatprep.subr.mxu0 %v5701_v37  ;;  %v5845_v2 = vld [vmem:[#allocation29_spill] sm:$0xff] }
 0x589   : > { %3246 = vmatpush3.msra.mxu0 %v4772_v23  ;;  %2146 = vmatprep.subr.mxu1 %v4593_v49  ;;  %v5828_v49 = vld [vmem:[#allocation63_spill] sm:$0xff] }
 0x58a   : > { %3247 = vmatprep.subr.mxu0 %v5701_v37  ;;  %2147 = vmatpush1.msra.mxu1 %v4597_v52  ;;  %v5829_v52 = vld [vmem:[#allocation58_spill] sm:$0xff] }
 0x58b   : > { %3248 = vmatpush3.msra.mxu0 %v4781_v26  ;;  %2148 = vmatprep.subr.mxu1 %v4601_v12  ;;  %v5830_v12 = vld [vmem:[#allocation59_spill] sm:$0xff] }
 0x58c   : > { %3249 = vmatprep.subr.mxu0 %v5701_v37  ;;  %2149 = vmatpush1.msra.mxu1 %v4605_v29  ;;  %v5831_v29 = vld [vmem:[#allocation24_spill] sm:$0xff] }
 0x58d   : > { %3250 = vmatpush3.msra.mxu0 %v4790_v35  ;;  %2150 = vmatprep.subr.mxu1 %v4609_v54  ;;  %v5832_v54 = vld [vmem:[#allocation64_spill] sm:$0xff] }
 0x58e   : > { %3251 = vmatprep.subr.mxu0 %v5701_v37  ;;  %2151 = vmatpush1.msra.mxu1 %v4613_v46  ;;  %v5833_v46 = vld [vmem:[#allocation25_spill] sm:$0xff] }
 0x58f   : > { %3252 = vmatpush3.msra.mxu0 %v4799_v6  ;;  %2152 = vmatprep.subr.mxu1 %v4617_v38  ;;  %v5834_v38 = vld [vmem:[#allocation65_spill] sm:$0xff] }
 0x590   : > { %3253 = vmatprep.subr.mxu0 %v5701_v37  ;;  %2153 = vmatpush1.msra.mxu1 %v4621_v43  ;;  %v5835_v43 = vld [vmem:[#allocation26_spill] sm:$0xff] }
 0x591   : > { %3254 = vmatpush3.msra.mxu0 %v4808_v8  ;;  %2154 = vmatprep.subr.mxu1 %v4625_v42  ;;  %v5836_v42 = vld [vmem:[#allocation66_spill] sm:$0xff] }
 0x592   : > { %3255 = vmatprep.subr.mxu0 %v5701_v37  ;;  %2155 = vmatpush1.msra.mxu1 %v4629_v40  ;;  %v5837_v40 = vld [vmem:[#allocation27_spill] sm:$0xff] }
 0x593   : > { %3256 = vmatpush3.msra.mxu0 %v5828_v49  ;;  %2156 = vmatprep.subr.mxu1 %v5829_v52  ;;  %v5846_v52 = vld [vmem:[#allocation46_spill] sm:$0xff] }
 0x594   : > { %3257 = vmatprep.subr.mxu0 %v5701_v37  ;;  %2157 = vmatpush1.msra.mxu1 %v5830_v12  ;;  %v5847_v12 = vld [vmem:[#allocation49_spill] sm:$0xff] }
 0x595   : > { %3258 = vmatpush3.msra.mxu0 %v5831_v29  ;;  %2158 = vmatprep.subr.mxu1 %v5832_v54  ;;  %v2842_v54 = vld [vmem:[%s4001_s10 + $0xb8] sm:$0xff] }
 0x596   : > { %3259 = vmatprep.subr.mxu0 %v5701_v37  ;;  %2159 = vmatpush1.msra.mxu1 %v5833_v46 }
 0x597   : > { %3260 = vmatpush3.msra.mxu0 %v5834_v38  ;;  %2160 = vmatprep.subr.mxu1 %v5835_v43  ;;  %v2841_v38 = vld [vmem:[%s4001_s10 + $0xb0] sm:$0xff] }
 0x598   : > { %3261 = vmatprep.mubr.msk.f32.mxu0 %vm3832_vm0, %v5701_v37  ;;  %2161 = vmatpush1.msra.mxu1 %v5836_v42 }
 0x599   : > { %2217 = vmatprep.subr.mxu0 %v5837_v40  ;;  %2162 = vmatprep.subr.mxu1 %v5838_v25  ;;  %v5849_v25 = vld [vmem:[#allocation30_spill] sm:$0xff]  ;;  %v2840_v40 = vld [vmem:[%s4001_s10 + $0xa8] sm:$0xff] }
 0x59a   : > { %2163 = vmatpush1.msra.mxu1 %v5839_v36  ;;  %2210 = vmatprep.mubr.f32.mxu1 %v5701_v37  ;;  %v5848_v36 = vld [vmem:[#allocation52_spill] sm:$0xff] }
 0x59b   : > { %2164 = vmatprep.subr.mxu1 %v5840_v16  ;;  %v5850_v16 = vld [vmem:[#allocation32_spill] sm:$0xff] }
 0x59c   : > { %2165 = vmatpush1.msra.mxu1 %v5841_v7  ;;  %v5851_v7 = vld [vmem:[#allocation55_spill] sm:$0xff] }
 0x59d   : > { %2166 = vmatprep.subr.mxu1 %v5842_v57  ;;  %v5852_v57 = vld [vmem:[#allocation33_spill] sm:$0xff] }
 0x59e   : > { %2167 = vmatpush1.msra.mxu1 %v5843_v63  ;;  %v5853_v63 = vld [vmem:[#allocation35_spill] sm:$0xff] }
 0x59f   : > { %2168 = vmatprep.subr.mxu1 %v5844_v5 }
 0x5a0   : > { %2169 = vmatpush1.msra.mxu1 %v5845_v2 }
 0x5a1   : > { %2170 = vmatprep.subr.mxu1 %v5846_v52  ;;  %v2839_v52 = vld [vmem:[%s4001_s10 + $0xa0] sm:$0xff] }
 0x5a2   : > { %2171 = vmatpush1.msra.mxu1 %v5847_v12 }
 0x5a3   : > { %2172 = vmatprep.subr.mxu1 %v5848_v36 }
 0x5a4   : > { %2173 = vmatpush1.msra.mxu1 %v5849_v25 }
 0x5a5   : > { %2174 = vmatprep.subr.mxu1 %v5850_v16 }
 0x5a6   : > { %2175 = vmatpush1.msra.mxu1 %v5851_v7  ;;  %v5854_v7 = vld [vmem:[#allocation48_spill] sm:$0xff] }
 0x5a7   : > { %2176 = vmatprep.subr.mxu1 %v5852_v57 }
 0x5a8   : > { %2177 = vmatpush1.msra.mxu1 %v5853_v63 }
 0x5a9   : > { %3264 = vmatprep.subr.mxu1 %v5701_v37 }
 0x628   : > { %v1873_v2 = vpop.f32.mrf.mxu1 }
 0x629   : > { %v1874_v57 = vadd.f32 %v5854_v7, %v1873_v2 }
 0x62a   : > { %v3228_v5 = vpop.f32.mrf.mxu1 }
 0x638   : > { %v1952_v12 = vpop.f32.mrf.mxu0 }
 0x639   : > { %v2028_v36 = vadd.f32 %v2839_v52, %v1952_v12  ;;  %v3636_v12 = vld [vmem:[#allocation8 + $0x160] sm:$0xff] }
 0x63a   : > { %v1954_v42 = vpop.f32.mrf.mxu0 }
 0x63b   : > { %v2844_v25 = vmul.f32 -1.442695, %v2028_v36  ;;  %v2029_v43 = vadd.f32 %v2840_v40, %v1954_v42  ;;  %v1882_v42 = vpop.permute.xlu1 %1881 }
 0x63d   : > { %3492 = vpow2.f32 %v2844_v25  ;;  %v2845_v16 = vmul.f32 -1.442695, %v2029_v43 }
 0x63f   : > { %3494 = vpow2.f32 %v2845_v16 }
 0x640   : > { %3496 = vtanh.f32 %v1874_v57 }
 0x648   : > { %v2023_v63 = vpop.f32.mrf.mxu1 }
 0x649   : > { %v2030_v46 = vadd.f32 %v2841_v38, %v2023_v63 }
 0x64a   : > { %v3493_v29 = vpop.eup %3492  ;;  %v2025_v5 = vpop.f32.mrf.mxu1 }
 0x64b   : > { %v2035_v49 = vadd.f32 1.0, %v3493_v29  ;;  %v2846_v8 = vmul.f32 -1.442695, %v2030_v46  ;;  %v2031_v35 = vadd.f32 %v2842_v54, %v2025_v5  ;;  %v5858_v5 = vld [vmem:[#allocation63_spill] sm:$0xff] }
 0x64c   : > { %v3495_v6 = vpop.eup %3494 }
 0x64d   : > { %3498 = vrcp.f32 %v2035_v49  ;;  %v2041_v52 = vadd.f32 1.0, %v3495_v6  ;;  %v3497_v43 = vpop.eup %3496  ;;  %v3635_v49 = vld [vmem:[#allocation8 + $0x168] sm:$0xff] }
 0x64e   : > { %3500 = vpow2.f32 %v2846_v8  ;;  %v1878_v40 = vsub.f32 %v5089_v34, %v3497_v43  ;;  %v1884_v25 = vmul.f32 %v3497_v43, %v1882_v42  ;;  %v5857_v34 = vld [vmem:[#allocation62_spill] sm:$0xff]  ;;  %v3638_v43 = vld [vmem:[#allocation8 + $0x140] sm:$0xff] }
 0x64f   : > { %3502 = vrcp.f32 %v2041_v52  ;;  %v3637_v52 = vld [vmem:[#allocation8 + $0x148] sm:$0xff]  ;;  %v5859_v42 = vld [vmem:[#allocation24_spill] sm:$0xff] }
 0x650   : > { %3504 = vtanh.f32 %v2031_v35  ;;  %v1885_v16 = vadd.f32 %v1884_v25, %v1878_v40  ;;  %v5860_v40 = vld [vmem:[#allocation64_spill] sm:$0xff]  ;;  %v5861_v25 = vld [vmem:[#allocation25_spill] sm:$0xff] }
 0x65a   : > { %v3499_v36 = vpop.eup %3498 }
 0x65b   : > { %v3501_v38 = vpop.eup %3500 }
 0x65c   : > { %v3503_v57 = vpop.eup %3502  ;;  %v2047_v29 = vadd.f32 1.0, %v3501_v38  ;;  %v5863_v38 = vld [vmem:[#allocation26_spill] sm:$0xff] }
 0x65d   : > { %v3505_v63 = vpop.eup %3504  ;;  %v2051_v46 = vmul.f32 %v3503_v57, %v1885_v16  ;;  %v5864_v16 = vld [vmem:[#allocation66_spill] sm:$0xff]  ;;  %v5865_v57 = vld [vmem:[#allocation27_spill] sm:$0xff] }
 0x65e   : > { %v2052_v2 = vmul.f32 %v3505_v63, %v3499_v36  ;;  %3506 = vrcp.f32 %v2047_v29  ;;  %v5862_v36 = vld [vmem:[#allocation65_spill] sm:$0xff]  ;;  %v5866_v63 = vld [vmem:[#allocation67_spill] sm:$0xff]  ;;  %v5867_v29 = vld [vmem:[#allocation28_spill] sm:$0xff] }
 0x660   : > { %v5202_v54 = vadd.f32 %v2052_v2, %v2051_v46  ;;  %v5868_v46 = vld [vmem:[#allocation31_spill] sm:$0xff]  ;;  %v5869_v2 = vld [vmem:[#allocation34_spill] sm:$0xff] }
 0x662   : > { %3508 = vtanh.f32 %v5202_v54  ;;  %2848 = vst [vmem:[%s4016_s7 + $0x28] sm:$0xff] %v5202_v54  ;;  %3262 = vmatmul.mubr.f32.vlgmr.msra.gmra.mxu0 %v5202_v54 }
 0x663   : > { %2218 = vmatpush1.msra.mxu0 %v4915_v11  ;;  %2281 = vmatprep.mubr.f32.mxu0 %v5701_v37 }
 0x664   : > { %2219 = vmatprep.subr.mxu0 %v4919_v9 }
 0x665   : > { %2220 = vmatpush1.msra.mxu0 %v4922_v13 }
 0x666   : > { %2221 = vmatprep.subr.mxu0 %v4925_v18 }
 0x667   : > { %2222 = vmatpush1.msra.mxu0 %v4928_v19 }
 0x668   : > { %2223 = vmatprep.subr.mxu0 %v4931_v62 }
 0x669   : > { %2224 = vmatpush1.msra.mxu0 %v4934_v0 }
 0x66a   : > { %2225 = vmatprep.subr.mxu0 %v4937_v24 }
 0x66b   : > { %2226 = vmatpush1.msra.mxu0 %v4940_v28  ;;  %v3507_v35 = vpop.eup %3506 }
 0x66c   : > { %2227 = vmatprep.subr.mxu0 %v4943_v47 }
 0x66d   : > { %2228 = vmatpush1.msra.mxu0 %v4946_v50 }
 0x66e   : > { %2229 = vmatprep.subr.mxu0 %v4949_v56 }
 0x66f   : > { %v3509_v6 = vpop.eup %3508  ;;  %2230 = vmatpush1.msra.mxu0 %v4952_v31 }
 0x670   : > { %2231 = vmatprep.subr.mxu0 %v4955_v41  ;;  %v2055_v8 = vmul.f32 %v3509_v6, %v3507_v35  ;;  %v5870_v35 = vld [vmem:[#allocation37_spill] sm:$0xff] }
 0x671   : > { %2232 = vmatpush1.msra.mxu0 %v4958_v33  ;;  %v5871_v6 = vld [vmem:[#allocation69_spill] sm:$0xff] }
 0x672   : > { %2233 = vmatprep.subr.mxu0 %v4961_v21  ;;  %2847 = vst [vmem:[%s4014_s16 + $0x28] sm:$0xff] %v2055_v8  ;;  %2211 = vmatmul.mubr.f32.vlgmr.msra.gmra.mxu1 %v2055_v8 }
 0x673   : > { %2234 = vmatpush1.msra.mxu0 %v5817_v53  ;;  %3265 = vmatpush3.msra.mxu1 %v4702_v1  ;;  %v3627_v1 = vld [vmem:[#allocation8 + $0x1e8] sm:$0xff] }
 0x674   : > { %2235 = vmatprep.subr.mxu0 %v5818_v27  ;;  %3266 = vmatprep.subr.mxu1 %v5701_v37 }
 0x675   : > { %2236 = vmatpush1.msra.mxu0 %v5819_v51  ;;  %3267 = vmatpush3.msra.mxu1 %v4711_v14  ;;  %v3628_v14 = vld [vmem:[#allocation8 + $0x1e0] sm:$0xff] }
 0x676   : > { %2237 = vmatprep.subr.mxu0 %v5820_v44  ;;  %3268 = vmatprep.subr.mxu1 %v5701_v37 }
 0x677   : > { %2238 = vmatpush1.msra.mxu0 %v5821_v59  ;;  %3269 = vmatpush3.msra.mxu1 %v4720_v3  ;;  %v3629_v3 = vld [vmem:[#allocation8 + $0x1c8] sm:$0xff] }
 0x678   : > { %2239 = vmatprep.subr.mxu0 %v5822_v60  ;;  %3270 = vmatprep.subr.mxu1 %v5701_v37 }
 0x679   : > { %2240 = vmatpush1.msra.mxu0 %v5823_v45  ;;  %3271 = vmatpush3.msra.mxu1 %v4729_v20  ;;  %v3630_v20 = vld [vmem:[#allocation8 + $0x1c0] sm:$0xff] }
 0x67a   : > { %2241 = vmatprep.subr.mxu0 %v5824_v58  ;;  %3272 = vmatprep.subr.mxu1 %v5701_v37 }
 0x67b   : > { %2242 = vmatpush1.msra.mxu0 %v5825_v48  ;;  %3273 = vmatpush3.msra.mxu1 %v4738_v4  ;;  %v5855_v4 = vld [vmem:[#allocation60_spill] sm:$0xff] }
 0x67c   : > { %2243 = vmatprep.subr.mxu0 %v5826_v55  ;;  %3274 = vmatprep.subr.mxu1 %v5701_v37 }
 0x67d   : > { %2244 = vmatpush1.msra.mxu0 %v5827_v15  ;;  %3275 = vmatpush3.msra.mxu1 %v4747_v17  ;;  %v3631_v17 = vld [vmem:[#allocation8 + $0x1a8] sm:$0xff] }
 0x67e   : > { %2245 = vmatprep.subr.mxu0 %v5009_v39  ;;  %3276 = vmatprep.subr.mxu1 %v5701_v37 }
 0x67f   : > { %2246 = vmatpush1.msra.mxu0 %v5013_v30  ;;  %3277 = vmatpush3.msra.mxu1 %v4756_v10  ;;  %v3632_v10 = vld [vmem:[#allocation8 + $0x1a0] sm:$0xff] }
 0x680   : > { %2247 = vmatprep.subr.mxu0 %v5017_v61  ;;  %3278 = vmatprep.subr.mxu1 %v5701_v37 }
 0x681   : > { %2248 = vmatpush1.msra.mxu0 %v5021_v22  ;;  %3279 = vmatpush3.msra.mxu1 %v4765_v32  ;;  %v5856_v32 = vld [vmem:[#allocation61_spill] sm:$0xff] }
 0x682   : > { %2282 = vmatmul.mubr.f32.vlgmr.msra.gmra.mxu0 %v2055_v8  ;;  %3280 = vmatprep.subr.mxu1 %v5701_v37  ;;  %v5872_v8 = vld [vmem:[#allocation68_spill] sm:$0xff] }
 0x683   : > { %3281 = vmatpush3.msra.mxu1 %v4772_v23  ;;  %2406 = vmatprep.subr.mxu0 %v3627_v1  ;;  %v3633_v23 = vld [vmem:[#allocation8 + $0x188] sm:$0xff] }
 0x684   : > { %3282 = vmatprep.subr.mxu1 %v5701_v37  ;;  %2407 = vmatpush1.msra.mxu0 %v3628_v14  ;;  %v5873_v1 = vld [vmem:[#allocation29_spill] sm:$0xff]  ;;  %v5874_v14 = vld [vmem:[#allocation46_spill] sm:$0xff] }
 0x685   : > { %3283 = vmatpush3.msra.mxu1 %v4781_v26  ;;  %2408 = vmatprep.subr.mxu0 %v3629_v3  ;;  %v3634_v26 = vld [vmem:[#allocation8 + $0x180] sm:$0xff]  ;;  %v5875_v3 = vld [vmem:[#allocation49_spill] sm:$0xff] }
 0x686   : > { %3284 = vmatprep.subr.mxu1 %v5701_v37  ;;  %2409 = vmatpush1.msra.mxu0 %v3630_v20  ;;  %v5876_v20 = vld [vmem:[#allocation52_spill] sm:$0xff] }
 0x687   : > { %3285 = vmatpush3.msra.mxu1 %v5855_v4  ;;  %2410 = vmatprep.subr.mxu0 %v3631_v17  ;;  %v5877_v4 = vld [vmem:[#allocation30_spill] sm:$0xff]  ;;  %v5878_v17 = vld [vmem:[#allocation32_spill] sm:$0xff] }
 0x688   : > { %3286 = vmatprep.subr.mxu1 %v5701_v37  ;;  %2411 = vmatpush1.msra.mxu0 %v3632_v10  ;;  %v5879_v10 = vld [vmem:[#allocation55_spill] sm:$0xff] }
 0x689   : > { %3287 = vmatpush3.msra.mxu1 %v5856_v32  ;;  %2412 = vmatprep.subr.mxu0 %v3633_v23  ;;  %v5880_v32 = vld [vmem:[#allocation33_spill] sm:$0xff]  ;;  %v5881_v23 = vld [vmem:[#allocation35_spill] sm:$0xff] }
 0x68a   : > { %3288 = vmatprep.subr.mxu1 %v5701_v37  ;;  %2413 = vmatpush1.msra.mxu0 %v3634_v26 }
 0x68b   : > { %3289 = vmatpush3.msra.mxu1 %v5857_v34  ;;  %2414 = vmatprep.subr.mxu0 %v3635_v49  ;;  %v2849_v49 = vld [vmem:[%s4001_s10 + $0xc0] sm:$0xff] }
 0x68c   : > { %3290 = vmatprep.subr.mxu1 %v5701_v37  ;;  %2415 = vmatpush1.msra.mxu0 %v3636_v12 }
 0x68d   : > { %3291 = vmatpush3.msra.mxu1 %v5858_v5  ;;  %2416 = vmatprep.subr.mxu0 %v3637_v52  ;;  %v2850_v5 = vld [vmem:[%s4001_s10 + $0xc8] sm:$0xff] }
 0x68e   : > { %3292 = vmatprep.subr.mxu1 %v5701_v37  ;;  %2417 = vmatpush1.msra.mxu0 %v3638_v43 }
 0x68f   : > { %3293 = vmatpush3.msra.mxu1 %v5859_v42  ;;  %2418 = vmatprep.subr.mxu0 %v5860_v40 }
 0x690   : > { %3294 = vmatprep.subr.mxu1 %v5701_v37  ;;  %2419 = vmatpush1.msra.mxu0 %v5861_v25 }
 0x691   : > { %3295 = vmatpush3.msra.mxu1 %v5862_v36  ;;  %2420 = vmatprep.subr.mxu0 %v5863_v38  ;;  %v2851_v38 = vld [vmem:[%s4001_s10 + $0xd0] sm:$0xff] }
 0x692   : > { %3296 = vmatprep.mubr.msk.f32.mxu1 %vm3832_vm0, %v5701_v37  ;;  %2421 = vmatpush1.msra.mxu0 %v5864_v16 }
 0x693   : > { %2477 = vmatprep.subr.mxu1 %v5865_v57  ;;  %2422 = vmatprep.subr.mxu0 %v5866_v63  ;;  %v2852_v63 = vld [vmem:[%s4001_s10 + $0xd8] sm:$0xff] }
 0x694   : > { %2423 = vmatpush1.msra.mxu0 %v5867_v29  ;;  %2470 = vmatprep.mubr.f32.mxu0 %v5701_v37 }
 0x695   : > { %2424 = vmatprep.subr.mxu0 %v5868_v46 }
 0x696   : > { %2425 = vmatpush1.msra.mxu0 %v5869_v2 }
 0x697   : > { %2426 = vmatprep.subr.mxu0 %v5870_v35 }
 0x698   : > { %2427 = vmatpush1.msra.mxu0 %v5871_v6 }
 0x699   : > { %2428 = vmatprep.subr.mxu0 %v5872_v8 }
 0x69a   : > { %2429 = vmatpush1.msra.mxu0 %v5873_v1 }
 0x69b   : > { %2430 = vmatprep.subr.mxu0 %v5874_v14 }
 0x69c   : > { %2431 = vmatpush1.msra.mxu0 %v5875_v3  ;;  %v2142_v3 = vpop.permute.xlu0 %2141 }
 0x69d   : > { %2432 = vmatprep.subr.mxu0 %v5876_v20 }
 0x69e   : > { %2433 = vmatpush1.msra.mxu0 %v5877_v4 }
 0x69f   : > { %2434 = vmatprep.subr.mxu0 %v5878_v17 }
 0x6a0   : > { %2435 = vmatpush1.msra.mxu0 %v5879_v10 }
 0x6a1   : > { %2436 = vmatprep.subr.mxu0 %v5880_v32 }
 0x6a2   : > { %2437 = vmatpush1.msra.mxu0 %v5881_v23 }
 0x722   : > { %v2133_v26 = vpop.f32.mrf.mxu0 }
 0x723   : > { %v2134_v36 = vadd.f32 %v5854_v7, %v2133_v26 }
 0x724   : > { %v3263_v34 = vpop.f32.mrf.mxu0 }
 0x732   : > { %v2212_v12 = vpop.f32.mrf.mxu1 }
 0x733   : > { %v2288_v52 = vadd.f32 %v2849_v49, %v2212_v12 }
 0x734   : > { %v2214_v43 = vpop.f32.mrf.mxu1 }
 0x735   : > { %v2854_v42 = vmul.f32 -1.442695, %v2288_v52  ;;  %v2289_v40 = vadd.f32 %v2850_v5, %v2214_v43 }
 0x737   : > { %3510 = vpow2.f32 %v2854_v42  ;;  %v2855_v25 = vmul.f32 -1.442695, %v2289_v40 }
 0x739   : > { %3512 = vpow2.f32 %v2855_v25 }
 0x73a   : > { %3514 = vtanh.f32 %v2134_v36 }
 0x742   : > { %v2283_v16 = vpop.f32.mrf.mxu0 }
 0x743   : > { %v2290_v57 = vadd.f32 %v2851_v38, %v2283_v16 }
 0x744   : > { %v3511_v29 = vpop.eup %3510  ;;  %v2285_v46 = vpop.f32.mrf.mxu0 }
 0x745   : > { %v2295_v2 = vadd.f32 1.0, %v3511_v29  ;;  %v2856_v35 = vmul.f32 -1.442695, %v2290_v57  ;;  %v2291_v8 = vadd.f32 %v2852_v63, %v2285_v46 }
 0x746   : > { %v3513_v6 = vpop.eup %3512 }
 0x747   : > { %3516 = vrcp.f32 %v2295_v2  ;;  %v2301_v1 = vadd.f32 1.0, %v3513_v6  ;;  %v3515_v14 = vpop.eup %3514 }
 0x748   : > { %3518 = vpow2.f32 %v2856_v35  ;;  %v2138_v20 = vsub.f32 %v5202_v54, %v3515_v14  ;;  %v2144_v4 = vmul.f32 %v3515_v14, %v2142_v3 }
 0x749   : > { %3520 = vrcp.f32 %v2301_v1 }
 0x74a   : > { %3522 = vtanh.f32 %v2291_v8  ;;  %v2145_v32 = vadd.f32 %v2144_v4, %v2138_v20 }
 0x754   : > { %v3517_v17 = vpop.eup %3516 }
 0x755   : > { %v3519_v10 = vpop.eup %3518 }
 0x756   : > { %v3521_v23 = vpop.eup %3520  ;;  %v2307_v34 = vadd.f32 1.0, %v3519_v10 }
 0x757   : > { %v3523_v26 = vpop.eup %3522  ;;  %v2311_v49 = vmul.f32 %v3521_v23, %v2145_v32 }
 0x758   : > { %v2312_v12 = vmul.f32 %v3523_v26, %v3517_v17  ;;  %3524 = vrcp.f32 %v2307_v34 }
 0x75a   : > { %v5302_v5 = vadd.f32 %v2312_v12, %v2311_v49 }
 0x75c   : > { %3526 = vtanh.f32 %v5302_v5  ;;  %2858 = vst [vmem:[%s4016_s7 + $0x30] sm:$0xff] %v5302_v5  ;;  %3297 = vmatmul.mubr.f32.vlgmr.msra.gmra.mxu1 %v5302_v5 }
 0x75d   : > { %2478 = vmatpush1.msra.mxu1 %v4915_v11  ;;  %2541 = vmatprep.mubr.f32.mxu1 %v5701_v37 }
 0x75e   : > { %2479 = vmatprep.subr.mxu1 %v4919_v9 }
 0x75f   : > { %2480 = vmatpush1.msra.mxu1 %v4922_v13 }
 0x760   : > { %2481 = vmatprep.subr.mxu1 %v4925_v18 }
 0x761   : > { %2482 = vmatpush1.msra.mxu1 %v4928_v19  ;;  %v2859_v19 = vld [vmem:[%s4001_s10 + $0xe0] sm:$0xff] }
 0x762   : > { %2483 = vmatprep.subr.mxu1 %v4931_v62 }
 0x763   : > { %2484 = vmatpush1.msra.mxu1 %v4934_v0  ;;  %v2860_v0 = vld [vmem:[%s4001_s10 + $0xe8] sm:$0xff] }
 0x764   : > { %2485 = vmatprep.subr.mxu1 %v4937_v24 }
 0x765   : > { %2486 = vmatpush1.msra.mxu1 %v4940_v28  ;;  %v3525_v37 = vpop.eup %3524 }
 0x766   : > { %2487 = vmatprep.subr.mxu1 %v4943_v47 }
 0x767   : > { %2488 = vmatpush1.msra.mxu1 %v4946_v50 }
 0x768   : > { %2489 = vmatprep.subr.mxu1 %v4949_v56 }
 0x769   : > { %v3527_v11 = vpop.eup %3526  ;;  %2490 = vmatpush1.msra.mxu1 %v4952_v31 }
 0x76a   : > { %2491 = vmatprep.subr.mxu1 %v4955_v41  ;;  %v2315_v9 = vmul.f32 %v3527_v11, %v3525_v37  ;;  %v2861_v41 = vld [vmem:[%s4001_s10 + $0xf0] sm:$0xff] }
 0x76b   : > { %2492 = vmatpush1.msra.mxu1 %v4958_v33 }
 0x76c   : > { %2493 = vmatprep.subr.mxu1 %v4961_v21  ;;  %2857 = vst [vmem:[%s4014_s16 + $0x30] sm:$0xff] %v2315_v9  ;;  %2471 = vmatmul.mubr.f32.vlgmr.msra.gmra.mxu0 %v2315_v9 }
 0x76d   : > { %2494 = vmatpush1.msra.mxu1 %v5817_v53 }
 0x76e   : > { %2495 = vmatprep.subr.mxu1 %v5818_v27 }
 0x76f   : > { %2496 = vmatpush1.msra.mxu1 %v5819_v51 }
 0x770   : > { %2497 = vmatprep.subr.mxu1 %v5820_v44 }
 0x771   : > { %2498 = vmatpush1.msra.mxu1 %v5821_v59 }
 0x772   : > { %2499 = vmatprep.subr.mxu1 %v5822_v60  ;;  %v2402_v60 = vpop.permute.xlu1 %2401 }
 0x773   : > { %2500 = vmatpush1.msra.mxu1 %v5823_v45 }
 0x774   : > { %2501 = vmatprep.subr.mxu1 %v5824_v58 }
 0x775   : > { %2502 = vmatpush1.msra.mxu1 %v5825_v48 }
 0x776   : > { %2503 = vmatprep.subr.mxu1 %v5826_v55 }
 0x777   : > { %2504 = vmatpush1.msra.mxu1 %v5827_v15 }
 0x778   : > { %2505 = vmatprep.subr.mxu1 %v5009_v39 }
 0x779   : > { %2506 = vmatpush1.msra.mxu1 %v5013_v30  ;;  %v2862_v30 = vld [vmem:[%s4001_s10 + $0xf8] sm:$0xff]  ;;  %s2881_s10 = sshll.u32 %s3805_s24, 4 }
 0x77a   : > { %2507 = vmatprep.subr.mxu1 %v5017_v61  ;;  %s5349_s5 = sadd.s32 %s3809_s25, %s2881_s10 }
 0x77b   : > { %2508 = vmatpush1.msra.mxu1 %v5021_v22  ;;  %s2873_s18 = sshll.u32 %s5349_s5, 7 }
 0x77c   : > { %2542 = vmatmul.mubr.f32.vlgmr.msra.gmra.mxu1 %v2315_v9  ;;  %s5358_s25 = scalar_lea.hbm %s5458_s6, %s2873_s18 }
 0x81c   : > { %v2393_v13 = vpop.f32.mrf.mxu1 }
 0x81d   : > { %v2394_v31 = vadd.f32 %v5854_v7, %v2393_v13 }
 0x81e   : > { %v3298_v18 = vpop.f32.mrf.mxu1 }
 0x82c   : > { %v2472_v62 = vpop.f32.mrf.mxu0 }
 0x82d   : > { %v2548_v24 = vadd.f32 %v2859_v19, %v2472_v62 }
 0x82e   : > { %v2474_v28 = vpop.f32.mrf.mxu0 }
 0x82f   : > { %v2864_v47 = vmul.f32 -1.442695, %v2548_v24  ;;  %v2549_v50 = vadd.f32 %v2860_v0, %v2474_v28 }
 0x831   : > { %3528 = vpow2.f32 %v2864_v47  ;;  %v2865_v56 = vmul.f32 -1.442695, %v2549_v50 }
 0x833   : > { %3530 = vpow2.f32 %v2865_v56 }
 0x834   : > { %3532 = vtanh.f32 %v2394_v31 }
 0x83c   : > { %v2543_v33 = vpop.f32.mrf.mxu1 }
 0x83d   : > { %v2550_v21 = vadd.f32 %v2861_v41, %v2543_v33 }
 0x83e   : > { %v3529_v61 = vpop.eup %3528  ;;  %v2545_v22 = vpop.f32.mrf.mxu1 }
 0x83f   : > { %v2555_v39 = vadd.f32 1.0, %v3529_v61  ;;  %v2866_v53 = vmul.f32 -1.442695, %v2550_v21  ;;  %v2551_v51 = vadd.f32 %v2862_v30, %v2545_v22 }
 0x840   : > { %v3531_v27 = vpop.eup %3530 }
 0x841   : > { %3534 = vrcp.f32 %v2555_v39  ;;  %v2561_v44 = vadd.f32 1.0, %v3531_v27  ;;  %v3533_v59 = vpop.eup %3532 }
 0x842   : > { %3536 = vpow2.f32 %v2866_v53  ;;  %v2398_v45 = vsub.f32 %v5302_v5, %v3533_v59  ;;  %v2404_v58 = vmul.f32 %v3533_v59, %v2402_v60 }
 0x843   : > { %3538 = vrcp.f32 %v2561_v44 }
 0x844   : > { %3540 = vtanh.f32 %v2551_v51  ;;  %v2405_v15 = vadd.f32 %v2404_v58, %v2398_v45 }
 0x84e   : > { %v3535_v48 = vpop.eup %3534 }
 0x84f   : > { %v3537_v55 = vpop.eup %3536 }
 0x850   : > { %v3539_v7 = vpop.eup %3538  ;;  %v2567_v52 = vadd.f32 1.0, %v3537_v55 }
 0x851   : > { %v3541_v54 = vpop.eup %3540  ;;  %v2571_v43 = vmul.f32 %v3539_v7, %v2405_v15 }
 0x852   : > { %v2572_v42 = vmul.f32 %v3541_v54, %v3535_v48  ;;  %3542 = vrcp.f32 %v2567_v52 }
 0x854   : > { %v2573_v40 = vadd.f32 %v2572_v42, %v2571_v43 }
 0x856   : > { %3544 = vtanh.f32 %v2573_v40  ;;  %2868 = vst [vmem:[%s4016_s7 + $0x38] sm:$0xff] %v2573_v40  ;;  %2581 = vst [vmem:[#allocation3] sm:$0xff] %v2573_v40 }
 0x857   : > { %3704 = shalt.err (!%p3701_p13)
}
 0x858   : > { %s3705_s7 = scalar_lea.hbm %s5358_s25, 1024  ;;  %s3709_s8 = scalar_lea.hbm %s5458_s6, 4096 }
 0x859   : > { %p3706_p1 = scmp.ne.s32.totalorder %s5358_s25, %s3705_s7  ;;  %p3710_p5 = scmp.lt.s32.totalorder %s5358_s25, %s5458_s6 }
 0x85a   : > { %p3711_p3 = scmp.lt.s32.totalorder %s3709_s8, %s3705_s7 }
 0x85b   : > { %p3707_p4 = pnand %p3706_p1, %p5882_p10 }
 0x85c   : > { %p3712_p2 = por %p3711_p3, %p3710_p5 }
 0x85d   : > { %p3708_p7 = pneg %p3707_p4 }
 0x85f   : > { %p3713_p6 = pnand %p3712_p2, %p3708_p7 }
 0x861   : > { %3716 = shalt.err (!%p3713_p6)
}
 0x862   : > { %s3835_s19 = smov 128   ;;  %s3836_s2 = smov 256   ;;  %v3543_v25 = vpop.eup %3542 }
 0x863   : > { %s3837_s10 = smov 8   ;;  %s2603_s24 = sshll.u32 %s4014_s16, 4  ;;  %v3545_v36 = vpop.eup %3544  ;;  %s5397_s24 = int_to_ptr.vmem [resolvable:$true] %s2603_s24 }
 0x864   : > { %3306 = dma.vmem_to_hbm [thread:$0]  (%p5882_p10), %s5360_s23, 1024, %s5358_s25, %s2588_s30, %s3835_s19, %s3836_s2, %s3837_s10   ;;  %v2575_v38 = vmul.f32 %v3545_v36, %v3543_v25 }
 0x865   : > { %s5883_s9 = sld [smem:[#allocation71_spill]]  ;;  %s2583_s20 = scalar_lea.sflag [#allocation6], %s3997_s21 }
 0x866   : > { %2867 = vst [vmem:[%s4014_s16 + $0x38] sm:$0xff] %v2575_v38  ;;  %2580 = vst [vmem:[#allocation2] sm:$0xff] %v2575_v38  ;;  %s3717_s7 = scalar_lea.vmem %s5397_s24, 1024  ;;  %s3838_s23 = smov [#allocation10]  }
 0x867   : > { %p3718_p12 = scmp.ne.s32.totalorder %s5397_s24, %s3717_s7  ;;  %s3721_s5 = sshll.u32 %s3838_s23, 4  ;;  %s3722_s5 = int_to_ptr.vmem [resolvable:$false] %s3721_s5 }
 0x868   : > { %s3723_s25 = scalar_lea.vmem %s3722_s5, 2048  ;;  %p3724_p8 = scmp.lt.s32.totalorder %s5397_s24, %s3722_s5 }
 0x869   : > { %p3719_p11 = pnand %p3718_p12, %p5882_p10  ;;  %p3725_p9 = scmp.lt.s32.totalorder %s3723_s25, %s3717_s7 }
 0x86b   : > { %s5395_s11 = scalar_lea.hbm %s5883_s9, %s2873_s18  ;;  %p3720_p0 = pneg %p3719_p11 }
 0x86c   : > { %p3726_p13 = por %p3725_p9, %p3724_p8 }
 0x86e   : > { %p3727_p1 = pnand %p3726_p13, %p3720_p0 }
 0x870   : > { %3730 = shalt.err (!%p3727_p1)
}
 0x871   : > { %s3731_s16 = scalar_lea.hbm %s5395_s11, 1024  ;;  %s3735_s30 = scalar_lea.hbm %s5883_s9, 4096 }
 0x872   : > { %p3732_p4 = scmp.ne.s32.totalorder %s5395_s11, %s3731_s16  ;;  %p3736_p3 = scmp.lt.s32.totalorder %s5395_s11, %s5883_s9 }
 0x873   : > { %p3737_p2 = scmp.lt.s32.totalorder %s3735_s30, %s3731_s16 }
 0x874   : > { %p3733_p7 = pnand %p3732_p4, %p5882_p10 }
 0x875   : > { %p3738_p6 = por %p3737_p2, %p3736_p3 }
 0x876   : > { %p3734_p5 = pneg %p3733_p7 }
 0x878   : > { %p3739_p12 = pnand %p3738_p6, %p3734_p5 }
 0x87a   : > { %3742 = shalt.err (!%p3739_p12)
}
 0x87b   : > { %3305 = dma.vmem_to_hbm [thread:$0]  (%p5882_p10), %s5397_s24, 1024, %s5395_s11, %s2583_s20, %s3835_s19, %s3836_s2, %s3837_s10  }
 0x87c PF: > { %s5884_s8 = sld [smem:[#allocation19_spill]] }
 0x87d   : > { %s5885_s12 = sld [smem:[#allocation17_spill]] }
 0x87e   : > { %s5886_s17 = sld [smem:[#allocation22_spill]] }
 0x882   : > { %p3322_p11 = scmp.ge.s32.totalorder %s5884_s8, 2 }
 0x883   : > { %s2636_s28 = sand.u32 1, %s5885_s12  }
 0x884   : > { %p5887_p0 = scmp.ne.s32.totalorder %s5886_s17, 0  ;;  %s2637_s29 = scalar_lea.sflag [#allocation6], %s2636_s28 }
 0x886   : > { %p3314_p8 = pnand %p3322_p11, %p5887_p0 }
 0x888   : > { %p3315_p9 = pneg %p3314_p8 }
 0x88a   : > { %3784 = dma.done.wait (%p3315_p9), %s2637_s29, 1024  }
 0x88b   : > { %3786 = vsyncadd (%p3315_p9), %s2637_s29, 4294966272  ;;  %s2646_s7 = scalar_lea.sflag [#allocation12], %s2636_s28 }
 0x88c   : > { %3788 = dma.done.wait (%p3315_p9), %s2646_s7, 1024  }
 0x88d   : > { %3790 = vsyncadd (%p3315_p9), %s2646_s7, 4294966272  ;;  %s27_s28 = sadd.s32 1, %s5884_s8   ;;  %s5888_s14 = sld [smem:[#allocation18_spill]] }
 0x88e   : > { %p24_p13 = scmp.ge.s32.totalorder %s27_s28, 6   ;;  %s5889_s23 = sld [smem:[#allocation23_spill]] }
 0x88f   : > { %s5890_s19 = sld [smem:[#allocation20_spill]]  ;;  %s5892_s21 = smov %s3797_s22 }
 0x890   : > { %s5891_s2 = sld [smem:[#allocation21_spill]]  ;;  %s5894_s24 = smov %s3813_s26 }
 0x891   : > { %s5895_s25 = smov %s3817_s27 }
 0x892   :  { %26 = sbr.rel (!%p24_p13) target bundleno = 13 (0xd), region = 184 }
 0x893   : > { %s5893_s22 = smov %s5888_s14 }
 0x895   : > { %s5896_s26 = smov %s5890_s19 }
 0x896   : > { %s5897_s27 = smov %s5891_s2 }
 0x897   :  { %2651 = vsyncpa [#allocation5], 1 }
 0x898   :  { %2653 = vsyncpa [#allocation5 + $0x1], 1 }
 0x899   :  { %2654 = vsyncpa [#allocation9], 1 }
 0x89a   :  { %2655 = vsyncpa [#allocation6], 1 }
 0x89b   :  { %2657 = vsyncpa [#allocation6 + $0x1], 1 }
 0x89c   :  { %2658 = vsyncpa [#allocation12], 1 }
 0x89d   :  { %2660 = vsyncpa [#allocation12 + $0x1], 1 }

</bundles_post_ra>
